<compile_context>
chip_gen: v5e
topology: v5e:2x2
jax: 0.10.0
libtpu: 0.0.40
codegen_flags: <defaults>
</compile_context>

<pallas_src>
import math
import numpy as np
import jax
import jax.numpy as jnp
from jax.experimental import pallas as pl
from jax.experimental.pallas import tpu as pltpu

# ---------------- configuration (small, consistent with the module) ----------------
B        = 2          # batch
IN_DIM   = 16         # predictor input dim (= encoder out_dim in SeqJEPA)
D_MODEL  = 32         # predictor width
OUT_DIM  = 16         # predictor output dim
OUT_PAD  = 128        # lane-dense padded output width
N_HEADS  = 4          # d_head=4 interpreted as number of heads
DH       = D_MODEL // N_HEADS
D_HID    = 4 * D_MODEL
GRID_H, GRID_W = 8, 8
N_POS    = GRID_H * GRID_W          # 64 positions in pos_emb
EPS      = float(jnp.finfo(jnp.float32).eps)

# deterministic JEPA-style masks: target = 4x6 block, context = complement
_tgt = np.zeros((GRID_H, GRID_W), dtype=bool)
_tgt[2:6, 1:7] = True
TRG_IDX = np.nonzero(_tgt.reshape(-1))[0]          # 24 target positions
CTX_IDX = np.nonzero(~_tgt.reshape(-1))[0]         # 40 context positions
S_CTX, S_TRG = len(CTX_IDX), len(TRG_IDX)
S_TOT = S_CTX + S_TRG                              # 64 tokens per batch row

# stacked-token layout: [ctx_b0 .. ctx_b{B-1}, trg_b0 .. trg_b{B-1}]
N_CTXR = B * S_CTX                                 # 80 context rows
N_TRGR = B * S_TRG                                 # 48 prediction rows
T_ALL  = N_CTXR + N_TRGR                           # 128 rows total


# ---------------- deterministic parameter construction ----------------
def rope2d_pos_table(dim, h, w, base=10000.0):
    half = dim // 2
    nfrq = half // 2
    freqs = 1.0 / (base ** (np.arange(nfrq, dtype=np.float64) / nfrq))
    ys, xs = np.meshgrid(np.arange(h), np.arange(w), indexing="ij")
    ys = ys.reshape(-1, 1).astype(np.float64)
    xs = xs.reshape(-1, 1).astype(np.float64)
    ay, ax = ys * freqs, xs * freqs
    tab = np.concatenate([np.sin(ay), np.cos(ay), np.sin(ax), np.cos(ax)], axis=-1)
    return jnp.asarray(tab, dtype=jnp.float32)     # (h*w, dim)


def make_params(key):
    def lin(k, fi, fo):
        kw, kb = jax.random.split(k)
        s = 1.0 / math.sqrt(fi)
        return (jax.random.uniform(kw, (fi, fo), jnp.float32, -s, s),
                jax.random.uniform(kb, (1, fo), jnp.float32, -s, s))

    ks = jax.random.split(key, 12)
    p = {}
    p["we"], p["be"] = lin(ks[0], IN_DIM, D_MODEL)          # embed
    p["wq"], p["bq"] = lin(ks[1], D_MODEL, D_MODEL)
    p["wk"], p["bk"] = lin(ks[2], D_MODEL, D_MODEL)
    p["wv"], p["bv"] = lin(ks[3], D_MODEL, D_MODEL)
    p["wo"], p["bo"] = lin(ks[4], D_MODEL, D_MODEL)
    p["w1"], p["b1"] = lin(ks[5], D_MODEL, D_HID)
    p["w2"], p["b2"] = lin(ks[6], D_HID, D_MODEL)
    p["g1"] = jnp.ones((1, D_MODEL), jnp.float32)            # RMSNorm gains
    p["g2"] = jnp.ones((1, D_MODEL), jnp.float32)
    p["gn"] = jnp.ones((1, D_MODEL), jnp.float32)
    p["wl"], p["bl"] = lin(ks[7], D_MODEL, OUT_DIM)           # final linear
    p["cls"] = jax.random.normal(ks[8], (1, D_MODEL), jnp.float32) * 0.02
    p["pos"] = rope2d_pos_table(D_MODEL, GRID_H, GRID_W)      # (64, D_MODEL)
    return p


# ---------------- Pallas kernel: whole predictor forward, both batch rows at once ----
def predictor_kernel(x_ref, base_ref, bidc_ref, bidr_ref, hscale_ref, we_ref,
                     wqk_ref, bqk_ref, wvo_ref, bvo_ref, bo_ref,
                     g1_ref, g2_ref, gn_ref, w1_ref, b1_ref, w2_ref, b2_ref,
                     wl_ref, bl_ref, out_ref):
    # ---- embed (x zero-padded host-side: target rows contribute 0) + base (cls/pos) ----
    e = jnp.dot(x_ref[...], we_ref[...], preferred_element_type=jnp.float32)   # (128, 32)
    h = e + base_ref[...]                                                       # (128, 32)

    def rmsnorm(v, g):
        ms = jnp.mean(v * v, axis=-1, keepdims=True)
        return v * jax.lax.rsqrt(ms + EPS) * g

    # ---- attention block (pre-norm) ----
    a = rmsnorm(h, g1_ref[...])

    # fused Q/K projection, static lane slices
    qk = jnp.dot(a, wqk_ref[...], preferred_element_type=jnp.float32) + bqk_ref[...]  # (128, 64)
    q = qk[:, :D_MODEL]
    k = qk[:, D_MODEL:]

    # stacked per-head Q (heads along sublanes via leading axis), per-head 0/(1/sqrt(DH))
    # lane mask applied on the VPU — no lane slicing, single MXU score matmul.
    qh = (q[None, :, :] * hscale_ref[...]).reshape(N_HEADS * T_ALL, D_MODEL)    # (512, 32)
    s_all = jax.lax.dot_general(qh, k, (((1,), (1,)), ((), ())),
                                preferred_element_type=jnp.float32)             # (512, 128)
    s3 = s_all.reshape(N_HEADS, T_ALL, T_ALL)                                   # (4,128,128)

    # masked softmax: row max over RAW scores (per-row constant shift is softmax-
    # invariant), exp, then zero cross-batch columns multiplicatively, normalize.
    mask = (bidc_ref[...] == bidr_ref[...]).astype(jnp.float32)                 # (128, 128)
    s3 = s3 - jnp.max(s3, axis=-1, keepdims=True)
    p3 = jnp.exp(s3) * mask[None, :, :]
    p3 = p3 * pl.reciprocal(jnp.sum(p3, axis=-1, keepdims=True), approx=True)

    # fused per-head (V @ Wo) projection: one lane-dense matmul, static 32-lane slices
    vo_all = jnp.dot(a, wvo_ref[...], preferred_element_type=jnp.float32) + bvo_ref[...]  # (128,128)
    attn = None
    for hh in range(N_HEADS):                                                    # static unroll
        c = jnp.dot(p3[hh], vo_all[:, hh * D_MODEL:(hh + 1) * D_MODEL],
                    preferred_element_type=jnp.float32)                          # (128, 32)
        attn = c if attn is None else attn + c
    h = h + attn + bo_ref[...]

    # ---- MLP block (pre-norm) ----
    m = rmsnorm(h, g2_ref[...])
    m = jnp.dot(m, w1_ref[...], preferred_element_type=jnp.float32) + b1_ref[...]
    m = jax.nn.gelu(m)
    m = jnp.dot(m, w2_ref[...], preferred_element_type=jnp.float32) + b2_ref[...]
    h = h + m

    # ---- final RMSNorm on prediction rows only, lane-dense padded output ----
    o = rmsnorm(h[N_CTXR:, :], gn_ref[...])                                      # (48, 32)
    out_ref[...] = jnp.dot(o, wl_ref[...], preferred_element_type=jnp.float32) + bl_ref[...]


def transformer_predictor(x, params, ctx_idx, trg_idx):
    """x: (B, S_ctx, IN_DIM) -> (B, S_trg, OUT_DIM)."""
    p = params
    pos_ctx = p["pos"][ctx_idx]                               # (S_ctx, D)
    pos_trg = p["pos"][trg_idx]                               # (S_trg, D)

    # additive base per stacked token: context rows -> embed bias + pos,
    # prediction rows -> cls + pos (identical across batch, so tile).
    base_ctx = p["be"] + pos_ctx
    base_trg = p["cls"] + pos_trg
    base = jnp.concatenate([jnp.tile(base_ctx, (B, 1)),
                            jnp.tile(base_trg, (B, 1))], axis=0)                 # (128, 32)

    # zero-padded stacked context features: target rows = 0 so embed matmul is direct
    x_pad = jnp.zeros((T_ALL, IN_DIM), jnp.float32).at[:N_CTXR].set(
        x.reshape(B * S_CTX, IN_DIM))                                            # (128, 16)

    # tiny batch-id rows (mask is built in-kernel with a broadcast compare)
    bid = np.concatenate([np.repeat(np.arange(B), S_CTX),
                          np.repeat(np.arange(B), S_TRG)]).astype(np.float32)
    bid_col = jnp.asarray(bid[:, None])                                          # (128, 1)
    bid_row = jnp.asarray(bid[None, :])                                          # (1, 128)

    # per-head lane mask * 1/sqrt(DH) (applied to Q; avoids 8-wide lane slices)
    hs = np.zeros((N_HEADS, 1, D_MODEL), np.float32)
    for hh in range(N_HEADS):
        hs[hh, 0, hh * DH:(hh + 1) * DH] = 1.0 / math.sqrt(DH)
    hscale = jnp.asarray(hs)                                                     # (4, 1, 32)

    # fused Q/K projection weights
    wqk = jnp.concatenate([p["wq"], p["wk"]], axis=1)                            # (32, 64)
    bqk = jnp.concatenate([p["bq"], p["bk"]], axis=1)                            # (1, 64)

    # fold V-projection and output projection per head, lane-dense: Wvo_all (32, 128)
    wvo_all = jnp.concatenate(
        [p["wv"][:, hh * DH:(hh + 1) * DH] @ p["wo"][hh * DH:(hh + 1) * DH, :]
         for hh in range(N_HEADS)], axis=1)                                      # (32, 128)
    bvo_all = jnp.concatenate(
        [p["bv"][:, hh * DH:(hh + 1) * DH] @ p["wo"][hh * DH:(hh + 1) * DH, :]
         for hh in range(N_HEADS)], axis=1)                                      # (1, 128)

    # lane-dense final projection (OUT_DIM padded to 128 lanes with zeros)
    wl_pad = jnp.zeros((D_MODEL, OUT_PAD), jnp.float32).at[:, :OUT_DIM].set(p["wl"])
    bl_pad = jnp.zeros((1, OUT_PAD), jnp.float32).at[:, :OUT_DIM].set(p["bl"])

    inputs = [x_pad, base, bid_col, bid_row, hscale, p["we"],
              wqk, bqk, wvo_all, bvo_all, p["bo"],
              p["g1"], p["g2"], p["gn"], p["w1"], p["b1"], p["w2"], p["b2"],
              wl_pad, bl_pad]

    def full_spec(a):
        nd = a.ndim
        return pl.BlockSpec(a.shape, lambda i, nd=nd: (0,) * nd)

    y_pad = pl.pallas_call(
        predictor_kernel,
        out_shape=jax.ShapeDtypeStruct((N_TRGR, OUT_PAD), jnp.float32),
        grid_spec=pltpu.PrefetchScalarGridSpec(
            num_scalar_prefetch=0,
            grid=(1,),                                         # single invocation, batch folded in
            in_specs=[full_spec(a) for a in inputs],
            out_specs=pl.BlockSpec((N_TRGR, OUT_PAD), lambda i: (0, 0)),
        ),
        compiler_params=pltpu.CompilerParams(dimension_semantics=("arbitrary",)),
    )(*inputs)

    return y_pad[:, :OUT_DIM].reshape(B, S_TRG, OUT_DIM)


# ---------------- pure-JAX reference (same math, per-batch attention) ----------------
def reference(x, p, ctx_idx, trg_idx):
    def rmsnorm(v, g):
        return v * jax.lax.rsqrt(jnp.mean(v * v, -1, keepdims=True) + EPS) * g

    h_ctx = x @ p["we"] + p["be"] + p["pos"][ctx_idx]
    h_trg = jnp.broadcast_to(p["cls"] + p["pos"][trg_idx], (x.shape[0], S_TRG, D_MODEL))
    h = jnp.concatenate([h_ctx, h_trg], axis=1)

    a = rmsnorm(h, p["g1"])
    q = a @ p["wq"] + p["bq"]; k = a @ p["wk"] + p["bk"]; v = a @ p["wv"] + p["bv"]
    qh = q.reshape(-1, S_TOT, N_HEADS, DH).transpose(0, 2, 1, 3)
    kh = k.reshape(-1, S_TOT, N_HEADS, DH).transpose(0, 2, 1, 3)
    vh = v.reshape(-1, S_TOT, N_HEADS, DH).transpose(0, 2, 1, 3)
    s = jnp.einsum("bhqd,bhkd->bhqk", qh, kh) / math.sqrt(DH)
    pr = jax.nn.softmax(s, axis=-1)
    o = jnp.einsum("bhqk,bhkd->bhqd", pr, vh).transpose(0, 2, 1, 3).reshape(-1, S_TOT, D_MODEL)
    h = h + (o @ p["wo"] + p["bo"])
    m = rmsnorm(h, p["g2"])
    m = jax.nn.gelu(m @ p["w1"] + p["b1"]) @ p["w2"] + p["b2"]
    h = h + m
    out = rmsnorm(h, p["gn"])[:, S_CTX:]
    return out @ p["wl"] + p["bl"]


if __name__ == "__main__":
    key = jax.random.PRNGKey(0)
    kx, kp = jax.random.split(key)
    params = make_params(kp)
    x = jax.random.normal(kx, (B, S_CTX, IN_DIM), jnp.float32)

    ctx_idx = jnp.asarray(CTX_IDX, jnp.int32)
    trg_idx = jnp.asarray(TRG_IDX, jnp.int32)

    y = transformer_predictor(x, params, ctx_idx, trg_idx)
    y = jax.block_until_ready(y)

    y_ref = reference(x, params, ctx_idx, trg_idx)
    assert y.shape == (B, S_TRG, OUT_DIM)
    # pl.reciprocal(approx=True) in the softmax contributes ~2^-12 relative error;
    # everything else matches to ~1e-6.
    err = float(jnp.max(jnp.abs(y - y_ref)))
    assert jnp.allclose(y, y_ref, atol=2e-3, rtol=2e-3), err
    print("KERNEL_OK")
</pallas_src>

<mosaic_0001>
module attributes {stable_mosaic.version = 11 : i64} {
  func.func @predictor_kernel(%arg0: i32, %arg1: memref<128x16xf32, #tpu.memory_space<vmem>>, %arg2: memref<128x32xf32, #tpu.memory_space<vmem>>, %arg3: memref<128x1xf32, #tpu.memory_space<vmem>>, %arg4: memref<1x128xf32, #tpu.memory_space<vmem>>, %arg5: memref<4x1x32xf32, #tpu.memory_space<vmem>>, %arg6: memref<16x32xf32, #tpu.memory_space<vmem>>, %arg7: memref<32x64xf32, #tpu.memory_space<vmem>>, %arg8: memref<1x64xf32, #tpu.memory_space<vmem>>, %arg9: memref<32x128xf32, #tpu.memory_space<vmem>>, %arg10: memref<1x128xf32, #tpu.memory_space<vmem>>, %arg11: memref<1x32xf32, #tpu.memory_space<vmem>>, %arg12: memref<1x32xf32, #tpu.memory_space<vmem>>, %arg13: memref<1x32xf32, #tpu.memory_space<vmem>>, %arg14: memref<1x32xf32, #tpu.memory_space<vmem>>, %arg15: memref<32x128xf32, #tpu.memory_space<vmem>>, %arg16: memref<1x128xf32, #tpu.memory_space<vmem>>, %arg17: memref<128x32xf32, #tpu.memory_space<vmem>>, %arg18: memref<1x32xf32, #tpu.memory_space<vmem>>, %arg19: memref<32x128xf32, #tpu.memory_space<vmem>>, %arg20: memref<1x128xf32, #tpu.memory_space<vmem>>, %arg21: memref<48x128xf32, #tpu.memory_space<vmem>>) attributes {dimension_semantics = [#tpu.dimension_semantics<arbitrary>], iteration_bounds = array<i64: 1>, scalar_prefetch = 0 : i64, scratch_operands = 0 : i64, tpu.core_type = #tpu.core_type<tc>, window_params = [{pipeline_mode = #tpu.pipeline_mode<synchronous>, transform_indices = @transform_0, window_bounds = array<i64: 128, 16>}, {pipeline_mode = #tpu.pipeline_mode<synchronous>, transform_indices = @transform_1, window_bounds = array<i64: 128, 32>}, {pipeline_mode = #tpu.pipeline_mode<synchronous>, transform_indices = @transform_2, window_bounds = array<i64: 128, 1>}, {pipeline_mode = #tpu.pipeline_mode<synchronous>, transform_indices = @transform_3, window_bounds = array<i64: 1, 128>}, {pipeline_mode = #tpu.pipeline_mode<synchronous>, transform_indices = @transform_4, window_bounds = array<i64: 4, 1, 32>}, {pipeline_mode = #tpu.pipeline_mode<synchronous>, transform_indices = @transform_5, window_bounds = array<i64: 16, 32>}, {pipeline_mode = #tpu.pipeline_mode<synchronous>, transform_indices = @transform_6, window_bounds = array<i64: 32, 64>}, {pipeline_mode = #tpu.pipeline_mode<synchronous>, transform_indices = @transform_7, window_bounds = array<i64: 1, 64>}, {pipeline_mode = #tpu.pipeline_mode<synchronous>, transform_indices = @transform_8, window_bounds = array<i64: 32, 128>}, {pipeline_mode = #tpu.pipeline_mode<synchronous>, transform_indices = @transform_9, window_bounds = array<i64: 1, 128>}, {pipeline_mode = #tpu.pipeline_mode<synchronous>, transform_indices = @transform_10, window_bounds = array<i64: 1, 32>}, {pipeline_mode = #tpu.pipeline_mode<synchronous>, transform_indices = @transform_11, window_bounds = array<i64: 1, 32>}, {pipeline_mode = #tpu.pipeline_mode<synchronous>, transform_indices = @transform_12, window_bounds = array<i64: 1, 32>}, {pipeline_mode = #tpu.pipeline_mode<synchronous>, transform_indices = @transform_13, window_bounds = array<i64: 1, 32>}, {pipeline_mode = #tpu.pipeline_mode<synchronous>, transform_indices = @transform_14, window_bounds = array<i64: 32, 128>}, {pipeline_mode = #tpu.pipeline_mode<synchronous>, transform_indices = @transform_15, window_bounds = array<i64: 1, 128>}, {pipeline_mode = #tpu.pipeline_mode<synchronous>, transform_indices = @transform_16, window_bounds = array<i64: 128, 32>}, {pipeline_mode = #tpu.pipeline_mode<synchronous>, transform_indices = @transform_17, window_bounds = array<i64: 1, 32>}, {pipeline_mode = #tpu.pipeline_mode<synchronous>, transform_indices = @transform_18, window_bounds = array<i64: 32, 128>}, {pipeline_mode = #tpu.pipeline_mode<synchronous>, transform_indices = @transform_19, window_bounds = array<i64: 1, 128>}, {pipeline_mode = #tpu.pipeline_mode<synchronous>, transform_indices = @transform_20, window_bounds = array<i64: 48, 128>}]} {
    %c0 = arith.constant 0 : index
    %c0_0 = arith.constant 0 : index
    %0 = vector.load %arg1[%c0, %c0_0] : memref<128x16xf32, #tpu.memory_space<vmem>>, vector<128x16xf32>
    %c0_1 = arith.constant 0 : index
    %c0_2 = arith.constant 0 : index
    %1 = vector.load %arg6[%c0_1, %c0_2] : memref<16x32xf32, #tpu.memory_space<vmem>>, vector<16x32xf32>
    %cst = arith.constant dense<0.000000e+00> : vector<128x32xf32>
    %2 = tpu.matmul %0, %1, %cst {dimension_numbers = #tpu.dot_dimension_numbers<[1], [0], [0], [1], [0, 0, 1, 1], [], []>} : vector<128x16xf32>, vector<16x32xf32>, vector<128x32xf32> -> vector<128x32xf32>
    %c0_3 = arith.constant 0 : index
    %c0_4 = arith.constant 0 : index
    %3 = vector.load %arg2[%c0_3, %c0_4] : memref<128x32xf32, #tpu.memory_space<vmem>>, vector<128x32xf32>
    %4 = arith.addf %2, %3 : vector<128x32xf32>
    %c0_5 = arith.constant 0 : index
    %c0_6 = arith.constant 0 : index
    %5 = vector.load %arg12[%c0_5, %c0_6] : memref<1x32xf32, #tpu.memory_space<vmem>>, vector<1x32xf32>
    %6 = arith.mulf %4, %4 : vector<128x32xf32>
    %cst_7 = arith.constant dense<0.000000e+00> : vector<128xf32>
    %7 = vector.multi_reduction <add>, %6, %cst_7 [1] : vector<128x32xf32> to vector<128xf32>
    %8 = vector.shape_cast %7 : vector<128xf32> to vector<128x1xf32>
    %cst_8 = arith.constant 3.200000e+01 : f32
    %9 = vector.broadcast %cst_8 : f32 to vector<128x1xf32>
    %10 = arith.divf %8, %9 : vector<128x1xf32>
    %cst_9 = arith.constant 1.1920929E-7 : f32
    %11 = vector.broadcast %cst_9 : f32 to vector<128x1xf32>
    %12 = arith.addf %10, %11 : vector<128x1xf32>
    %13 = math.rsqrt %12 : vector<128x1xf32>
    %14 = vector.broadcast %13 : vector<128x1xf32> to vector<128x32xf32>
    %15 = arith.mulf %4, %14 : vector<128x32xf32>
    %16 = vector.broadcast %5 : vector<1x32xf32> to vector<128x32xf32>
    %17 = arith.mulf %15, %16 : vector<128x32xf32>
    %c0_10 = arith.constant 0 : index
    %c0_11 = arith.constant 0 : index
    %18 = vector.load %arg7[%c0_10, %c0_11] : memref<32x64xf32, #tpu.memory_space<vmem>>, vector<32x64xf32>
    %cst_12 = arith.constant dense<0.000000e+00> : vector<128x64xf32>
    %19 = tpu.matmul %17, %18, %cst_12 {dimension_numbers = #tpu.dot_dimension_numbers<[1], [0], [0], [1], [0, 0, 1, 1], [], []>} : vector<128x32xf32>, vector<32x64xf32>, vector<128x64xf32> -> vector<128x64xf32>
    %c0_13 = arith.constant 0 : index
    %c0_14 = arith.constant 0 : index
    %20 = vector.load %arg8[%c0_13, %c0_14] : memref<1x64xf32, #tpu.memory_space<vmem>>, vector<1x64xf32>
    %21 = vector.broadcast %20 : vector<1x64xf32> to vector<128x64xf32>
    %22 = arith.addf %19, %21 : vector<128x64xf32>
    %23 = vector.extract_strided_slice %22 {offsets = [0, 0], sizes = [128, 32], strides = [1, 1]} : vector<128x64xf32> to vector<128x32xf32>
    %24 = vector.extract_strided_slice %22 {offsets = [0, 32], sizes = [128, 32], strides = [1, 1]} : vector<128x64xf32> to vector<128x32xf32>
    %25 = vector.shape_cast %23 : vector<128x32xf32> to vector<1x128x32xf32>
    %c0_15 = arith.constant 0 : index
    %c0_16 = arith.constant 0 : index
    %c0_17 = arith.constant 0 : index
    %26 = vector.load %arg5[%c0_15, %c0_16, %c0_17] : memref<4x1x32xf32, #tpu.memory_space<vmem>>, vector<4x1x32xf32>
    %27 = vector.broadcast %25 : vector<1x128x32xf32> to vector<4x128x32xf32>
    %28 = vector.broadcast %26 : vector<4x1x32xf32> to vector<4x128x32xf32>
    %29 = arith.mulf %27, %28 : vector<4x128x32xf32>
    %30 = vector.shape_cast %29 : vector<4x128x32xf32> to vector<512x32xf32>
    %cst_18 = arith.constant dense<0.000000e+00> : vector<512x128xf32>
    %31 = tpu.matmul %30, %24, %cst_18 {dimension_numbers = #tpu.dot_dimension_numbers<[1], [1], [0], [0], [0, 0, 1, 0], [], []>} : vector<512x32xf32>, vector<128x32xf32>, vector<512x128xf32> -> vector<512x128xf32>
    %32 = vector.shape_cast %31 : vector<512x128xf32> to vector<4x128x128xf32>
    %c0_19 = arith.constant 0 : index
    %c0_20 = arith.constant 0 : index
    %33 = vector.load %arg3[%c0_19, %c0_20] : memref<128x1xf32, #tpu.memory_space<vmem>>, vector<128x1xf32>
    %c0_21 = arith.constant 0 : index
    %c0_22 = arith.constant 0 : index
    %34 = vector.load %arg4[%c0_21, %c0_22] : memref<1x128xf32, #tpu.memory_space<vmem>>, vector<1x128xf32>
    %35 = vector.broadcast %33 : vector<128x1xf32> to vector<128x128xf32>
    %36 = vector.broadcast %34 : vector<1x128xf32> to vector<128x128xf32>
    %37 = arith.cmpf oeq, %35, %36 : vector<128x128xf32>
    %38 = arith.extui %37 : vector<128x128xi1> to vector<128x128xi32>
    %39 = arith.sitofp %38 : vector<128x128xi32> to vector<128x128xf32>
    %cst_23 = arith.constant dense<0xFF800000> : vector<4x128xf32>
    %40 = vector.multi_reduction <maximumf>, %32, %cst_23 [2] : vector<4x128x128xf32> to vector<4x128xf32>
    %41 = vector.shape_cast %40 : vector<4x128xf32> to vector<4x128x1xf32>
    %42 = vector.broadcast %41 : vector<4x128x1xf32> to vector<4x128x128xf32>
    %43 = arith.subf %32, %42 : vector<4x128x128xf32>
    %44 = math.exp %43 : vector<4x128x128xf32>
    %45 = vector.shape_cast %39 : vector<128x128xf32> to vector<1x128x128xf32>
    %46 = vector.broadcast %45 : vector<1x128x128xf32> to vector<4x128x128xf32>
    %47 = arith.mulf %44, %46 : vector<4x128x128xf32>
    %cst_24 = arith.constant dense<0.000000e+00> : vector<4x128xf32>
    %48 = vector.multi_reduction <add>, %47, %cst_24 [2] : vector<4x128x128xf32> to vector<4x128xf32>
    %49 = vector.shape_cast %48 : vector<4x128xf32> to vector<4x128x1xf32>
    %50 = tpu.reciprocal %49 {approx = true} : vector<4x128x1xf32> -> vector<4x128x1xf32>
    %51 = vector.broadcast %50 : vector<4x128x1xf32> to vector<4x128x128xf32>
    %52 = arith.mulf %47, %51 : vector<4x128x128xf32>
    %c0_25 = arith.constant 0 : index
    %c0_26 = arith.constant 0 : index
    %53 = vector.load %arg9[%c0_25, %c0_26] : memref<32x128xf32, #tpu.memory_space<vmem>>, vector<32x128xf32>
    %cst_27 = arith.constant dense<0.000000e+00> : vector<128x128xf32>
    %54 = tpu.matmul %17, %53, %cst_27 {dimension_numbers = #tpu.dot_dimension_numbers<[1], [0], [0], [1], [0, 0, 1, 1], [], []>} : vector<128x32xf32>, vector<32x128xf32>, vector<128x128xf32> -> vector<128x128xf32>
    %c0_28 = arith.constant 0 : index
    %c0_29 = arith.constant 0 : index
    %55 = vector.load %arg10[%c0_28, %c0_29] : memref<1x128xf32, #tpu.memory_space<vmem>>, vector<1x128xf32>
    %56 = vector.broadcast %55 : vector<1x128xf32> to vector<128x128xf32>
    %57 = arith.addf %54, %56 : vector<128x128xf32>
    %58 = vector.extract_strided_slice %52 {offsets = [0, 0, 0], sizes = [1, 128, 128], strides = [1, 1, 1]} : vector<4x128x128xf32> to vector<1x128x128xf32>
    %59 = vector.shape_cast %58 : vector<1x128x128xf32> to vector<128x128xf32>
    %60 = vector.extract_strided_slice %57 {offsets = [0, 0], sizes = [128, 32], strides = [1, 1]} : vector<128x128xf32> to vector<128x32xf32>
    %cst_30 = arith.constant dense<0.000000e+00> : vector<128x32xf32>
    %61 = tpu.matmul %59, %60, %cst_30 {dimension_numbers = #tpu.dot_dimension_numbers<[1], [0], [0], [1], [0, 0, 1, 1], [], []>} : vector<128x128xf32>, vector<128x32xf32>, vector<128x32xf32> -> vector<128x32xf32>
    %62 = vector.extract_strided_slice %52 {offsets = [1, 0, 0], sizes = [1, 128, 128], strides = [1, 1, 1]} : vector<4x128x128xf32> to vector<1x128x128xf32>
    %63 = vector.shape_cast %62 : vector<1x128x128xf32> to vector<128x128xf32>
    %64 = vector.extract_strided_slice %57 {offsets = [0, 32], sizes = [128, 32], strides = [1, 1]} : vector<128x128xf32> to vector<128x32xf32>
    %cst_31 = arith.constant dense<0.000000e+00> : vector<128x32xf32>
    %65 = tpu.matmul %63, %64, %cst_31 {dimension_numbers = #tpu.dot_dimension_numbers<[1], [0], [0], [1], [0, 0, 1, 1], [], []>} : vector<128x128xf32>, vector<128x32xf32>, vector<128x32xf32> -> vector<128x32xf32>
    %66 = arith.addf %61, %65 : vector<128x32xf32>
    %67 = vector.extract_strided_slice %52 {offsets = [2, 0, 0], sizes = [1, 128, 128], strides = [1, 1, 1]} : vector<4x128x128xf32> to vector<1x128x128xf32>
    %68 = vector.shape_cast %67 : vector<1x128x128xf32> to vector<128x128xf32>
    %69 = vector.extract_strided_slice %57 {offsets = [0, 64], sizes = [128, 32], strides = [1, 1]} : vector<128x128xf32> to vector<128x32xf32>
    %cst_32 = arith.constant dense<0.000000e+00> : vector<128x32xf32>
    %70 = tpu.matmul %68, %69, %cst_32 {dimension_numbers = #tpu.dot_dimension_numbers<[1], [0], [0], [1], [0, 0, 1, 1], [], []>} : vector<128x128xf32>, vector<128x32xf32>, vector<128x32xf32> -> vector<128x32xf32>
    %71 = arith.addf %66, %70 : vector<128x32xf32>
    %72 = vector.extract_strided_slice %52 {offsets = [3, 0, 0], sizes = [1, 128, 128], strides = [1, 1, 1]} : vector<4x128x128xf32> to vector<1x128x128xf32>
    %73 = vector.shape_cast %72 : vector<1x128x128xf32> to vector<128x128xf32>
    %74 = vector.extract_strided_slice %57 {offsets = [0, 96], sizes = [128, 32], strides = [1, 1]} : vector<128x128xf32> to vector<128x32xf32>
    %cst_33 = arith.constant dense<0.000000e+00> : vector<128x32xf32>
    %75 = tpu.matmul %73, %74, %cst_33 {dimension_numbers = #tpu.dot_dimension_numbers<[1], [0], [0], [1], [0, 0, 1, 1], [], []>} : vector<128x128xf32>, vector<128x32xf32>, vector<128x32xf32> -> vector<128x32xf32>
    %76 = arith.addf %71, %75 : vector<128x32xf32>
    %77 = arith.addf %4, %76 : vector<128x32xf32>
    %c0_34 = arith.constant 0 : index
    %c0_35 = arith.constant 0 : index
    %78 = vector.load %arg11[%c0_34, %c0_35] : memref<1x32xf32, #tpu.memory_space<vmem>>, vector<1x32xf32>
    %79 = vector.broadcast %78 : vector<1x32xf32> to vector<128x32xf32>
    %80 = arith.addf %77, %79 : vector<128x32xf32>
    %c0_36 = arith.constant 0 : index
    %c0_37 = arith.constant 0 : index
    %81 = vector.load %arg13[%c0_36, %c0_37] : memref<1x32xf32, #tpu.memory_space<vmem>>, vector<1x32xf32>
    %82 = arith.mulf %80, %80 : vector<128x32xf32>
    %cst_38 = arith.constant dense<0.000000e+00> : vector<128xf32>
    %83 = vector.multi_reduction <add>, %82, %cst_38 [1] : vector<128x32xf32> to vector<128xf32>
    %84 = vector.shape_cast %83 : vector<128xf32> to vector<128x1xf32>
    %cst_39 = arith.constant 3.200000e+01 : f32
    %85 = vector.broadcast %cst_39 : f32 to vector<128x1xf32>
    %86 = arith.divf %84, %85 : vector<128x1xf32>
    %cst_40 = arith.constant 1.1920929E-7 : f32
    %87 = vector.broadcast %cst_40 : f32 to vector<128x1xf32>
    %88 = arith.addf %86, %87 : vector<128x1xf32>
    %89 = math.rsqrt %88 : vector<128x1xf32>
    %90 = vector.broadcast %89 : vector<128x1xf32> to vector<128x32xf32>
    %91 = arith.mulf %80, %90 : vector<128x32xf32>
    %92 = vector.broadcast %81 : vector<1x32xf32> to vector<128x32xf32>
    %93 = arith.mulf %91, %92 : vector<128x32xf32>
    %c0_41 = arith.constant 0 : index
    %c0_42 = arith.constant 0 : index
    %94 = vector.load %arg15[%c0_41, %c0_42] : memref<32x128xf32, #tpu.memory_space<vmem>>, vector<32x128xf32>
    %cst_43 = arith.constant dense<0.000000e+00> : vector<128x128xf32>
    %95 = tpu.matmul %93, %94, %cst_43 {dimension_numbers = #tpu.dot_dimension_numbers<[1], [0], [0], [1], [0, 0, 1, 1], [], []>} : vector<128x32xf32>, vector<32x128xf32>, vector<128x128xf32> -> vector<128x128xf32>
    %c0_44 = arith.constant 0 : index
    %c0_45 = arith.constant 0 : index
    %96 = vector.load %arg16[%c0_44, %c0_45] : memref<1x128xf32, #tpu.memory_space<vmem>>, vector<1x128xf32>
    %97 = vector.broadcast %96 : vector<1x128xf32> to vector<128x128xf32>
    %98 = arith.addf %95, %97 : vector<128x128xf32>
    %99 = arith.mulf %98, %98 : vector<128x128xf32>
    %100 = arith.mulf %98, %99 : vector<128x128xf32>
    %cst_46 = arith.constant 4.471500e-02 : f32
    %101 = vector.broadcast %cst_46 : f32 to vector<128x128xf32>
    %102 = arith.mulf %101, %100 : vector<128x128xf32>
    %103 = arith.addf %98, %102 : vector<128x128xf32>
    %cst_47 = arith.constant 0.797884583 : f32
    %104 = vector.broadcast %cst_47 : f32 to vector<128x128xf32>
    %105 = arith.mulf %104, %103 : vector<128x128xf32>
    %106 = math.tanh %105 : vector<128x128xf32>
    %cst_48 = arith.constant 1.000000e+00 : f32
    %107 = vector.broadcast %cst_48 : f32 to vector<128x128xf32>
    %108 = arith.addf %107, %106 : vector<128x128xf32>
    %cst_49 = arith.constant 5.000000e-01 : f32
    %109 = vector.broadcast %cst_49 : f32 to vector<128x128xf32>
    %110 = arith.mulf %109, %108 : vector<128x128xf32>
    %111 = arith.mulf %98, %110 : vector<128x128xf32>
    %c0_50 = arith.constant 0 : index
    %c0_51 = arith.constant 0 : index
    %112 = vector.load %arg17[%c0_50, %c0_51] : memref<128x32xf32, #tpu.memory_space<vmem>>, vector<128x32xf32>
    %cst_52 = arith.constant dense<0.000000e+00> : vector<128x32xf32>
    %113 = tpu.matmul %111, %112, %cst_52 {dimension_numbers = #tpu.dot_dimension_numbers<[1], [0], [0], [1], [0, 0, 1, 1], [], []>} : vector<128x128xf32>, vector<128x32xf32>, vector<128x32xf32> -> vector<128x32xf32>
    %c0_53 = arith.constant 0 : index
    %c0_54 = arith.constant 0 : index
    %114 = vector.load %arg18[%c0_53, %c0_54] : memref<1x32xf32, #tpu.memory_space<vmem>>, vector<1x32xf32>
    %115 = vector.broadcast %114 : vector<1x32xf32> to vector<128x32xf32>
    %116 = arith.addf %113, %115 : vector<128x32xf32>
    %117 = arith.addf %80, %116 : vector<128x32xf32>
    %118 = vector.extract_strided_slice %117 {offsets = [80, 0], sizes = [48, 32], strides = [1, 1]} : vector<128x32xf32> to vector<48x32xf32>
    %c0_55 = arith.constant 0 : index
    %c0_56 = arith.constant 0 : index
    %119 = vector.load %arg14[%c0_55, %c0_56] : memref<1x32xf32, #tpu.memory_space<vmem>>, vector<1x32xf32>
    %120 = arith.mulf %118, %118 : vector<48x32xf32>
    %cst_57 = arith.constant dense<0.000000e+00> : vector<48xf32>
    %121 = vector.multi_reduction <add>, %120, %cst_57 [1] : vector<48x32xf32> to vector<48xf32>
    %122 = vector.shape_cast %121 : vector<48xf32> to vector<48x1xf32>
    %cst_58 = arith.constant 3.200000e+01 : f32
    %123 = vector.broadcast %cst_58 : f32 to vector<48x1xf32>
    %124 = arith.divf %122, %123 : vector<48x1xf32>
    %cst_59 = arith.constant 1.1920929E-7 : f32
    %125 = vector.broadcast %cst_59 : f32 to vector<48x1xf32>
    %126 = arith.addf %124, %125 : vector<48x1xf32>
    %127 = math.rsqrt %126 : vector<48x1xf32>
    %128 = vector.broadcast %127 : vector<48x1xf32> to vector<48x32xf32>
    %129 = arith.mulf %118, %128 : vector<48x32xf32>
    %130 = vector.broadcast %119 : vector<1x32xf32> to vector<48x32xf32>
    %131 = arith.mulf %129, %130 : vector<48x32xf32>
    %c0_60 = arith.constant 0 : index
    %c0_61 = arith.constant 0 : index
    %132 = vector.load %arg19[%c0_60, %c0_61] : memref<32x128xf32, #tpu.memory_space<vmem>>, vector<32x128xf32>
    %cst_62 = arith.constant dense<0.000000e+00> : vector<48x128xf32>
    %133 = tpu.matmul %131, %132, %cst_62 {dimension_numbers = #tpu.dot_dimension_numbers<[1], [0], [0], [1], [0, 0, 1, 1], [], []>} : vector<48x32xf32>, vector<32x128xf32>, vector<48x128xf32> -> vector<48x128xf32>
    %c0_63 = arith.constant 0 : index
    %c0_64 = arith.constant 0 : index
    %134 = vector.load %arg20[%c0_63, %c0_64] : memref<1x128xf32, #tpu.memory_space<vmem>>, vector<1x128xf32>
    %135 = vector.broadcast %134 : vector<1x128xf32> to vector<48x128xf32>
    %136 = arith.addf %133, %135 : vector<48x128xf32>
    %c0_65 = arith.constant 0 : index
    %c0_66 = arith.constant 0 : index
    %137 = vector.load %arg21[%c0_65, %c0_66] : memref<48x128xf32, #tpu.memory_space<vmem>>, vector<48x128xf32>
    tpu.vector_store %arg21[%c0_65, %c0_66], %136 {strides = array<i32>} : memref<48x128xf32, #tpu.memory_space<vmem>>, vector<48x128xf32>,
    return
  }
  func.func @transform_0(%arg0: i32) -> (i32, i32) {
    %c0_i32 = arith.constant 0 : i32
    %c0_i32_0 = arith.constant 0 : i32
    %c0_i32_1 = arith.constant 0 : i32
    return %c0_i32, %c0_i32_0 : i32, i32
  }
  func.func @transform_1(%arg0: i32) -> (i32, i32) {
    %c0_i32 = arith.constant 0 : i32
    %c0_i32_0 = arith.constant 0 : i32
    %c0_i32_1 = arith.constant 0 : i32
    return %c0_i32, %c0_i32_0 : i32, i32
  }
  func.func @transform_2(%arg0: i32) -> (i32, i32) {
    %c0_i32 = arith.constant 0 : i32
    %c0_i32_0 = arith.constant 0 : i32
    %c0_i32_1 = arith.constant 0 : i32
    return %c0_i32, %c0_i32_0 : i32, i32
  }
  func.func @transform_3(%arg0: i32) -> (i32, i32) {
    %c0_i32 = arith.constant 0 : i32
    %c0_i32_0 = arith.constant 0 : i32
    %c0_i32_1 = arith.constant 0 : i32
    return %c0_i32, %c0_i32_0 : i32, i32
  }
  func.func @transform_4(%arg0: i32) -> (i32, i32, i32) {
    %c0_i32 = arith.constant 0 : i32
    %c0_i32_0 = arith.constant 0 : i32
    %c0_i32_1 = arith.constant 0 : i32
    %c0_i32_2 = arith.constant 0 : i32
    return %c0_i32, %c0_i32_0, %c0_i32_1 : i32, i32, i32
  }
  func.func @transform_5(%arg0: i32) -> (i32, i32) {
    %c0_i32 = arith.constant 0 : i32
    %c0_i32_0 = arith.constant 0 : i32
    %c0_i32_1 = arith.constant 0 : i32
    return %c0_i32, %c0_i32_0 : i32, i32
  }
  func.func @transform_6(%arg0: i32) -> (i32, i32) {
    %c0_i32 = arith.constant 0 : i32
    %c0_i32_0 = arith.constant 0 : i32
    %c0_i32_1 = arith.constant 0 : i32
    return %c0_i32, %c0_i32_0 : i32, i32
  }
  func.func @transform_7(%arg0: i32) -> (i32, i32) {
    %c0_i32 = arith.constant 0 : i32
    %c0_i32_0 = arith.constant 0 : i32
    %c0_i32_1 = arith.constant 0 : i32
    return %c0_i32, %c0_i32_0 : i32, i32
  }
  func.func @transform_8(%arg0: i32) -> (i32, i32) {
    %c0_i32 = arith.constant 0 : i32
    %c0_i32_0 = arith.constant 0 : i32
    %c0_i32_1 = arith.constant 0 : i32
    return %c0_i32, %c0_i32_0 : i32, i32
  }
  func.func @transform_9(%arg0: i32) -> (i32, i32) {
    %c0_i32 = arith.constant 0 : i32
    %c0_i32_0 = arith.constant 0 : i32
    %c0_i32_1 = arith.constant 0 : i32
    return %c0_i32, %c0_i32_0 : i32, i32
  }
  func.func @transform_10(%arg0: i32) -> (i32, i32) {
    %c0_i32 = arith.constant 0 : i32
    %c0_i32_0 = arith.constant 0 : i32
    %c0_i32_1 = arith.constant 0 : i32
    return %c0_i32, %c0_i32_0 : i32, i32
  }
  func.func @transform_11(%arg0: i32) -> (i32, i32) {
    %c0_i32 = arith.constant 0 : i32
    %c0_i32_0 = arith.constant 0 : i32
    %c0_i32_1 = arith.constant 0 : i32
    return %c0_i32, %c0_i32_0 : i32, i32
  }
  func.func @transform_12(%arg0: i32) -> (i32, i32) {
    %c0_i32 = arith.constant 0 : i32
    %c0_i32_0 = arith.constant 0 : i32
    %c0_i32_1 = arith.constant 0 : i32
    return %c0_i32, %c0_i32_0 : i32, i32
  }
  func.func @transform_13(%arg0: i32) -> (i32, i32) {
    %c0_i32 = arith.constant 0 : i32
    %c0_i32_0 = arith.constant 0 : i32
    %c0_i32_1 = arith.constant 0 : i32
    return %c0_i32, %c0_i32_0 : i32, i32
  }
  func.func @transform_14(%arg0: i32) -> (i32, i32) {
    %c0_i32 = arith.constant 0 : i32
    %c0_i32_0 = arith.constant 0 : i32
    %c0_i32_1 = arith.constant 0 : i32
    return %c0_i32, %c0_i32_0 : i32, i32
  }
  func.func @transform_15(%arg0: i32) -> (i32, i32) {
    %c0_i32 = arith.constant 0 : i32
    %c0_i32_0 = arith.constant 0 : i32
    %c0_i32_1 = arith.constant 0 : i32
    return %c0_i32, %c0_i32_0 : i32, i32
  }
  func.func @transform_16(%arg0: i32) -> (i32, i32) {
    %c0_i32 = arith.constant 0 : i32
    %c0_i32_0 = arith.constant 0 : i32
    %c0_i32_1 = arith.constant 0 : i32
    return %c0_i32, %c0_i32_0 : i32, i32
  }
  func.func @transform_17(%arg0: i32) -> (i32, i32) {
    %c0_i32 = arith.constant 0 : i32
    %c0_i32_0 = arith.constant 0 : i32
    %c0_i32_1 = arith.constant 0 : i32
    return %c0_i32, %c0_i32_0 : i32, i32
  }
  func.func @transform_18(%arg0: i32) -> (i32, i32) {
    %c0_i32 = arith.constant 0 : i32
    %c0_i32_0 = arith.constant 0 : i32
    %c0_i32_1 = arith.constant 0 : i32
    return %c0_i32, %c0_i32_0 : i32, i32
  }
  func.func @transform_19(%arg0: i32) -> (i32, i32) {
    %c0_i32 = arith.constant 0 : i32
    %c0_i32_0 = arith.constant 0 : i32
    %c0_i32_1 = arith.constant 0 : i32
    return %c0_i32, %c0_i32_0 : i32, i32
  }
  func.func @transform_20(%arg0: i32) -> (i32, i32) {
    %c0_i32 = arith.constant 0 : i32
    %c0_i32_0 = arith.constant 0 : i32
    %c0_i32_1 = arith.constant 0 : i32
    return %c0_i32, %c0_i32_0 : i32, i32
  }
}

</mosaic_0001>

<bundles_post_ra>
// kernel: tpu_custom_call.1
= control target key start
LH: loop header
LB: loop body
LE: loop exit
PB: predicated region body
PF: predicated region fallthrough
CT: control target
= control target key end

     0   :  { %s6331_s0 = inlined_call_operand.vmem [shape: f32[128,16], index: 0, kind: input, shape index: {}]   ;;  %s6332_s1 = inlined_call_operand.vmem [shape: f32[128,32], index: 1, kind: input, shape index: {}]   ;;  %s6333_s2 = inlined_call_operand.vmem [shape: f32[128,1], index: 2, kind: input, shape index: {}]   ;;  %s6334_s3 = inlined_call_operand.vmem [shape: f32[1,128], index: 3, kind: input, shape index: {}]   ;;  %s6335_s4 = inlined_call_operand.vmem [shape: f32[4,1,32], index: 4, kind: input, shape index: {}]   ;;  %s6336_s5 = inlined_call_operand.vmem [shape: f32[16,32], index: 5, kind: input, shape index: {}]   ;;  %s6337_s6 = inlined_call_operand.vmem [shape: f32[32,64], index: 6, kind: input, shape index: {}]   ;;  %s6338_s7 = inlined_call_operand.vmem [shape: f32[1,64], index: 7, kind: input, shape index: {}]   ;;  %s6339_s8 = inlined_call_operand.vmem [shape: f32[32,128], index: 8, kind: input, shape index: {}]   ;;  %s6340_s9 = inlined_call_operand.vmem [shape: f32[1,128], index: 9, kind: input, shape index: {}]   ;;  %s6341_s10 = inlined_call_operand.vmem [shape: f32[1,32], index: 10, kind: input, shape index: {}]   ;;  %s6342_s11 = inlined_call_operand.vmem [shape: f32[1,32], index: 11, kind: input, shape index: {}]   ;;  %s6343_s12 = inlined_call_operand.vmem [shape: f32[1,32], index: 12, kind: input, shape index: {}]   ;;  %s6344_s13 = inlined_call_operand.vmem [shape: f32[1,32], index: 13, kind: input, shape index: {}]   ;;  %s6345_s14 = inlined_call_operand.vmem [shape: f32[32,128], index: 14, kind: input, shape index: {}]   ;;  %s6346_s15 = inlined_call_operand.vmem [shape: f32[1,128], index: 15, kind: input, shape index: {}]   ;;  %s6347_s16 = inlined_call_operand.vmem [shape: f32[128,32], index: 16, kind: input, shape index: {}]   ;;  %s6348_s17 = inlined_call_operand.vmem [shape: f32[1,32], index: 17, kind: input, shape index: {}]   ;;  %s6349_s18 = inlined_call_operand.vmem [shape: f32[32,128], index: 18, kind: input, shape index: {}]   ;;  %s6350_s19 = inlined_call_operand.vmem [shape: f32[1,128], index: 19, kind: input, shape index: {}]   ;;  %s6351_s20 = inlined_call_operand.hbm [shape: f32[48,128], index: 20, kind: output, shape index: {}]  }
   0x1   :  { %6411 = sst [smem:[#allocation46_spill]] %s6331_s0 }
   0x2   :  { %6412 = sst [smem:[#allocation47_spill]] %s6332_s1 }
   0x3   :  { %6413 = sst [smem:[#allocation48_spill]] %s6333_s2 }
   0x4   :  { %6414 = sst [smem:[#allocation49_spill]] %s6334_s3 }
   0x5   :  { %6415 = sst [smem:[#allocation50_spill]] %s6335_s4 }
   0x6   :  { %v83_v0 = vld [vmem:[%s6336_s5 + $0x8] sm:$0xff]  ;;  %v82_v1 = vld [vmem:[%s6336_s5] sm:$0xff]  ;;  %s6416_s3 = sld [smem:[#allocation46_spill]]  ;;  %vm100_vm0 = vcmask 130048  }
   0x7   :  { %163 = vmatpush.msra.mxu0 %v83_v0 }
   0x9   :  { %164 = vmatpush.msra.mxu0 %v82_v1 }
   0xc   :  { %v66_v2 = vld [vmem:[%s6416_s3] sm:$0xff] }
   0xd   :  { %3380 = vmatmul.msk.f32.vlgmr.msra.gmra.mxu0 %vm100_vm0, %v66_v2 }
   0xe   :  { %25 = vsyncpa [#allocation3], 0  ;;  %v67_v3 = vld [vmem:[%s6416_s3 + $0x8] sm:$0xff]  ;;  %v68_v4 = vld [vmem:[%s6416_s3 + $0x10] sm:$0xff]  ;;  %s6417_s28 = sld [smem:[#allocation47_spill]]  ;;  %vm231_vm1 = vcmask 261120  }
   0xf   :  { %v69_v5 = vld [vmem:[%s6416_s3 + $0x18] sm:$0xff]  ;;  %v70_v6 = vld [vmem:[%s6416_s3 + $0x20] sm:$0xff]  ;;  %v71_v7 = vld [vmem:[%s6416_s3 + $0x28] sm:$0xff]  ;;  %s6439_s5 = sld [smem:[#allocation48_spill]]  ;;  %s4110_s27 = smov [#allocation2]  }
  0x10   :  { %v72_v8 = vld [vmem:[%s6416_s3 + $0x30] sm:$0xff]  ;;  %v73_v9 = vld [vmem:[%s6416_s3 + $0x38] sm:$0xff]  ;;  %v74_v10 = vld [vmem:[%s6416_s3 + $0x40] sm:$0xff]  ;;  %s6445_s29 = sld [smem:[#allocation50_spill]] }
  0x11   :  { %v75_v11 = vld [vmem:[%s6416_s3 + $0x48] sm:$0xff]  ;;  %v76_v12 = vld [vmem:[%s6416_s3 + $0x50] sm:$0xff]  ;;  %v77_v13 = vld [vmem:[%s6416_s3 + $0x58] sm:$0xff] }
  0x12   :  { %v78_v14 = vld [vmem:[%s6416_s3 + $0x60] sm:$0xff]  ;;  %v79_v15 = vld [vmem:[%s6416_s3 + $0x68] sm:$0xff]  ;;  %v80_v16 = vld [vmem:[%s6416_s3 + $0x70] sm:$0xff] }
  0x13   :  { %v81_v17 = vld [vmem:[%s6416_s3 + $0x78] sm:$0xff]  ;;  %s4105_s3 = smov 96  }
  0x14   :  { %v92_v26 = vld [vmem:[%s6417_s28 + $0x40] sm:$0xff]  ;;  %v93_v31 = vld [vmem:[%s6417_s28 + $0x48] sm:$0xff]  ;;  %v94_v36 = vld [vmem:[%s6417_s28 + $0x50] sm:$0xff] }
  0x15   :  { %3381 = vmatmul.msk.f32.gmra.mxu0 %vm100_vm0, %v67_v3  ;;  %v95_v41 = vld [vmem:[%s6417_s28 + $0x58] sm:$0xff]  ;;  %v85_v44 = vld [vmem:[%s6417_s28 + $0x8] sm:$0xff]  ;;  %v96_v48 = vld [vmem:[%s6417_s28 + $0x60] sm:$0xff] }
  0x16   :  { %v84_v52 = vld [vmem:[%s6417_s28] sm:$0xff]  ;;  %v97_v57 = vld [vmem:[%s6417_s28 + $0x68] sm:$0xff]  ;;  %v86_v61 = vld [vmem:[%s6417_s28 + $0x10] sm:$0xff] }
  0x17   :  { %v98_v2 = vld [vmem:[%s6417_s28 + $0x70] sm:$0xff] }
  0x1d   :  { %3382 = vmatmul.msk.f32.gmra.mxu0 %vm100_vm0, %v68_v4 }
  0x25   :  { %3383 = vmatmul.msk.f32.gmra.mxu0 %vm100_vm0, %v69_v5 }
  0x2d   :  { %3384 = vmatmul.msk.f32.gmra.mxu0 %vm100_vm0, %v70_v6  ;;  %v88_v6 = vld [vmem:[%s6417_s28 + $0x20] sm:$0xff] }
  0x35   :  { %3385 = vmatmul.msk.f32.gmra.mxu0 %vm100_vm0, %v71_v7  ;;  %v87_v7 = vld [vmem:[%s6417_s28 + $0x18] sm:$0xff] }
  0x3d   :  { %3386 = vmatmul.msk.f32.gmra.mxu0 %vm100_vm0, %v72_v8 }
  0x45   :  { %3387 = vmatmul.msk.f32.gmra.mxu0 %vm100_vm0, %v73_v9 }
  0x4d   :  { %3388 = vmatmul.msk.f32.gmra.mxu0 %vm100_vm0, %v74_v10 }
  0x55   :  { %3389 = vmatmul.msk.f32.gmra.mxu0 %vm100_vm0, %v75_v11 }
  0x5d   :  { %3390 = vmatmul.msk.f32.gmra.mxu0 %vm100_vm0, %v76_v12 }
  0x65   :  { %3391 = vmatmul.msk.f32.gmra.mxu0 %vm100_vm0, %v77_v13  ;;  %v99_v13 = vld [vmem:[%s6417_s28 + $0x78] sm:$0xff] }
  0x6d   :  { %3392 = vmatmul.msk.f32.gmra.mxu0 %vm100_vm0, %v78_v14 }
  0x75   :  { %3393 = vmatmul.msk.f32.gmra.mxu0 %vm100_vm0, %v79_v15 }
  0x7d   :  { %3394 = vmatmul.msk.f32.gmra.mxu0 %vm100_vm0, %v80_v16 }
  0x85   :  { %3395 = vmatmul.msk.f32.gmra.mxu0 %vm100_vm0, %v81_v17  ;;  %v89_v17 = vld [vmem:[%s6417_s28 + $0x28] sm:$0xff] }
  0x8a   :  { %v166_v18 = vpop.f32.mrf.mxu0 }
  0x8b   :  { %v4345_v54 = vadd.f32 %v166_v18, %v84_v52  ;;  %v91_v18 = vld [vmem:[%s6417_s28 + $0x38] sm:$0xff] }
  0x8d   :  { %6424 = vst [vmem:[#allocation11_spill] sm:$0xff] %v4345_v54  ;;  %v215_v60 = vmul.f32 %v4345_v54, %v4345_v54 }
  0x8f   :  { %v232_v1 = vsel %vm231_vm1, %v215_v60, 0.0 }
  0x92   :  { %v169_v19 = vpop.f32.mrf.mxu0 }
  0x93   :  { %v4330_v46 = vadd.f32 %v169_v19, %v85_v44  ;;  %v516_v44 = vld [vmem:[%s6337_s6 + $0x10] sm:$0xff] }
  0x95   :  { %6422 = vst [vmem:[#allocation9_spill] sm:$0xff] %v4330_v46  ;;  %v216_v51 = vmul.f32 %v4330_v46, %v4330_v46 }
  0x97   :  { %v235_v56 = vsel %vm231_vm1, %v216_v51, 0.0 }
  0x9a   :  { %v172_v20 = vpop.f32.mrf.mxu0 }
  0x9b   :  { %v4361_v63 = vadd.f32 %v172_v20, %v86_v61  ;;  %v90_v20 = vld [vmem:[%s6417_s28 + $0x30] sm:$0xff] }
  0x9d   :  { %6426 = vst [vmem:[#allocation13_spill] sm:$0xff] %v4361_v63  ;;  %v217_v5 = vmul.f32 %v4361_v63, %v4361_v63 }
  0x9f   :  { %v238_v10 = vsel %vm231_vm1, %v217_v5, 0.0 }
  0xa2   :  { %v4288_v21 = vpop.f32.mrf.mxu0 }
  0xa3   :  { %v4385_v12 = vadd.f32 %v4288_v21, %v87_v7 }
  0xa5   :  { %6429 = vst [vmem:[#allocation16_spill] sm:$0xff] %v4385_v12  ;;  %v218_v19 = vmul.f32 %v4385_v12, %v4385_v12 }
  0xaa   :  { %v178_v22 = vpop.f32.mrf.mxu0 }
  0xab   :  { %v4380_v9 = vadd.f32 %v178_v22, %v88_v6 }
  0xad   :  { %6428 = vst [vmem:[#allocation15_spill] sm:$0xff] %v4380_v9  ;;  %v219_v16 = vmul.f32 %v4380_v9, %v4380_v9 }
  0xb2   :  { %v4290_v23 = vpop.f32.mrf.mxu0 }
  0xb3   :  { %v4408_v22 = vadd.f32 %v4290_v23, %v89_v17 }
  0xb5   :  { %6431 = vst [vmem:[#allocation18_spill] sm:$0xff] %v4408_v22  ;;  %v220_v23 = vmul.f32 %v4408_v22, %v4408_v22 }
  0xba   :  { %v4292_v24 = vpop.f32.mrf.mxu0 }
  0xc2   :  { %v4294_v25 = vpop.f32.mrf.mxu0 }
  0xca   :  { %v190_v27 = vpop.f32.mrf.mxu0 }
  0xcb   :  { %v4299_v28 = vadd.f32 %v190_v27, %v92_v26  ;;  %v4411_v26 = vadd.f32 %v4294_v25, %v91_v18  ;;  %v244_v27 = vsel %vm231_vm1, %v219_v16, 0.0 }
  0xcd   :  { %6418 = vst [vmem:[#allocation5_spill] sm:$0xff] %v4299_v28  ;;  %v223_v29 = vmul.f32 %v4299_v28, %v4299_v28 }
  0xce   :  { %6432 = vst [vmem:[#allocation19_spill] sm:$0xff] %v4411_v26 }
  0xcf   :  { %v256_v30 = vsel %vm231_vm1, %v223_v29, 0.0 }
  0xd0   :  { %257 = vadd.xlane.f32.xlu0 %v256_v30  ;;  %v4416_v30 = vadd.f32 %v4292_v24, %v90_v20 }
  0xd2   :  { %v193_v32 = vpop.f32.mrf.mxu0  ;;  %6433 = vst [vmem:[#allocation20_spill] sm:$0xff] %v4416_v30  ;;  %v221_v25 = vmul.f32 %v4416_v30, %v4416_v30 }
  0xd3   :  { %v4307_v33 = vadd.f32 %v193_v32, %v93_v31  ;;  %v241_v31 = vsel %vm231_vm1, %v218_v19, 0.0  ;;  %v222_v32 = vmul.f32 %v4411_v26, %v4411_v26 }
  0xd4   :  { %v250_v24 = vsel %vm231_vm1, %v221_v25, 0.0 }
  0xd5   :  { %6419 = vst [vmem:[#allocation6_spill] sm:$0xff] %v4307_v33  ;;  %v224_v34 = vmul.f32 %v4307_v33, %v4307_v33 }
  0xd7   :  { %v259_v35 = vsel %vm231_vm1, %v224_v34, 0.0  ;;  %v253_v34 = vsel %vm231_vm1, %v222_v32, 0.0 }
  0xd8   :  { %260 = vadd.xlane.f32.xlu0 %v259_v35  ;;  %v247_v35 = vsel %vm231_vm1, %v220_v23, 0.0 }
  0xda   :  { %v196_v37 = vpop.f32.mrf.mxu0 }
  0xdb   :  { %v4315_v38 = vadd.f32 %v196_v37, %v94_v36  ;;  %v4104_v36 = vmov 32.0  }
  0xdc   :  { %3712 = vrcp.f32 %v4104_v36 }
  0xdd   :  { %6420 = vst [vmem:[#allocation7_spill] sm:$0xff] %v4315_v38  ;;  %v225_v39 = vmul.f32 %v4315_v38, %v4315_v38 }
  0xdf   :  { %v262_v40 = vsel %vm231_vm1, %v225_v39, 0.0 }
  0xe0   :  { %263 = vadd.xlane.f32.xlu1 %v262_v40 }
  0xe2   :  { %v199_v42 = vpop.f32.mrf.mxu0  ;;  %v3713_v37 = vpop.eup %3712 }
  0xe3   :  { %v4323_v43 = vadd.f32 %v199_v42, %v95_v41  ;;  %v281_v39 = vmul.f32 32.0, %v3713_v37  ;;  %v517_v41 = vld [vmem:[%s6337_s6 + $0x18] sm:$0xff]  ;;  %vm285_vm2 = vweird.f32 %v3713_v37 }
  0xe4   :  { %3546 = vmatpush.msra.mxu3 %v517_v41  ;;  %582 = vmatpush.msra.mxu1 %v517_v41 }
  0xe5   :  { %6421 = vst [vmem:[#allocation8_spill] sm:$0xff] %v4323_v43  ;;  %v226_v45 = vmul.f32 %v4323_v43, %v4323_v43  ;;  %v282_v40 = vsub.f32 1.0, %v281_v39 }
  0xe6   :  { %3547 = vmatpush.msra.mxu3 %v516_v44  ;;  %583 = vmatpush.msra.mxu1 %v516_v44 }
  0xe7   :  { %v265_v47 = vsel %vm231_vm1, %v226_v45, 0.0  ;;  %v283_v42 = vmul.f32 %v3713_v37, %v282_v40  ;;  %v515_v45 = vld [vmem:[%s6337_s6 + $0x8] sm:$0xff] }
  0xe8   :  { %266 = vadd.xlane.f32.xlu1 %v265_v47  ;;  %3548 = vmatpush.msra.mxu3 %v515_v45 }
  0xe9   :  { %584 = vmatpush.msra.mxu1 %v515_v45  ;;  %v284_v47 = vadd.f32 %v3713_v37, %v283_v42 }
  0xea   :  { %v202_v49 = vpop.f32.mrf.mxu0 }
  0xeb   :  { %v4336_v50 = vadd.f32 %v202_v49, %v96_v48  ;;  %v514_v48 = vld [vmem:[%s6337_s6] sm:$0xff]  ;;  %v4440_v49 = vsel %vm285_vm2, %v3713_v37, %v284_v47 }
  0xec   :  { %3549 = vmatpush.msra.mxu3 %v514_v48  ;;  %585 = vmatpush.msra.mxu1 %v514_v48  ;;  %6434 = vst [vmem:[#allocation21_spill] sm:$0xff] %v4440_v49 }
  0xed   :  { %6423 = vst [vmem:[#allocation10_spill] sm:$0xff] %v4336_v50  ;;  %v227_v53 = vmul.f32 %v4336_v50, %v4336_v50 }
  0xef   :  { %v268_v55 = vsel %vm231_vm1, %v227_v53, 0.0 }
  0xf0   :  { %269 = vadd.xlane.f32.xlu2 %v268_v55  ;;  %236 = vadd.xlane.f32.xlu1 %v235_v56 }
  0xf2   :  { %v205_v58 = vpop.f32.mrf.mxu0 }
  0xf3   :  { %v4352_v59 = vadd.f32 %v205_v58, %v97_v57 }
  0xf5   :  { %6425 = vst [vmem:[#allocation12_spill] sm:$0xff] %v4352_v59  ;;  %v228_v62 = vmul.f32 %v4352_v59, %v4352_v59 }
  0xf7   :  { %v271_v0 = vsel %vm231_vm1, %v228_v62, 0.0 }
  0xf8   :  { %272 = vadd.xlane.f32.xlu0 %v271_v0  ;;  %233 = vadd.xlane.f32.xlu2 %v232_v1 }
  0xfa   :  { %v208_v3 = vpop.f32.mrf.mxu0 }
  0xfb   :  { %v4368_v4 = vadd.f32 %v208_v3, %v98_v2 }
  0xfd   :  { %6427 = vst [vmem:[#allocation14_spill] sm:$0xff] %v4368_v4  ;;  %v229_v8 = vmul.f32 %v4368_v4, %v4368_v4 }
  0xff   :  { %v274_v11 = vsel %vm231_vm1, %v229_v8, 0.0  ;;  %v4448_v8 = vld [vmem:[%s6342_s11] ss:$0 sm:$0xff] }
 0x100   :  { %239 = vadd.xlane.f32.xlu0 %v238_v10  ;;  %275 = vadd.xlane.f32.xlu2 %v274_v11 }
 0x102   :  { %v211_v14 = vpop.f32.mrf.mxu0 }
 0x103   :  { %v4390_v15 = vadd.f32 %v211_v14, %v99_v13 }
 0x105   :  { %6430 = vst [vmem:[#allocation17_spill] sm:$0xff] %v4390_v15  ;;  %v230_v21 = vmul.f32 %v4390_v15, %v4390_v15 }
 0x107   :  { %v277_v29 = vsel %vm231_vm1, %v230_v21, 0.0 }
 0x108   :  { %245 = vadd.xlane.f32.xlu0 %v244_v27  ;;  %278 = vadd.xlane.f32.xlu1 %v277_v29 }
 0x109   :  { %242 = vadd.xlane.f32.xlu2 %v241_v31 }
 0x110   :  { %254 = vadd.xlane.f32.xlu0 %v253_v34  ;;  %248 = vadd.xlane.f32.xlu1 %v247_v35 }
 0x111   :  { %251 = vadd.xlane.f32.xlu2 %v250_v24 }
 0x143   :  { %v258_v51 = vpop.xlane.xlu0 %257 }
 0x144   :  { %v295_v52 = vmul.f32 %v4440_v49, %v258_v51 }
 0x146   :  { %v311_v53 = vadd.f32 1.1920929e-07, %v295_v52 }
 0x148   :  { %3714 = vrsqrt.f32 %v311_v53  ;;  %vm405_vm4 = vweird.f32 %v311_v53 }
 0x14b   :  { %v261_v55 = vpop.xlane.xlu0 %260 }
 0x14c   :  { %v296_v56 = vmul.f32 %v4440_v49, %v261_v55 }
 0x14e   :  { %v3715_v57 = vpop.eup %3714  ;;  %v312_v58 = vadd.f32 1.1920929e-07, %v296_v56 }
 0x14f   :  { %v400_v60 = vmul.f32 %v3715_v57, %v311_v53  ;;  %vm406_vm3 = vweird.f32 %v3715_v57 }
 0x150   :  { %3716 = vrsqrt.f32 %v312_v58  ;;  %vm407_vm5 = vmor %vm405_vm4, %vm406_vm3  ;;  %vm415_vm7 = vweird.f32 %v312_v58 }
 0x151   :  { %v401_v61 = vmul.f32 %v3715_v57, %v400_v60 }
 0x153   :  { %v402_v62 = vmul.f32 0.5, %v401_v61  ;;  %v264_v0 = vpop.xlane.xlu1 %263 }
 0x154   :  { %v297_v1 = vmul.f32 %v4440_v49, %v264_v0 }
 0x155   :  { %v403_v2 = vsub.f32 1.5, %v402_v62 }
 0x156   :  { %v3717_v3 = vpop.eup %3716  ;;  %v313_v5 = vadd.f32 1.1920929e-07, %v297_v1 }
 0x157   :  { %v410_v6 = vmul.f32 %v3717_v3, %v312_v58  ;;  %v404_v7 = vmul.f32 %v3715_v57, %v403_v2  ;;  %vm416_vm6 = vweird.f32 %v3717_v3 }
 0x158   :  { %3718 = vrsqrt.f32 %v313_v5  ;;  %vm417_vm8 = vmor %vm415_vm7, %vm416_vm6  ;;  %vm425_vm10 = vweird.f32 %v313_v5 }
 0x159   :  { %v411_v10 = vmul.f32 %v3717_v3, %v410_v6  ;;  %v408_v11 = vsel %vm407_vm5, %v3715_v57, %v404_v7 }
 0x15a   :  { %v487_v13 = vmul.f32 %v408_v11, %v4299_v28 }
 0x15b   :  { %v412_v14 = vmul.f32 0.5, %v411_v10  ;;  %v267_v16 = vpop.xlane.xlu1 %266 }
 0x15c   :  { %v298_v17 = vmul.f32 %v4440_v49, %v267_v16  ;;  %v4453_v18 = vmul.f32 %v4448_v8, %v487_v13 }
 0x15d   :  { %v413_v19 = vsub.f32 1.5, %v412_v14 }
 0x15e   :  { %v3719_v20 = vpop.eup %3718  ;;  %v314_v21 = vadd.f32 1.1920929e-07, %v298_v17  ;;  %3404 = vmatmul.msk.f32.vlgmr.msra.gmra.mxu3 %vm231_vm1, %v4453_v18 }
 0x15f   :  { %v420_v27 = vmul.f32 %v3719_v20, %v313_v5  ;;  %v414_v29 = vmul.f32 %v3717_v3, %v413_v19  ;;  %vm426_vm9 = vweird.f32 %v3719_v20 }
 0x160   :  { %3720 = vrsqrt.f32 %v314_v21  ;;  %vm427_vm11 = vmor %vm425_vm10, %vm426_vm9  ;;  %vm435_vm13 = vweird.f32 %v314_v21 }
 0x161   :  { %v421_v31 = vmul.f32 %v3719_v20, %v420_v27  ;;  %v418_v32 = vsel %vm417_vm8, %v3717_v3, %v414_v29 }
 0x162   :  { %v488_v23 = vmul.f32 %v418_v32, %v4307_v33 }
 0x163   :  { %v422_v25 = vmul.f32 0.5, %v421_v31  ;;  %v270_v34 = vpop.xlane.xlu2 %269  ;;  %v237_v35 = vpop.xlane.xlu1 %236 }
 0x164   :  { %v299_v24 = vmul.f32 %v4440_v49, %v270_v34  ;;  %v288_v36 = vmul.f32 %v4440_v49, %v237_v35  ;;  %v4461_v37 = vmul.f32 %v4448_v8, %v488_v23 }
 0x165   :  { %v423_v39 = vsub.f32 1.5, %v422_v25 }
 0x166   :  { %v3721_v40 = vpop.eup %3720  ;;  %v315_v41 = vadd.f32 1.1920929e-07, %v299_v24  ;;  %v4463_v42 = vadd.f32 1.1920929e-07, %v288_v36  ;;  %3405 = vmatmul.msk.f32.gmra.mxu3 %vm231_vm1, %v4461_v37 }
 0x167   :  { %v430_v44 = vmul.f32 %v3721_v40, %v314_v21  ;;  %v424_v45 = vmul.f32 %v3719_v20, %v423_v39  ;;  %vm436_vm12 = vweird.f32 %v3721_v40 }
 0x168   :  { %3722 = vrsqrt.f32 %v315_v41  ;;  %vm437_vm14 = vmor %vm435_vm13, %vm436_vm12  ;;  %vm445_vm0 = vweird.f32 %v315_v41  ;;  %vm335_vm10 = vweird.f32 %v4463_v42 }
 0x169   :  { %v431_v47 = vmul.f32 %v3721_v40, %v430_v44  ;;  %3724 = vrsqrt.f32 %v4463_v42  ;;  %v428_v48 = vsel %vm427_vm11, %v3719_v20, %v424_v45  ;;  %v1986_v44 = vld [vmem:[%s6339_s8 + $0x10] sm:$0xff] }
 0x16a   :  { %v489_v51 = vmul.f32 %v428_v48, %v4315_v38 }
 0x16b   :  { %v432_v52 = vmul.f32 0.5, %v431_v47  ;;  %v273_v53 = vpop.xlane.xlu0 %272  ;;  %v234_v55 = vpop.xlane.xlu2 %233 }
 0x16c   :  { %v300_v56 = vmul.f32 %v4440_v49, %v273_v53  ;;  %v287_v57 = vmul.f32 %v4440_v49, %v234_v55  ;;  %v4472_v58 = vmul.f32 %v4448_v8, %v489_v51 }
 0x16d   :  { %v433_v60 = vsub.f32 1.5, %v432_v52 }
 0x16e   :  { %v3723_v61 = vpop.eup %3722  ;;  %v4474_v62 = vadd.f32 1.1920929e-07, %v300_v56  ;;  %v4476_v0 = vadd.f32 1.1920929e-07, %v287_v57  ;;  %3406 = vmatmul.msk.f32.gmra.mxu3 %vm231_vm1, %v4472_v58  ;;  %v1985_v57 = vld [vmem:[%s6339_s8 + $0x8] sm:$0xff] }
 0x16f   :  { %v4480_v1 = vpop.eup %3724  ;;  %v440_v2 = vmul.f32 %v3723_v61, %v315_v41  ;;  %v434_v3 = vmul.f32 %v3721_v40, %v433_v60  ;;  %vm446_vm15 = vweird.f32 %v3723_v61  ;;  %v1987_v41 = vld [vmem:[%s6339_s8 + $0x18] sm:$0xff] }
 0x170   :  { %3726 = vrsqrt.f32 %v4474_v62  ;;  %v330_v7 = vmul.f32 %v4480_v1, %v4463_v42  ;;  %vm447_vm2 = vmor %vm445_vm0, %vm446_vm15  ;;  %2004 = vmatpush.msrb.mxu3 %v1987_v41  ;;  %vm455_vm4 = vweird.f32 %v4474_v62  ;;  %vm325_vm7 = vweird.f32 %v4476_v0 }
 0x171   :  { %v441_v5 = vmul.f32 %v3723_v61, %v440_v2  ;;  %3728 = vrsqrt.f32 %v4476_v0  ;;  %v438_v6 = vsel %vm437_vm14, %v3721_v40, %v434_v3  ;;  %vm336_vm8 = vweird.f32 %v4480_v1 }
 0x172   :  { %v490_v10 = vmul.f32 %v438_v6, %v4323_v43  ;;  %v331_v27 = vmul.f32 %v4480_v1, %v330_v7  ;;  %2005 = vmatpush.msrb.mxu3 %v1986_v44  ;;  %v1984_v7 = vld [vmem:[%s6339_s8] sm:$0xff]  ;;  %vm4568_vm11 = vmor %vm335_vm10, %vm336_vm8  ;;  %s4111_s8 = smov 128  }
 0x173   :  { %v442_v11 = vmul.f32 0.5, %v441_v5  ;;  %v240_v13 = vpop.xlane.xlu0 %239  ;;  %v276_v14 = vpop.xlane.xlu2 %275 }
 0x174   :  { %v289_v16 = vmul.f32 %v4440_v49, %v240_v13  ;;  %v301_v17 = vmul.f32 %v4440_v49, %v276_v14  ;;  %v4490_v19 = vmul.f32 %v4448_v8, %v490_v10  ;;  %v332_v36 = vmul.f32 0.5, %v331_v27  ;;  %2006 = vmatpush.msrb.mxu3 %v1985_v57 }
 0x175   :  { %v443_v20 = vsub.f32 1.5, %v442_v11 }
 0x176   :  { %v4492_v21 = vpop.eup %3726  ;;  %v4495_v29 = vadd.f32 1.1920929e-07, %v289_v16  ;;  %v4497_v31 = vadd.f32 1.1920929e-07, %v301_v17  ;;  %3407 = vmatmul.msk.f32.gmra.mxu3 %vm231_vm1, %v4490_v19  ;;  %v333_v3 = vsub.f32 1.5, %v332_v36 }
 0x177   :  { %v4501_v32 = vpop.eup %3728  ;;  %v450_v23 = vmul.f32 %v4492_v21, %v4474_v62  ;;  %v444_v25 = vmul.f32 %v3723_v61, %v443_v20  ;;  %vm456_vm3 = vweird.f32 %v4492_v21  ;;  %2007 = vmatpush.msrb.mxu3 %v1984_v7 }
 0x178   :  { %v320_v34 = vmul.f32 %v4501_v32, %v4476_v0  ;;  %3730 = vrsqrt.f32 %v4495_v29  ;;  %vm326_vm5 = vweird.f32 %v4501_v32  ;;  %vm457_vm6 = vmor %vm455_vm4, %vm456_vm3  ;;  %vm465_vm13 = vweird.f32 %v4497_v31 }
 0x179   :  { %v451_v35 = vmul.f32 %v4492_v21, %v450_v23  ;;  %3732 = vrsqrt.f32 %v4497_v31  ;;  %v448_v24 = vsel %vm447_vm2, %v3723_v61, %v444_v25  ;;  %vm327_vm9 = vmor %vm325_vm7, %vm326_vm5  ;;  %vm345_vm0 = vweird.f32 %v4495_v29 }
 0x17a   :  { %v321_v39 = vmul.f32 %v4501_v32, %v320_v34  ;;  %v491_v40 = vmul.f32 %v448_v24, %v4336_v50  ;;  %v334_v34 = vmul.f32 %v4480_v1, %v333_v3  ;;  %v6446_v50 = vmov 0.0  }
 0x17b   :  { %v452_v45 = vmul.f32 0.5, %v451_v35  ;;  %v246_v47 = vpop.xlane.xlu0 %245  ;;  %v279_v48 = vpop.xlane.xlu1 %278 }
 0x17c   :  { %v322_v51 = vmul.f32 0.5, %v321_v39  ;;  %v291_v52 = vmul.f32 %v4440_v49, %v246_v47  ;;  %v302_v53 = vmul.f32 %v4440_v49, %v279_v48  ;;  %v243_v55 = vpop.xlane.xlu2 %242  ;;  %v4521_v56 = vmul.f32 %v4448_v8, %v491_v40 }
 0x17d   :  { %v453_v60 = vsub.f32 1.5, %v452_v45  ;;  %v290_v61 = vmul.f32 %v4440_v49, %v243_v55  ;;  %v338_v42 = vsel %vm4568_vm11, %v4480_v1, %v334_v34 }
 0x17e   :  { %v4527_v2 = vpop.eup %3730  ;;  %v323_v5 = vsub.f32 1.5, %v322_v51  ;;  %v4530_v6 = vadd.f32 1.1920929e-07, %v302_v53  ;;  %3408 = vmatmul.msk.f32.gmra.mxu3 %vm231_vm1, %v4521_v56  ;;  %v4541_v13 = vadd.f32 1.1920929e-07, %v291_v52 }
 0x17f   :  { %v4537_v10 = vpop.eup %3732  ;;  %v340_v11 = vmul.f32 %v4527_v2, %v4495_v29  ;;  %v4543_v14 = vadd.f32 1.1920929e-07, %v290_v61  ;;  %v454_v16 = vmul.f32 %v4492_v21, %v453_v60  ;;  %v480_v61 = vmul.f32 %v338_v42, %v4330_v46 }
 0x180   :  { %v460_v17 = vmul.f32 %v4537_v10, %v4497_v31  ;;  %3734 = vrsqrt.f32 %v4530_v6  ;;  %v324_v23 = vmul.f32 %v4501_v32, %v323_v5  ;;  %vm466_vm12 = vweird.f32 %v4537_v10 }
 0x181   :  { %v341_v20 = vmul.f32 %v4527_v2, %v340_v11  ;;  %3736 = vrsqrt.f32 %v4543_v14  ;;  %v458_v62 = vsel %vm457_vm6, %v4492_v21, %v454_v16  ;;  %vm346_vm14 = vweird.f32 %v4527_v2  ;;  %vm467_vm15 = vmor %vm465_vm13, %vm466_vm12 }
 0x182   :  { %v461_v27 = vmul.f32 %v4537_v10, %v460_v17  ;;  %3738 = vrsqrt.f32 %v4541_v13  ;;  %v492_v0 = vmul.f32 %v458_v62, %v4352_v59  ;;  %v328_v39 = vsel %vm327_vm9, %v4501_v32, %v324_v23  ;;  %vm4601_vm2 = vmor %vm345_vm0, %vm346_vm14 }
 0x183   :  { %v249_v25 = vpop.xlane.xlu1 %248  ;;  %v342_v35 = vmul.f32 0.5, %v341_v20  ;;  %v479_v21 = vmul.f32 %v328_v39, %v4345_v54  ;;  %v255_v62 = vpop.xlane.xlu0 %254  ;;  %vm475_vm4 = vweird.f32 %v4530_v6  ;;  %vm355_vm7 = vweird.f32 %v4543_v14 }
 0x184   :  { %v462_v24 = vmul.f32 0.5, %v461_v27  ;;  %v292_v36 = vmul.f32 %v4440_v49, %v249_v25  ;;  %v4566_v40 = vmul.f32 %v4448_v8, %v492_v0  ;;  %v252_v53 = vpop.xlane.xlu2 %251  ;;  %v499_v0 = vmul.f32 %v4448_v8, %v480_v61 }
 0x185   :  { %v4575_v48 = vmul.f32 %v4448_v8, %v479_v21  ;;  %v343_v51 = vsub.f32 1.5, %v342_v35  ;;  %v293_v3 = vmul.f32 %v4440_v49, %v252_v53  ;;  %v294_v39 = vmul.f32 %v4440_v49, %v255_v62 }
 0x186   :  { %v3735_v44 = vpop.eup %3734  ;;  %v463_v45 = vsub.f32 1.5, %v462_v24  ;;  %v4572_v47 = vadd.f32 1.1920929e-07, %v292_v36  ;;  %3409 = vmatmul.msk.f32.gmra.mxu3 %vm231_vm1, %v4566_v40  ;;  %vm365_vm10 = vweird.f32 %v4541_v13 }
 0x187   :  { %v3737_v32 = vpop.eup %3736  ;;  %v470_v52 = vmul.f32 %v3735_v44, %v4530_v6  ;;  %3396 = vmatmul.msk.f32.vlgmr.msra.gmra.mxu1 %vm231_vm1, %v4575_v48  ;;  %v344_v16 = vmul.f32 %v4527_v2, %v343_v51  ;;  %vm476_vm3 = vweird.f32 %v3735_v44  ;;  %v4605_v25 = vadd.f32 1.1920929e-07, %v293_v3 }
 0x188   :  { %v4583_v55 = vpop.eup %3738  ;;  %v350_v57 = vmul.f32 %v3737_v32, %v4543_v14  ;;  %3740 = vrsqrt.f32 %v4572_v47  ;;  %v464_v5 = vmul.f32 %v4537_v10, %v463_v45  ;;  %vm477_vm5 = vmor %vm475_vm4, %vm476_vm3  ;;  %vm356_vm6 = vweird.f32 %v3737_v32 }
 0x189   :  { %v471_v60 = vmul.f32 %v3735_v44, %v470_v52  ;;  %v360_v7 = vmul.f32 %v4583_v55, %v4541_v13  ;;  %v348_v29 = vsel %vm4601_vm2, %v4527_v2, %v344_v16  ;;  %3742 = vrsqrt.f32 %v4605_v25  ;;  %vm357_vm8 = vmor %vm355_vm7, %vm356_vm6 }
 0x18a   :  { %v351_v1 = vmul.f32 %v3737_v32, %v350_v57  ;;  %v468_v17 = vsel %vm467_vm15, %v4537_v10, %v464_v5  ;;  %v481_v21 = vmul.f32 %v348_v29, %v4361_v63  ;;  %v310_v52 = vadd.f32 1.1920929e-07, %v294_v39 }
 0x18b   :  { %v472_v11 = vmul.f32 0.5, %v471_v60  ;;  %v493_v27 = vmul.f32 %v468_v17, %v4368_v4  ;;  %v361_v34 = vmul.f32 %v4583_v55, %v360_v7  ;;  %vm366_vm9 = vweird.f32 %v4583_v55 }
 0x18c   :  { %v352_v31 = vmul.f32 0.5, %v351_v1  ;;  %v500_v53 = vmul.f32 %v4448_v8, %v481_v21  ;;  %3744 = vrsqrt.f32 %v310_v52  ;;  %vm367_vm11 = vmor %vm365_vm10, %vm366_vm9  ;;  %vm375_vm13 = vweird.f32 %v4572_v47 }
 0x18d   :  { %v473_v20 = vsub.f32 1.5, %v472_v11  ;;  %v4610_v10 = vmul.f32 %v4448_v8, %v493_v27  ;;  %v362_v45 = vmul.f32 0.5, %v361_v34  ;;  %vm385_vm0 = vweird.f32 %v4605_v25 }
 0x18e   :  { %v353_v35 = vsub.f32 1.5, %v352_v31  ;;  %v3741_v24 = vpop.eup %3740  ;;  %vm395_vm4 = vweird.f32 %v310_v52 }
 0x18f   :  { %3397 = vmatmul.msk.f32.gmra.mxu1 %vm231_vm1, %v499_v0  ;;  %v474_v36 = vmul.f32 %v3735_v44, %v473_v20  ;;  %3410 = vmatmul.msk.f32.gmra.mxu3 %vm231_vm1, %v4610_v10  ;;  %v370_v2 = vmul.f32 %v3741_v24, %v4572_v47  ;;  %v363_v57 = vsub.f32 1.5, %v362_v45  ;;  %v3743_v1 = vpop.eup %3742  ;;  %vm376_vm12 = vweird.f32 %v3741_v24 }
 0x190   :  { %v354_v42 = vmul.f32 %v3737_v32, %v353_v35  ;;  %v380_v3 = vmul.f32 %v3743_v1, %v4605_v25  ;;  %vm377_vm14 = vmor %vm375_vm13, %vm376_vm12  ;;  %vm386_vm15 = vweird.f32 %v3743_v1 }
 0x191   :  { %v478_v41 = vsel %vm477_vm5, %v3735_v44, %v474_v36  ;;  %v371_v60 = vmul.f32 %v3741_v24, %v370_v2  ;;  %v364_v5 = vmul.f32 %v4583_v55, %v363_v57  ;;  %vm387_vm2 = vmor %vm385_vm0, %vm386_vm15 }
 0x192   :  { %v494_v6 = vmul.f32 %v478_v41, %v4390_v15  ;;  %v358_v61 = vsel %vm357_vm8, %v3737_v32, %v354_v42  ;;  %v381_v11 = vmul.f32 %v3743_v1, %v380_v3  ;;  %v3745_v31 = vpop.eup %3744 }
 0x193   :  { %v482_v44 = vmul.f32 %v358_v61, %v4385_v12  ;;  %v372_v14 = vmul.f32 0.5, %v371_v60  ;;  %v368_v16 = vsel %vm367_vm11, %v4583_v55, %v364_v5  ;;  %v390_v20 = vmul.f32 %v3745_v31, %v310_v52 }
 0x194   :  { %v4626_v51 = vmul.f32 %v4448_v8, %v494_v6  ;;  %v483_v17 = vmul.f32 %v368_v16, %v4380_v9  ;;  %v382_v27 = vmul.f32 0.5, %v381_v11  ;;  %vm396_vm3 = vweird.f32 %v3745_v31 }
 0x195   :  { %v501_v32 = vmul.f32 %v4448_v8, %v482_v44  ;;  %v373_v7 = vsub.f32 1.5, %v372_v14  ;;  %v391_v62 = vmul.f32 %v3745_v31, %v390_v20  ;;  %vm397_vm5 = vmor %vm395_vm4, %vm396_vm3 }
 0x196   :  { %v502_v13 = vmul.f32 %v4448_v8, %v483_v17  ;;  %v383_v34 = vsub.f32 1.5, %v382_v27 }
 0x197   :  { %3398 = vmatmul.msk.f32.gmra.mxu1 %vm231_vm1, %v500_v53  ;;  %3411 = vmatmul.msk.f32.gmra.mxu3 %vm231_vm1, %v4626_v51  ;;  %v374_v23 = vmul.f32 %v3741_v24, %v373_v7  ;;  %v392_v35 = vmul.f32 0.5, %v391_v62 }
 0x198   :  { %v384_v29 = vmul.f32 %v3743_v1, %v383_v34 }
 0x199   :  { %v378_v55 = vsel %vm377_vm14, %v3741_v24, %v374_v23  ;;  %v393_v36 = vsub.f32 1.5, %v392_v35  ;;  %v1197_v35 = vld [vmem:[%s6439_s5 + $0x8] sm:$0xff] }
 0x19a   :  { %v388_v39 = vsel %vm387_vm2, %v3743_v1, %v384_v29 }
 0x19b   :  { %v485_v24 = vmul.f32 %v388_v39, %v4416_v30  ;;  %v1199_v39 = vld [vmem:[%s6439_s5 + $0x18] sm:$0xff] }
 0x19d   :  { %v504_v21 = vmul.f32 %v4448_v8, %v485_v24  ;;  %v1196_v24 = vld [vmem:[%s6439_s5] sm:$0xff] }
 0x19f   :  { %3399 = vmatmul.msk.f32.gmra.mxu1 %vm231_vm1, %v501_v32  ;;  %3508 = vmatmul.msk.f32.vlgmr.msrb.gmra.mxu3 %vm231_vm1, %v4575_v48  ;;  %v484_v48 = vmul.f32 %v378_v55, %v4408_v22 }
 0x1a1   :  { %v503_v47 = vmul.f32 %v4448_v8, %v484_v48 }
 0x1a7   :  { %3400 = vmatmul.msk.f32.gmra.mxu1 %vm231_vm1, %v502_v13  ;;  %3509 = vmatmul.msk.f32.gmra.mxu3 %vm231_vm1, %v499_v0  ;;  %v394_v0 = vmul.f32 %v3745_v31, %v393_v36 }
 0x1a9   :  { %v398_v41 = vsel %vm397_vm5, %v3745_v31, %v394_v0 }
 0x1aa   :  { %v486_v25 = vmul.f32 %v398_v41, %v4411_v26  ;;  %v1204_v41 = vld [vmem:[%s6439_s5 + $0x40] sm:$0xff] }
 0x1ac   :  { %v505_v45 = vmul.f32 %v4448_v8, %v486_v25  ;;  %v1198_v25 = vld [vmem:[%s6439_s5 + $0x10] sm:$0xff] }
 0x1af   :  { %3401 = vmatmul.msk.f32.gmra.mxu1 %vm231_vm1, %v503_v47  ;;  %3510 = vmatmul.msk.f32.gmra.mxu3 %vm231_vm1, %v500_v53 }
 0x1b7   :  { %3402 = vmatmul.msk.f32.gmra.mxu1 %vm231_vm1, %v504_v21  ;;  %3511 = vmatmul.msk.f32.gmra.mxu3 %vm231_vm1, %v501_v32 }
 0x1bf   :  { %3403 = vmatmul.msk.f32.gmra.mxu1 %vm231_vm1, %v505_v45  ;;  %3512 = vmatmul.msk.f32.gmra.mxu3 %vm231_vm1, %v502_v13 }
 0x1c7   :  { %3513 = vmatmul.msk.f32.gmra.mxu3 %vm231_vm1, %v503_v47 }
 0x1cf   :  { %3514 = vmatmul.msk.f32.gmra.mxu3 %vm231_vm1, %v504_v21 }
 0x1d7   :  { %3515 = vmatmul.msk.f32.gmra.mxu3 %vm231_vm1, %v505_v45  ;;  %v1201_v45 = vld [vmem:[%s6439_s5 + $0x28] sm:$0xff] }
 0x1df   :  { %3516 = vmatmul.msk.f32.gmra.mxu3 %vm231_vm1, %v4453_v18  ;;  %v3699_v18 = vld [vmem:[%s6338_s7] ss:$0 sm:$0xff]  ;;  %s6440_s7 = sld [smem:[#allocation49_spill]] }
 0x1e1   :  { %v611_v2 = vpop.f32.mrf.mxu3 }
 0x1e2   :  { %v4712_v11 = vadd.f32 %v3699_v18, %v611_v2 }
 0x1e7   :  { %3517 = vmatmul.msk.f32.gmra.mxu3 %vm231_vm1, %v4461_v37 }
 0x1e9   :  { %v614_v6 = vpop.f32.mrf.mxu3 }
 0x1ea   :  { %v4704_v3 = vadd.f32 %v3699_v18, %v614_v6  ;;  %v1207_v6 = vld [vmem:[%s6439_s5 + $0x58] sm:$0xff] }
 0x1ef   :  { %3518 = vmatmul.msk.f32.gmra.mxu3 %vm231_vm1, %v4472_v58 }
 0x1f1   :  { %v617_v42 = vpop.f32.mrf.mxu3 }
 0x1f7   :  { %3519 = vmatmul.msk.f32.gmra.mxu3 %vm231_vm1, %v4490_v19  ;;  %v4684_v19 = vadd.f32 %v3699_v18, %v617_v42  ;;  %v1200_v42 = vld [vmem:[%s6439_s5 + $0x20] sm:$0xff] }
 0x1f9   :  { %v620_v8 = vpop.f32.mrf.mxu3 }
 0x1fa   :  { %v4706_v5 = vadd.f32 %v3699_v18, %v620_v8  ;;  %v1203_v8 = vld [vmem:[%s6439_s5 + $0x38] sm:$0xff] }
 0x1ff   :  { %3520 = vmatmul.msk.f32.gmra.mxu3 %vm231_vm1, %v4521_v56 }
 0x201   :  { %v623_v52 = vpop.f32.mrf.mxu3 }
 0x202   :  { %v4694_v1 = vadd.f32 %v3699_v18, %v623_v52 }
 0x204   :  { %v587_v53 = vpop.f32.mrf.mxu1 }
 0x205   :  { %v4741_v29 = vadd.f32 %v3699_v18, %v587_v53  ;;  %v1208_v53 = vld [vmem:[%s6439_s5 + $0x60] sm:$0xff] }
 0x207   :  { %3521 = vmatmul.msk.f32.gmra.mxu3 %vm231_vm1, %v4566_v40 }
 0x209   :  { %v626_v37 = vpop.f32.mrf.mxu3 }
 0x20a   :  { %v4678_v57 = vadd.f32 %v3699_v18, %v626_v37  ;;  %v1206_v37 = vld [vmem:[%s6439_s5 + $0x50] sm:$0xff] }
 0x20c   :  { %757 = vrot.lane.b32.xlu0 %v4678_v57, %s4105_s3  ;;  %v590_v58 = vpop.f32.mrf.mxu1 }
 0x20d   :  { %v4755_v0 = vadd.f32 %v3699_v18, %v590_v58 }
 0x20f   :  { %3522 = vmatmul.msk.f32.gmra.mxu3 %vm231_vm1, %v4610_v10 }
 0x212   :  { %v629_v56 = vpop.f32.mrf.mxu3 }
 0x213   :  { %v4688_v60 = vadd.f32 %v3699_v18, %v629_v56  ;;  %v1209_v56 = vld [vmem:[%s6439_s5 + $0x68] sm:$0xff] }
 0x214   :  { %751 = vrot.lane.b32.xlu0 %v4684_v19, %s4105_s3  ;;  %v593_v40 = vpop.f32.mrf.mxu1 }
 0x215   :  { %759 = vrot.lane.b32.xlu2 %v4688_v60, %s4105_s3  ;;  %v4726_v13 = vadd.f32 %v3699_v18, %v593_v40  ;;  %v1205_v40 = vld [vmem:[%s6439_s5 + $0x48] sm:$0xff] }
 0x217   :  { %3523 = vmatmul.msk.f32.gmra.mxu3 %vm231_vm1, %v4626_v51  ;;  %v4106_v51 = vmov 0  }
 0x218   :  { %3576 = vset.pattern.permute.xlu1 %v4106_v51  ;;  %3575 = vset.pattern.permute.xlu2 %v4106_v51 }
 0x219   :  { %3577 = vset.pattern.permute.xlu0 %v4106_v51 }
 0x21a   :  { %v632_v61 = vpop.f32.mrf.mxu3 }
 0x21b   :  { %v4696_v44 = vadd.f32 %v3699_v18, %v632_v61  ;;  %v1211_v61 = vld [vmem:[%s6439_s5 + $0x78] sm:$0xff] }
 0x21c   :  { %v596_v10 = vpop.f32.mrf.mxu1 }
 0x21d   :  { %761 = vrot.lane.b32.xlu1 %v4696_v44, %s4105_s3  ;;  %755 = vrot.lane.b32.xlu2 %v4694_v1, %s4105_s3  ;;  %v4728_v34 = vadd.f32 %v3699_v18, %v596_v10  ;;  %v4798_v10 = vld [vmem:[%s6340_s9] ss:$0 sm:$0xff]  ;;  %s4107_s9 = smov 64  }
 0x222   :  { %v4702_v14 = vpop.f32.mrf.mxu3 }
 0x223   :  { %v4805_v51 = vadd.f32 %v4798_v10, %v4702_v14 }
 0x224   :  { %v599_v32 = vpop.f32.mrf.mxu1 }
 0x225   :  { %753 = vrot.lane.b32.xlu1 %v4706_v5, %s4105_s3  ;;  %749 = vrot.lane.b32.xlu2 %v4704_v3, %s4105_s3  ;;  %v4743_v47 = vadd.f32 %v3699_v18, %v599_v32 }
 0x22a   :  { %v2012_v7 = vpop.f32.mrf.mxu3 }
 0x22b   :  { %v4801_v32 = vadd.f32 %v4798_v10, %v2012_v7 }
 0x22c   :  { %v602_v16 = vpop.f32.mrf.mxu1 }
 0x22d   :  { %747 = vrot.lane.b32.xlu1 %v4712_v11, %s4105_s3  ;;  %v4718_v17 = vadd.f32 %v3699_v18, %v602_v16 }
 0x232   :  { %v4716_v31 = vpop.f32.mrf.mxu3 }
 0x234   :  { %v605_v20 = vpop.f32.mrf.mxu1 }
 0x235   :  { %v4720_v27 = vadd.f32 %v3699_v18, %v605_v20  ;;  %741 = vrot.lane.b32.xlu1 %v4718_v17, %s4105_s3  ;;  %v4809_v20 = vpack.i.bf16 %v4805_v51, %v4801_v32 }
 0x237   :  { %743 = vrot.lane.b32.xlu2 %v4720_v27, %s4105_s3 }
 0x23a   :  { %v2018_v23 = vpop.f32.mrf.mxu3 }
 0x23b   :  { %v4819_v14 = vadd.f32 %v4798_v10, %v2018_v23 }
 0x23c   :  { %v608_v62 = vpop.f32.mrf.mxu1 }
 0x23d   :  { %v4730_v55 = vadd.f32 %v3699_v18, %v608_v62  ;;  %735 = vrot.lane.b32.xlu1 %v4726_v13, %s4105_s3  ;;  %v1202_v18 = vld [vmem:[%s6439_s5 + $0x30] sm:$0xff] }
 0x23e   :  { %v1210_v62 = vld [vmem:[%s6439_s5 + $0x70] sm:$0xff]  ;;  %s4108_s5 = smov 32  }
 0x23f   :  { %745 = vrot.lane.b32.xlu0 %v4730_v55, %s4105_s3  ;;  %737 = vrot.lane.b32.xlu2 %v4728_v34, %s4105_s3 }
 0x242   :  { %v2021_v48 = vpop.f32.mrf.mxu3 }
 0x245   :  { %1220 = vperm.xlu1 %3576, %v1197_v35  }
 0x247   :  { %739 = vrot.lane.b32.xlu0 %v4743_v47, %s4105_s3  ;;  %731 = vrot.lane.b32.xlu2 %v4741_v29, %s4105_s3 }
 0x24a   :  { %v2024_v36 = vpop.f32.mrf.mxu3 }
 0x24b   :  { %v4822_v7 = vadd.f32 %v4798_v10, %v2024_v36 }
 0x24d   :  { %1230 = vperm.xlu1 %3576, %v1199_v39   ;;  %v4826_v39 = vadd.f32 %v4798_v10, %v4716_v31 }
 0x24f   :  { %733 = vrot.lane.b32.xlu0 %v4755_v0, %s4105_s3  ;;  %1215 = vperm.xlu2 %3575, %v1196_v24   ;;  %v4829_v24 = vadd.f32 %v4798_v10, %v2021_v48 }
 0x252   :  { %v2027_v21 = vpop.f32.mrf.mxu3 }
 0x253   :  { %v4846_v48 = vadd.f32 %v4798_v10, %v2027_v21 }
 0x255   :  { %1255 = vperm.xlu1 %3576, %v1204_v41  }
 0x257   :  { %1225 = vperm.xlu0 %3577, %v1198_v25   ;;  %1240 = vperm.xlu2 %3575, %v1201_v45   ;;  %v4833_v25 = vpack.i.bf16 %v4826_v39, %v4819_v14  ;;  %v3598_v45 = vpack.i.bf16 %v4829_v24, %v4822_v7 }
 0x25a   :  { %v2030_v2 = vpop.f32.mrf.mxu3 }
 0x25b   :  { %v4843_v31 = vadd.f32 %v4798_v10, %v2030_v2 }
 0x25d   :  { %1270 = vperm.xlu1 %3576, %v1207_v6   ;;  %v3618_v6 = vpack.i.bf16 %v4846_v48, %v4843_v31 }
 0x25f   :  { %1235 = vperm.xlu0 %3577, %v1200_v42   ;;  %1250 = vperm.xlu2 %3575, %v1203_v8  }
 0x262   :  { %v2033_v52 = vpop.f32.mrf.mxu3 }
 0x263   :  { %v4860_v21 = vadd.f32 %v4798_v10, %v2033_v52 }
 0x265   :  { %1275 = vperm.xlu1 %3576, %v1208_v53  }
 0x267   :  { %1245 = vperm.xlu0 %3577, %v1202_v18   ;;  %1265 = vperm.xlu2 %3575, %v1206_v37  }
 0x26a   :  { %v2036_v58 = vpop.f32.mrf.mxu3 }
 0x26b   :  { %v4854_v42 = vadd.f32 %v4798_v10, %v2036_v58 }
 0x26d   :  { %1280 = vperm.xlu1 %3576, %v1209_v56   ;;  %v3633_v18 = vpack.i.bf16 %v4860_v21, %v4854_v42 }
 0x26f   :  { %1260 = vperm.xlu0 %3577, %v1205_v40   ;;  %1290 = vperm.xlu2 %3575, %v1211_v61   ;;  %v760_v35 = vpop.permute.xlu2 %759 }
 0x272   :  { %v2039_v16 = vpop.f32.mrf.mxu3 }
 0x273   :  { %v4863_v53 = vadd.f32 %v4798_v10, %v2039_v16 }
 0x275   :  { %3579 = vrot.lane.b32.xlu1 %v4809_v20, %s4105_s3 }
 0x277   :  { %1285 = vperm.xlu0 %3577, %v1210_v62   ;;  %3584 = vrot.lane.b32.xlu2 %v4809_v20, %s4107_s9  ;;  %v756_v23 = vpop.permute.xlu2 %755 }
 0x27a   :  { %v2042_v41 = vpop.f32.mrf.mxu3 }
 0x27b   :  { %v4857_v2 = vadd.f32 %v4798_v10, %v2042_v41 }
 0x27d   :  { %3589 = vrot.lane.b32.xlu1 %v4833_v25, %s4105_s3  ;;  %v3648_v37 = vpack.i.bf16 %v4863_v53, %v4857_v2 }
 0x27e   :  { %v758_v62 = vpop.permute.xlu0 %757 }
 0x27f   :  { %3594 = vrot.lane.b32.xlu0 %v4833_v25, %s4107_s9  ;;  %3599 = vrot.lane.b32.xlu2 %v3598_v45, %s4105_s3  ;;  %v750_v8 = vpop.permute.xlu2 %749 }
 0x282   :  { %v2045_v36 = vpop.f32.mrf.mxu3 }
 0x283   :  { %v4878_v61 = vadd.f32 %v4798_v10, %v2045_v36 }
 0x285   :  { %3609 = vrot.lane.b32.xlu1 %v3598_v45, %s4108_s5 }
 0x287   :  { %3619 = vrot.lane.b32.xlu0 %v3618_v6, %s4107_s9  ;;  %3604 = vrot.lane.b32.xlu2 %v3598_v45, %s4107_s9 }
 0x28a   :  { %v2048_v56 = vpop.f32.mrf.mxu3 }
 0x28b   :  { %v4873_v52 = vadd.f32 %v4798_v10, %v2048_v56  ;;  %v752_v56 = vpop.permute.xlu0 %751 }
 0x28d   :  { %3634 = vrot.lane.b32.xlu1 %v3633_v18, %s4107_s9  ;;  %v3663_v16 = vpack.i.bf16 %v4878_v61, %v4873_v52 }
 0x28f   :  { %3649 = vrot.lane.b32.xlu0 %v3648_v37, %s4107_s9  ;;  %3614 = vrot.lane.b32.xlu2 %v3618_v6, %s4105_s3  ;;  %v762_v58 = vpop.permute.xlu1 %761 }
 0x290   :  { %3412 = vmatpush.xpose.msk.msrb.mxu1 %vm231_vm1, %v762_v58  ;;  %3550 = vmatpush.xpose.msk.msra.mxu2 %vm231_vm1, %v762_v58 }
 0x291   :  { %v744_v40 = vpop.permute.xlu2 %743 }
 0x292   :  { %v2051_v36 = vpop.f32.mrf.mxu3 }
 0x294   :  { %3413 = vmatpush.xpose.msk.msrb.mxu1 %vm231_vm1, %v760_v35  ;;  %3551 = vmatpush.xpose.msk.msra.mxu2 %vm231_vm1, %v760_v35 }
 0x295   :  { %3639 = vrot.lane.b32.xlu1 %v3633_v18, %s4108_s5 }
 0x297   :  { %3664 = vrot.lane.b32.xlu0 %v3663_v16, %s4107_s9  ;;  %3624 = vrot.lane.b32.xlu2 %v3618_v6, %s4108_s5  ;;  %v754_v41 = vpop.permute.xlu1 %753 }
 0x298   :  { %3414 = vmatpush.xpose.msk.msrb.mxu1 %vm231_vm1, %v758_v62  ;;  %3552 = vmatpush.xpose.msk.msra.mxu2 %vm231_vm1, %v758_v62 }
 0x299   :  { %v738_v45 = vpop.permute.xlu2 %737 }
 0x29a   :  { %v2054_v58 = vpop.f32.mrf.mxu3 }
 0x29c   :  { %3415 = vmatpush.xpose.msk.msrb.mxu1 %vm231_vm1, %v756_v23  ;;  %3553 = vmatpush.xpose.msk.msra.mxu2 %vm231_vm1, %v756_v23  ;;  %v2055_v23 = vadd.f32 %v4798_v10, %v2054_v58 }
 0x29d   :  { %3659 = vrot.lane.b32.xlu1 %v3663_v16, %s4105_s3 }
 0x29f   :  { %3629 = vrot.lane.b32.xlu2 %v3633_v18, %s4105_s3  ;;  %v748_v35 = vpop.permute.xlu1 %747 }
 0x2a0   :  { %3416 = vmatpush.xpose.msk.msrb.mxu1 %vm231_vm1, %v754_v41  ;;  %3554 = vmatpush.xpose.msk.msra.mxu2 %vm231_vm1, %v754_v41  ;;  %v2052_v41 = vadd.f32 %v4798_v10, %v2051_v36  ;;  %v6361_v10 = vmov 0.0  }
 0x2a1   :  { %v732_v6 = vpop.permute.xlu2 %731 }
 0x2a2   :  { %v3683_v15 = vpack.i.bf16 %v2052_v41, %v2055_v23 }
 0x2a4   :  { %3417 = vmatpush.xpose.msk.msrb.mxu1 %vm231_vm1, %v752_v56  ;;  %3555 = vmatpush.xpose.msk.msra.mxu2 %vm231_vm1, %v752_v56 }
 0x2a5   :  { %3669 = vrot.lane.b32.xlu1 %v3663_v16, %s4108_s5  ;;  %v4910_v16 = vld [vmem:[%s6440_s7] ss:$0 sm:$0xff] }
 0x2a7   :  { %3644 = vrot.lane.b32.xlu2 %v3648_v37, %s4105_s3  ;;  %v742_v62 = vpop.permute.xlu1 %741 }
 0x2a8   :  { %3418 = vmatpush.xpose.msk.msrb.mxu1 %vm231_vm1, %v750_v8  ;;  %3556 = vmatpush.xpose.msk.msra.mxu2 %vm231_vm1, %v750_v8 }
 0x2a9   :  { %v4902_v18 = vpop.permute.xlu2 %1215 }
 0x2aa   :  { %vm1296_vm4 = vcmp.eq.f32.partialorder %v4902_v18, %v4910_v16 }
 0x2ac   :  { %3419 = vmatpush.xpose.msk.msrb.mxu1 %vm231_vm1, %v748_v35  ;;  %3557 = vmatpush.xpose.msk.msra.mxu2 %vm231_vm1, %v748_v35 }
 0x2ad   :  { %3684 = vrot.lane.b32.xlu1 %v3683_v15, %s4108_s5 }
 0x2af   :  { %3654 = vrot.lane.b32.xlu2 %v3648_v37, %s4108_s5  ;;  %v736_v56 = vpop.permute.xlu1 %735 }
 0x2b1   :  { %v746_v8 = vpop.permute.xlu0 %745  ;;  %v1241_v58 = vpop.permute.xlu2 %1240 }
 0x2b2   :  { %vm1301_vm6 = vcmp.eq.f32.partialorder %v1241_v58, %v4910_v16  ;;  %3420 = vmatpush.xpose.msk.msrb.mxu1 %vm231_vm1, %v746_v8  ;;  %3558 = vmatpush.xpose.msk.msra.mxu2 %vm231_vm1, %v746_v8 }
 0x2b3   :  { %v4918_v36 = vsel %vm1301_vm6, 1.0, %v6361_v10 }
 0x2b4   :  { %6441 = vst [vmem:[#allocation22_spill] sm:$0xff] %v4918_v36 }
 0x2b6   :  { %3421 = vmatpush.xpose.msk.msrb.mxu1 %vm231_vm1, %v744_v40  ;;  %3559 = vmatpush.xpose.msk.msra.mxu2 %vm231_vm1, %v744_v40 }
 0x2b7   :  { %3674 = vrot.lane.b32.xlu2 %v3683_v15, %s4105_s3  ;;  %v4923_v37 = vpop.permute.xlu1 %1220 }
 0x2b8   :  { %vm1297_vm5 = vcmp.eq.f32.partialorder %v4923_v37, %v4910_v16 }
 0x2b9   :  { %v740_v35 = vpop.permute.xlu0 %739  ;;  %v1251_v4 = vpop.permute.xlu2 %1250 }
 0x2ba   :  { %vm1303_vm7 = vcmp.eq.f32.partialorder %v1251_v4, %v4910_v16  ;;  %3422 = vmatpush.xpose.msk.msrb.mxu1 %vm231_vm1, %v742_v62  ;;  %3560 = vmatpush.xpose.msk.msra.mxu2 %vm231_vm1, %v742_v62 }
 0x2bb   :  { %v4929_v8 = vsel %vm1303_vm7, 1.0, %v6361_v10 }
 0x2be   :  { %3423 = vmatpush.xpose.msk.msrb.mxu1 %vm231_vm1, %v740_v35  ;;  %3561 = vmatpush.xpose.msk.msra.mxu2 %vm231_vm1, %v740_v35 }
 0x2bf   :  { %3679 = vrot.lane.b32.xlu2 %v3683_v15, %s4107_s9  ;;  %v1231_v40 = vpop.permute.xlu1 %1230  ;;  %s3366_s9 = sshll.u32 %s4110_s27, 4  ;;  %s3367_s9 = int_to_ptr.vmem [resolvable:$true] %s3366_s9 }
 0x2c0   :  { %vm1299_vm8 = vcmp.eq.f32.partialorder %v1231_v40, %v4910_v16 }
 0x2c1   :  { %v734_v58 = vpop.permute.xlu0 %733  ;;  %v1266_v59 = vpop.permute.xlu2 %1265  ;;  %v4936_v4 = vsel %vm1299_vm8, 1.0, %v6361_v10 }
 0x2c2   :  { %vm1306_vm9 = vcmp.eq.f32.partialorder %v1266_v59, %v4910_v16  ;;  %3424 = vmatpush.xpose.msk.msrb.mxu1 %vm231_vm1, %v738_v45  ;;  %3562 = vmatpush.xpose.msk.msra.mxu2 %vm231_vm1, %v738_v45  ;;  %v4961_v45 = vld [vmem:[%s6445_s29] ss:$0 sm:$0xff] }
 0x2c3   :  { %v4942_v62 = vsel %vm1306_vm9, 1.0, %v6361_v10  ;;  %v660_v63 = vmul.f32 %v4961_v45, %v4704_v3 }
 0x2c4   :  { %6442 = vst [vmem:[#allocation23_spill] sm:$0xff] %v4942_v62 }
 0x2c6   :  { %3425 = vmatpush.xpose.msk.msrb.mxu1 %vm231_vm1, %v736_v56  ;;  %3563 = vmatpush.xpose.msk.msra.mxu2 %vm231_vm1, %v736_v56  ;;  %v651_v56 = vmul.f32 %v4961_v45, %v4741_v29 }
 0x2c7   :  { %v1256_v15 = vpop.permute.xlu1 %1255 }
 0x2c8   :  { %vm1304_vm10 = vcmp.eq.f32.partialorder %v1256_v15, %v4910_v16  ;;  %v666_v15 = vmul.f32 %v4961_v45, %v4696_v44 }
 0x2c9   :  { %v4947_v35 = vpop.permute.xlu0 %1225  ;;  %v1291_v40 = vpop.permute.xlu2 %1290  ;;  %v4950_v49 = vsel %vm1304_vm10, 1.0, %v6361_v10 }
 0x2ca   :  { %6443 = vst [vmem:[#allocation24_spill] sm:$0xff] %v4950_v49  ;;  %vm1311_vm11 = vcmp.eq.f32.partialorder %v1291_v40, %v4910_v16  ;;  %3426 = vmatpush.xpose.msk.msrb.mxu1 %vm231_vm1, %v734_v58  ;;  %3564 = vmatpush.xpose.msk.msra.mxu2 %vm231_vm1, %v734_v58  ;;  %vm1298_vm6 = vcmp.eq.f32.partialorder %v4947_v35, %v4910_v16 }
 0x2cb   :  { %v4956_v59 = vsel %vm1311_vm11, 1.0, %v6361_v10 }
 0x2cc   :  { %6444 = vst [vmem:[#allocation25_spill] sm:$0xff] %v4956_v59 }
 0x2ce   :  { %3427 = vmatpush.xpose.msk.msrb.mxu1 %vm231_vm1, %v732_v6  ;;  %3565 = vmatpush.xpose.msk.msra.mxu2 %vm231_vm1, %v732_v6 }
 0x2cf   :  { %v1271_v58 = vpop.permute.xlu1 %1270 }
 0x2d0   :  { %vm1307_vm12 = vcmp.eq.f32.partialorder %v1271_v58, %v4910_v16 }
 0x2d1   :  { %v1236_v40 = vpop.permute.xlu0 %1235  ;;  %3428 = vmatmul.msk.f32.vlgmr.msrb.gmra.mxu1 %vm231_vm1, %v651_v56  ;;  %3443 = vmatmul.msk.f32.vlgmr.msra.gmra.mxu2 %vm231_vm1, %v666_v15  ;;  %v4972_v10 = vpop.permute.xlu2 %3584  ;;  %v4975_v43 = vsel %vm1307_vm12, 1.0, %v6446_v50  ;;  %v652_v56 = vmul.f32 %v4961_v45, %v4755_v0 }
 0x2d2   :  { %2186 = vmatpush.msra.mxu1 %v2055_v23  ;;  %6447 = vst [vmem:[#allocation26_spill] sm:$0xff] %v4975_v43  ;;  %vm1300_vm13 = vcmp.eq.f32.partialorder %v1236_v40, %v4910_v16  ;;  %v4985_v23 = vld [vmem:[%s6445_s29 + $0x1] ss:$0 sm:$0xff] }
 0x2d3   :  { %v4979_v6 = vsel %vm1300_vm13, 1.0, %v6446_v50  ;;  %v667_v15 = vmul.f32 %v4985_v23, %v4741_v29  ;;  %v675_v46 = vmul.f32 %v4985_v23, %v4712_v11 }
 0x2d4   :  { %2187 = vmatpush.msra.mxu1 %v2052_v41 }
 0x2d6   :  { %2188 = vmatpush.msra.mxu1 %v4873_v52 }
 0x2d7   :  { %v1276_v58 = vpop.permute.xlu1 %1275 }
 0x2d8   :  { %2189 = vmatpush.msra.mxu1 %v4878_v61  ;;  %vm1308_vm14 = vcmp.eq.f32.partialorder %v1276_v58, %v4910_v16 }
 0x2d9   :  { %v1246_v41 = vpop.permute.xlu0 %1245  ;;  %3429 = vmatmul.msk.f32.gmra.mxu1 %vm231_vm1, %v652_v56  ;;  %3444 = vmatmul.msk.f32.gmra.mxu2 %vm231_vm1, %v667_v15  ;;  %v4996_v52 = vpop.permute.xlu2 %3599  ;;  %v4999_v61 = vsel %vm1308_vm14, 1.0, %v6446_v50  ;;  %v668_v56 = vmul.f32 %v4985_v23, %v4755_v0 }
 0x2da   :  { %2190 = vmatpush.msra.mxu1 %v4857_v2  ;;  %6448 = vst [vmem:[#allocation27_spill] sm:$0xff] %v4999_v61  ;;  %vm1302_vm15 = vcmp.eq.f32.partialorder %v1246_v41, %v4910_v16  ;;  %v653_v2 = vmul.f32 %v4961_v45, %v4726_v13  ;;  %v669_v41 = vmul.f32 %v4985_v23, %v4726_v13 }
 0x2db   :  { %v5004_v40 = vsel %vm1302_vm15, 1.0, %v6446_v50 }
 0x2dc   :  { %2191 = vmatpush.msra.mxu1 %v4863_v53 }
 0x2de   :  { %2192 = vmatpush.msra.mxu1 %v4854_v42 }
 0x2df   :  { %v1281_v15 = vpop.permute.xlu1 %1280 }
 0x2e0   :  { %2193 = vmatpush.msra.mxu1 %v4860_v21  ;;  %vm1309_vm0 = vcmp.eq.f32.partialorder %v1281_v15, %v4910_v16 }
 0x2e1   :  { %v1261_v58 = vpop.permute.xlu0 %1260  ;;  %3430 = vmatmul.msk.f32.gmra.mxu1 %vm231_vm1, %v653_v2  ;;  %3445 = vmatmul.msk.f32.gmra.mxu2 %vm231_vm1, %v668_v56  ;;  %v5016_v53 = vpop.permute.xlu2 %3604  ;;  %v5019_v42 = vsel %vm1309_vm0, 1.0, %v6446_v50 }
 0x2e2   :  { %2194 = vmatpush.msra.mxu1 %v4843_v31  ;;  %6449 = vst [vmem:[#allocation28_spill] sm:$0xff] %v5019_v42  ;;  %vm1305_vm2 = vcmp.eq.f32.partialorder %v1261_v58, %v4910_v16  ;;  %v654_v31 = vmul.f32 %v4961_v45, %v4728_v34  ;;  %v656_v58 = vmul.f32 %v4961_v45, %v4718_v17 }
 0x2e3   :  { %v5024_v21 = vsel %vm1305_vm2, 1.0, %v6446_v50 }
 0x2e4   :  { %2195 = vmatpush.msra.mxu1 %v4846_v48 }
 0x2e6   :  { %2196 = vmatpush.msra.mxu1 %v4822_v7 }
 0x2e7   :  { %v5032_v2 = vpop.permute.xlu1 %3579 }
 0x2e8   :  { %2197 = vmatpush.msra.mxu1 %v4829_v24  ;;  %v670_v24 = vmul.f32 %v4985_v23, %v4728_v34 }
 0x2e9   :  { %v1286_v56 = vpop.permute.xlu0 %1285  ;;  %3431 = vmatmul.msk.f32.gmra.mxu1 %vm231_vm1, %v654_v31  ;;  %3446 = vmatmul.msk.f32.gmra.mxu2 %vm231_vm1, %v669_v41  ;;  %v5037_v48 = vpop.permute.xlu2 %3614 }
 0x2ea   :  { %2198 = vmatpush.msra.mxu1 %v4819_v14  ;;  %vm1310_vm3 = vcmp.eq.f32.partialorder %v1286_v56, %v4910_v16  ;;  %v655_v14 = vmul.f32 %v4961_v45, %v4743_v47  ;;  %v657_v56 = vmul.f32 %v4961_v45, %v4720_v27 }
 0x2eb   :  { %v5042_v7 = vsel %vm1310_vm3, 1.0, %v6446_v50 }
 0x2ec   :  { %2199 = vmatpush.msra.mxu1 %v4826_v39  ;;  %6450 = vst [vmem:[#allocation29_spill] sm:$0xff] %v5042_v7 }
 0x2ee   :  { %2200 = vmatpush.msra.mxu1 %v4801_v32  ;;  %v671_v32 = vmul.f32 %v4985_v23, %v4743_v47 }
 0x2ef   :  { %v5050_v15 = vpop.permute.xlu1 %3589 }
 0x2f0   :  { %2201 = vmatpush.msra.mxu1 %v4805_v51 }
 0x2f1   :  { %3432 = vmatmul.msk.f32.gmra.mxu1 %vm231_vm1, %v655_v14  ;;  %3447 = vmatmul.msk.f32.gmra.mxu2 %vm231_vm1, %v670_v24  ;;  %v5054_v39 = vpop.permute.xlu2 %3624  ;;  %v5064_v41 = vpop.permute.xlu0 %3594  ;;  %v672_v14 = vmul.f32 %v4985_v23, %v4718_v17 }
 0x2f7   :  { %v5060_v51 = vpop.permute.xlu1 %3609 }
 0x2f9   :  { %3433 = vmatmul.msk.f32.gmra.mxu1 %vm231_vm1, %v656_v58  ;;  %3448 = vmatmul.msk.f32.gmra.mxu2 %vm231_vm1, %v671_v32  ;;  %v3630_v31 = vpop.permute.xlu2 %3629  ;;  %v5074_v33 = vpop.permute.xlu0 %3619  ;;  %v658_v58 = vmul.f32 %v4961_v45, %v4730_v55  ;;  %v673_v32 = vmul.f32 %v4985_v23, %v4720_v27 }
 0x2fa   :  { %v3631_v49 = vunpack.i.l.bf16 %v3630_v31 }
 0x2ff   :  { %v5070_v24 = vpop.permute.xlu1 %3634 }
 0x301   :  { %3434 = vmatmul.msk.f32.gmra.mxu1 %vm231_vm1, %v657_v56  ;;  %3449 = vmatmul.msk.f32.gmra.mxu2 %vm231_vm1, %v672_v14  ;;  %v3645_v38 = vpop.permute.xlu2 %3644  ;;  %v659_v56 = vmul.f32 %v4961_v45, %v4712_v11  ;;  %v674_v14 = vmul.f32 %v4985_v23, %v4730_v55  ;;  %v3650_v30 = vpop.permute.xlu0 %3649 }
 0x302   :  { %v3646_v61 = vunpack.i.l.bf16 %v3645_v38 }
 0x307   :  { %v5080_v28 = vpop.permute.xlu1 %3639 }
 0x309   :  { %3435 = vmatmul.msk.f32.gmra.mxu1 %vm231_vm1, %v658_v58  ;;  %3450 = vmatmul.msk.f32.gmra.mxu2 %vm231_vm1, %v673_v32  ;;  %v5084_v26 = vpop.permute.xlu2 %3654 }
 0x30f   :  { %v3660_v12 = vpop.permute.xlu1 %3659 }
 0x310   :  { %v3661_v32 = vunpack.i.l.bf16 %v3660_v12  ;;  %v3662_v54 = vunpack.i.h.bf16 %v3660_v12  ;;  %v661_v12 = vmul.f32 %v4961_v45, %v4684_v19 }
 0x311   :  { %3436 = vmatmul.msk.f32.gmra.mxu1 %vm231_vm1, %v659_v56  ;;  %3451 = vmatmul.msk.f32.gmra.mxu2 %vm231_vm1, %v674_v14  ;;  %v3675_v22 = vpop.permute.xlu2 %3674 }
 0x312   :  { %v3676_v9 = vunpack.i.l.bf16 %v3675_v22  ;;  %v3677_v58 = vunpack.i.h.bf16 %v3675_v22 }
 0x314   :  { %2121 = vmatpush.msrb.mxu0 %v3676_v9  ;;  %v3665_v9 = vpop.permute.xlu0 %3664 }
 0x315   :  { %v3666_v43 = vunpack.i.l.bf16 %v3665_v9 }
 0x316   :  { %2122 = vmatpush.msrb.mxu0 %v3677_v58  ;;  %v3647_v58 = vunpack.i.h.bf16 %v3645_v38  ;;  %v3616_v38 = vunpack.i.l.bf16 %v5037_v48 }
 0x318   :  { %2123 = vmatpush.msrb.mxu0 %v3661_v32  ;;  %v3652_v32 = vunpack.i.h.bf16 %v3650_v30 }
 0x319   :  { %3437 = vmatmul.msk.f32.gmra.mxu1 %vm231_vm1, %v660_v63  ;;  %3452 = vmatmul.msk.f32.gmra.mxu2 %vm231_vm1, %v675_v46  ;;  %v3680_v56 = vpop.permute.xlu2 %3679  ;;  %v676_v63 = vmul.f32 %v4985_v23, %v4704_v3  ;;  %v3667_v46 = vunpack.i.h.bf16 %v3665_v9  ;;  %v3636_v9 = vunpack.i.l.bf16 %v5070_v24 }
 0x31a   :  { %v3681_v14 = vunpack.i.l.bf16 %v3680_v56  ;;  %2124 = vmatpush.msrb.mxu0 %v3662_v54  ;;  %v3682_v22 = vunpack.i.h.bf16 %v3680_v56  ;;  %v3632_v54 = vunpack.i.h.bf16 %v3630_v31  ;;  %v3670_v56 = vpop.permute.xlu1 %3669  ;;  %v677_v31 = vmul.f32 %v4985_v23, %v4684_v19 }
 0x31c   :  { %2125 = vmatpush.msrb.mxu0 %v3646_v61  ;;  %2299 = vmatpush.msra.mxu3 %v3681_v14  ;;  %v3651_v61 = vunpack.i.l.bf16 %v3650_v30  ;;  %v3617_v14 = vunpack.i.h.bf16 %v5037_v48  ;;  %v3602_v30 = vunpack.i.h.bf16 %v4996_v52  ;;  %v3621_v48 = vunpack.i.l.bf16 %v5074_v33 }
 0x31e   :  { %2126 = vmatpush.msrb.mxu0 %v3647_v58  ;;  %2300 = vmatpush.msra.mxu3 %v3682_v22  ;;  %v3637_v22 = vunpack.i.h.bf16 %v5070_v24  ;;  %v3591_v58 = vunpack.i.l.bf16 %v5050_v15  ;;  %v3592_v24 = vunpack.i.h.bf16 %v5050_v15 }
 0x320   :  { %2127 = vmatpush.msrb.mxu0 %v3631_v49  ;;  %2301 = vmatpush.msra.mxu3 %v3666_v43  ;;  %v3601_v43 = vunpack.i.l.bf16 %v4996_v52  ;;  %v662_v49 = vmul.f32 %v4961_v45, %v4706_v5  ;;  %v3581_v52 = vunpack.i.l.bf16 %v5032_v2 }
 0x321   :  { %3438 = vmatmul.msk.f32.gmra.mxu1 %vm231_vm1, %v661_v12  ;;  %3453 = vmatmul.msk.f32.gmra.mxu2 %vm231_vm1, %v676_v63  ;;  %v3622_v12 = vunpack.i.h.bf16 %v5074_v33  ;;  %v3606_v63 = vunpack.i.l.bf16 %v5016_v53  ;;  %v3582_v33 = vunpack.i.h.bf16 %v5032_v2  ;;  %v664_v2 = vmul.f32 %v4961_v45, %v4678_v57 }
 0x322   :  { %2128 = vmatpush.msrb.mxu0 %v3632_v54  ;;  %2302 = vmatpush.msra.mxu3 %v3667_v46  ;;  %v3685_v46 = vpop.permute.xlu1 %3684  ;;  %v663_v54 = vmul.f32 %v4961_v45, %v4694_v1 }
 0x323   :  { %v3686_v15 = vunpack.i.l.bf16 %v3685_v46 }
 0x324   :  { %2129 = vmatpush.msrb.mxu0 %v3616_v38  ;;  %2303 = vmatpush.msra.mxu3 %v3651_v61  ;;  %v678_v61 = vmul.f32 %v4985_v23, %v4706_v5  ;;  %v3607_v38 = vunpack.i.h.bf16 %v5016_v53  ;;  %v3586_v53 = vunpack.i.l.bf16 %v4972_v10 }
 0x326   :  { %2130 = vmatpush.msrb.mxu0 %v3617_v14  ;;  %2304 = vmatpush.msra.mxu3 %v3652_v32  ;;  %v3596_v32 = vunpack.i.l.bf16 %v5064_v41  ;;  %v3687_v14 = vunpack.i.h.bf16 %v3685_v46 }
 0x328   :  { %2131 = vmatpush.msrb.mxu0 %v3601_v43  ;;  %2305 = vmatpush.msra.mxu3 %v3636_v9  ;;  %v3597_v9 = vunpack.i.h.bf16 %v5064_v41  ;;  %v3671_v43 = vunpack.i.l.bf16 %v3670_v56  ;;  %v3656_v41 = vunpack.i.l.bf16 %v5084_v26 }
 0x329   :  { %3439 = vmatmul.msk.f32.gmra.mxu1 %vm231_vm1, %v662_v49  ;;  %3454 = vmatmul.msk.f32.gmra.mxu2 %vm231_vm1, %v677_v31  ;;  %v679_v49 = vmul.f32 %v4985_v23, %v4694_v1  ;;  %v3587_v31 = vunpack.i.h.bf16 %v4972_v10  ;;  %v680_v10 = vmul.f32 %v4985_v23, %v4678_v57 }
 0x32a   :  { %2132 = vmatpush.msrb.mxu0 %v3602_v30  ;;  %2306 = vmatpush.msra.mxu3 %v3637_v22  ;;  %v3672_v22 = vunpack.i.h.bf16 %v3670_v56  ;;  %v3657_v30 = vunpack.i.h.bf16 %v5084_v26  ;;  %v3642_v56 = vunpack.i.h.bf16 %v5080_v28  ;;  %v3627_v26 = vunpack.i.h.bf16 %v5054_v39 }
 0x32c   :  { %2133 = vmatpush.msrb.mxu0 %v3591_v58  ;;  %2307 = vmatpush.msra.mxu3 %v3621_v48  ;;  %v3641_v48 = vunpack.i.l.bf16 %v5080_v28  ;;  %v665_v58 = vmul.f32 %v4961_v45, %v4688_v60  ;;  %v681_v45 = vmul.f32 %v4985_v23, %v4688_v60 }
 0x32e   :  { %2134 = vmatpush.msrb.mxu0 %v3592_v24  ;;  %2308 = vmatpush.msra.mxu3 %v3622_v12  ;;  %v3626_v12 = vunpack.i.l.bf16 %v5054_v39  ;;  %v3611_v24 = vunpack.i.l.bf16 %v5060_v51  ;;  %v682_v39 = vmul.f32 %v4985_v23, %v4696_v44 }
 0x330   :  { %2135 = vmatpush.msrb.mxu0 %v3581_v52  ;;  %2309 = vmatpush.msra.mxu3 %v3606_v63  ;;  %v3612_v63 = vunpack.i.h.bf16 %v5060_v51  ;;  %v5168_v52 = vld [vmem:[%s6445_s29 + $0x2] ss:$0 sm:$0xff] }
 0x331   :  { %3440 = vmatmul.msk.f32.gmra.mxu1 %vm231_vm1, %v663_v54  ;;  %3455 = vmatmul.msk.f32.gmra.mxu2 %vm231_vm1, %v678_v61  ;;  %v683_v54 = vmul.f32 %v5168_v52, %v4741_v29 }
 0x332   :  { %2136 = vmatpush.msrb.mxu0 %v3582_v33  ;;  %2310 = vmatpush.msra.mxu3 %v3607_v38  ;;  %v684_v38 = vmul.f32 %v5168_v52, %v4755_v0 }
 0x334   :  { %2428 = vmatpush.msra.mxu0 %v3686_v15  ;;  %2311 = vmatpush.msra.mxu3 %v3596_v32  ;;  %v685_v32 = vmul.f32 %v5168_v52, %v4726_v13 }
 0x336   :  { %2429 = vmatpush.msra.mxu0 %v3687_v14  ;;  %2312 = vmatpush.msra.mxu3 %v3597_v9 }
 0x338   :  { %2430 = vmatpush.msra.mxu0 %v3671_v43  ;;  %2313 = vmatpush.msra.mxu3 %v3586_v53  ;;  %v686_v43 = vmul.f32 %v5168_v52, %v4728_v34 }
 0x339   :  { %3441 = vmatmul.msk.f32.gmra.mxu1 %vm231_vm1, %v664_v2  ;;  %3456 = vmatmul.msk.f32.gmra.mxu2 %vm231_vm1, %v679_v49  ;;  %v687_v2 = vmul.f32 %v5168_v52, %v4743_v47 }
 0x33a   :  { %2431 = vmatpush.msra.mxu0 %v3672_v22  ;;  %2314 = vmatpush.msra.mxu3 %v3587_v31  ;;  %v688_v22 = vmul.f32 %v5168_v52, %v4718_v17 }
 0x33c   :  { %2432 = vmatpush.msra.mxu0 %v3656_v41 }
 0x33e   :  { %2433 = vmatpush.msra.mxu0 %v3657_v30 }
 0x340   :  { %2434 = vmatpush.msra.mxu0 %v3641_v48  ;;  %v689_v48 = vmul.f32 %v5168_v52, %v4720_v27 }
 0x341   :  { %3442 = vmatmul.msk.f32.gmra.mxu1 %vm231_vm1, %v665_v58  ;;  %3457 = vmatmul.msk.f32.gmra.mxu2 %vm231_vm1, %v680_v10 }
 0x342   :  { %2435 = vmatpush.msra.mxu0 %v3642_v56  ;;  %v690_v56 = vmul.f32 %v5168_v52, %v4730_v55 }
 0x344   :  { %2436 = vmatpush.msra.mxu0 %v3626_v12 }
 0x346   :  { %2437 = vmatpush.msra.mxu0 %v3627_v26  ;;  %v691_v26 = vmul.f32 %v5168_v52, %v4712_v11 }
 0x348   :  { %2438 = vmatpush.msra.mxu0 %v3611_v24 }
 0x349   :  { %3458 = vmatmul.msk.f32.gmra.mxu2 %vm231_vm1, %v681_v45  ;;  %v692_v45 = vmul.f32 %v5168_v52, %v4704_v3 }
 0x34a   :  { %2439 = vmatpush.msra.mxu0 %v3612_v63 }
 0x34e   :  { %v5157_v28 = vpop.f32.mrf.mxu1 }
 0x34f   :  { %1344 = vmax.xlane.f32.xlu2 %v5157_v28 }
 0x351   :  { %3459 = vmatmul.msk.f32.gmra.mxu2 %vm231_vm1, %v682_v39  ;;  %v693_v39 = vmul.f32 %v5168_v52, %v4684_v19 }
 0x354   :  { %v5163_v46 = vpop.f32.mrf.mxu2 }
 0x355   :  { %6451 = vst [vmem:[#allocation30_spill] sm:$0xff] %v5163_v46  ;;  %v5301_v46 = vld [vmem:[%s6445_s29 + $0x3] ss:$0 sm:$0xff] }
 0x356   :  { %v5170_v51 = vpop.f32.mrf.mxu1 }
 0x357   :  { %1346 = vmax.xlane.f32.xlu1 %v5170_v51 }
 0x359   :  { %3460 = vmatmul.msk.f32.gmra.mxu2 %vm231_vm1, %v683_v54 }
 0x35c   :  { %v5176_v61 = vpop.f32.mrf.mxu2 }
 0x35e   :  { %v5178_v23 = vpop.f32.mrf.mxu1 }
 0x35f   :  { %1376 = vmax.xlane.f32.xlu1 %v5176_v61 }
 0x361   :  { %3461 = vmatmul.msk.f32.gmra.mxu2 %vm231_vm1, %v684_v38  ;;  %v694_v38 = vmul.f32 %v5168_v52, %v4706_v5 }
 0x364   :  { %v5184_v33 = vpop.f32.mrf.mxu2 }
 0x365   :  { %1378 = vmax.xlane.f32.xlu0 %v5184_v33 }
 0x366   :  { %v5187_v15 = vpop.f32.mrf.mxu1 }
 0x367   :  { %1348 = vmax.xlane.f32.xlu1 %v5178_v23 }
 0x369   :  { %3462 = vmatmul.msk.f32.gmra.mxu2 %vm231_vm1, %v685_v32 }
 0x36c   :  { %v5193_v14 = vpop.f32.mrf.mxu2 }
 0x36d   :  { %1380 = vmax.xlane.f32.xlu2 %v5193_v14 }
 0x36e   :  { %v5196_v9 = vpop.f32.mrf.mxu1 }
 0x36f   :  { %1350 = vmax.xlane.f32.xlu1 %v5187_v15 }
 0x371   :  { %3463 = vmatmul.msk.f32.gmra.mxu2 %vm231_vm1, %v686_v43  ;;  %v695_v43 = vmul.f32 %v5168_v52, %v4694_v1 }
 0x374   :  { %v5202_v53 = vpop.f32.mrf.mxu2 }
 0x375   :  { %1382 = vmax.xlane.f32.xlu0 %v5202_v53 }
 0x376   :  { %v5208_v49 = vpop.f32.mrf.mxu1 }
 0x377   :  { %1352 = vmax.xlane.f32.xlu1 %v5196_v9  ;;  %6452 = vst [vmem:[#allocation31_spill] sm:$0xff] %v5208_v49 }
 0x379   :  { %3464 = vmatmul.msk.f32.gmra.mxu2 %vm231_vm1, %v687_v2 }
 0x37c   :  { %v5211_v31 = vpop.f32.mrf.mxu2 }
 0x37d   :  { %1384 = vmax.xlane.f32.xlu2 %v5211_v31  ;;  %1354 = vmax.xlane.f32.xlu0 %v5208_v49 }
 0x37e   :  { %v5218_v41 = vpop.f32.mrf.mxu1 }
 0x37f   :  { %6453 = vst [vmem:[#allocation32_spill] sm:$0xff] %v5218_v41 }
 0x381   :  { %3465 = vmatmul.msk.f32.gmra.mxu2 %vm231_vm1, %v688_v22  ;;  %v696_v22 = vmul.f32 %v5168_v52, %v4678_v57 }
 0x384   :  { %v5220_v30 = vpop.f32.mrf.mxu2 }
 0x385   :  { %1386 = vmax.xlane.f32.xlu1 %v5220_v30  ;;  %1356 = vmax.xlane.f32.xlu0 %v5218_v41 }
 0x386   :  { %v5227_v58 = vpop.f32.mrf.mxu1 }
 0x387   :  { %6454 = vst [vmem:[#allocation33_spill] sm:$0xff] %v5227_v58 }
 0x389   :  { %3466 = vmatmul.msk.f32.gmra.mxu2 %vm231_vm1, %v689_v48 }
 0x38c   :  { %v5229_v10 = vpop.f32.mrf.mxu2 }
 0x38d   :  { %1388 = vmax.xlane.f32.xlu0 %v5229_v10  ;;  %1358 = vmax.xlane.f32.xlu1 %v5227_v58 }
 0x38e   :  { %v5331_v37 = vpop.f32.mrf.mxu1 }
 0x38f   :  { %6457 = vst [vmem:[#allocation36_spill] sm:$0xff] %v5331_v37 }
 0x391   :  { %3467 = vmatmul.msk.f32.gmra.mxu2 %vm231_vm1, %v690_v56 }
 0x394   :  { %v5236_v12 = vpop.f32.mrf.mxu2 }
 0x395   :  { %1390 = vmax.xlane.f32.xlu2 %v5236_v12 }
 0x396   :  { %v5355_v16 = vpop.f32.mrf.mxu1 }
 0x397   :  { %6458 = vst [vmem:[#allocation37_spill] sm:$0xff] %v5355_v16 }
 0x399   :  { %3468 = vmatmul.msk.f32.gmra.mxu2 %vm231_vm1, %v691_v26 }
 0x39c   :  { %v5242_v24 = vpop.f32.mrf.mxu2 }
 0x39d   :  { %1392 = vmax.xlane.f32.xlu1 %v5242_v24 }
 0x3a1   :  { %3469 = vmatmul.msk.f32.gmra.mxu2 %vm231_vm1, %v692_v45 }
 0x3a4   :  { %v5248_v63 = vpop.f32.mrf.mxu2 }
 0x3a5   :  { %1394 = vmax.xlane.f32.xlu0 %v5248_v63 }
 0x3a9   :  { %3470 = vmatmul.msk.f32.gmra.mxu2 %vm231_vm1, %v693_v39  ;;  %v697_v39 = vmul.f32 %v5168_v52, %v4688_v60 }
 0x3ac   :  { %v5254_v54 = vpop.f32.mrf.mxu2 }
 0x3ad   :  { %1396 = vmax.xlane.f32.xlu0 %v5254_v54 }
 0x3b1   :  { %3471 = vmatmul.msk.f32.gmra.mxu2 %vm231_vm1, %v694_v38 }
 0x3b4   :  { %v5260_v32 = vpop.f32.mrf.mxu2 }
 0x3b5   :  { %6455 = vst [vmem:[#allocation34_spill] sm:$0xff] %v5260_v32  ;;  %1398 = vmax.xlane.f32.xlu2 %v5260_v32 }
 0x3b9   :  { %3472 = vmatmul.msk.f32.gmra.mxu2 %vm231_vm1, %v695_v43 }
 0x3bc   :  { %v5266_v2 = vpop.f32.mrf.mxu2 }
 0x3bd   :  { %6456 = vst [vmem:[#allocation35_spill] sm:$0xff] %v5266_v2  ;;  %1400 = vmax.xlane.f32.xlu2 %v5266_v2 }
 0x3c1   :  { %3473 = vmatmul.msk.f32.gmra.mxu2 %vm231_vm1, %v696_v22 }
 0x3c2   :  { %v1345_v48 = vpop.xlane.xlu2 %1344 }
 0x3c3   :  { %v1472_v56 = vsub.f32 %v5157_v28, %v1345_v48  ;;  %v5284_v28 = vsel %vm1296_vm4, 1.0, %v6446_v50 }
 0x3c4   :  { %v5273_v26 = vpop.f32.mrf.mxu2 }
 0x3c5   :  { %v1536_v45 = vmul.f32 1.442695, %v1472_v56  ;;  %1402 = vmax.xlane.f32.xlu0 %v5273_v26  ;;  %v698_v56 = vmul.f32 %v5168_v52, %v4696_v44  ;;  %v699_v52 = vmul.f32 %v5301_v46, %v4741_v29  ;;  %v700_v29 = vmul.f32 %v5301_v46, %v4755_v0 }
 0x3c7   :  { %3746 = vpow2.f32 %v1536_v45 }
 0x3c9   :  { %3474 = vmatmul.msk.f32.gmra.mxu2 %vm231_vm1, %v697_v39 }
 0x3ca   :  { %v1347_v38 = vpop.xlane.xlu1 %1346 }
 0x3cc   :  { %v5281_v43 = vpop.f32.mrf.mxu2 }
 0x3cd   :  { %v3747_v22 = vpop.eup %3746  ;;  %1404 = vmax.xlane.f32.xlu2 %v5281_v43 }
 0x3ce   :  { %v5288_v48 = vmul.f32 %v3747_v22, %v5284_v28 }
 0x3d0   :  { %1728 = vadd.xlane.f32.xlu0 %v5288_v48 }
 0x3d1   :  { %3475 = vmatmul.msk.f32.gmra.mxu2 %vm231_vm1, %v698_v56  ;;  %v1473_v56 = vsub.f32 %v5170_v51, %v1347_v38 }
 0x3d2   :  { %v1377_v18 = vpop.xlane.xlu1 %1376 }
 0x3d3   :  { %v1488_v45 = vsub.f32 %v5176_v61, %v1377_v18  ;;  %v1538_v32 = vmul.f32 1.442695, %v1473_v56 }
 0x3d4   :  { %v5295_v39 = vpop.f32.mrf.mxu2 }
 0x3d5   :  { %1406 = vmax.xlane.f32.xlu2 %v5295_v39  ;;  %v1568_v22 = vmul.f32 1.442695, %v1488_v45 }
 0x3d7   :  { %3748 = vpow2.f32 %v1568_v22 }
 0x3d8   :  { %v1379_v58 = vpop.xlane.xlu0 %1378 }
 0x3d9   :  { %v1489_v41 = vsub.f32 %v5184_v33, %v1379_v58  ;;  %3476 = vmatmul.msk.f32.gmra.mxu2 %vm231_vm1, %v699_v52 }
 0x3da   :  { %v1349_v61 = vpop.xlane.xlu1 %1348 }
 0x3db   :  { %v1570_v18 = vmul.f32 1.442695, %v1489_v41  ;;  %v1474_v49 = vsub.f32 %v5178_v23, %v1349_v61  ;;  %v5319_v41 = vsel %vm1297_vm5, 1.0, %v6446_v50  ;;  %v5340_v61 = vsel %vm1298_vm6, 1.0, %v6446_v50 }
 0x3dc   :  { %v5309_v2 = vpop.f32.mrf.mxu2 }
 0x3dd   :  { %3750 = vpow2.f32 %v1570_v18  ;;  %1408 = vmax.xlane.f32.xlu1 %v5309_v2  ;;  %v1540_v45 = vmul.f32 1.442695, %v1474_v49  ;;  %v3749_v33 = vpop.eup %3748 }
 0x3de   :  { %v5322_v49 = vmul.f32 %v3749_v33, %v5284_v28 }
 0x3df   :  { %3752 = vpow2.f32 %v1540_v45 }
 0x3e0   :  { %v1381_v58 = vpop.xlane.xlu2 %1380  ;;  %3754 = vpow2.f32 %v1538_v32  ;;  %v701_v32 = vmul.f32 %v5301_v46, %v4726_v13  ;;  %v702_v13 = vmul.f32 %v5301_v46, %v4728_v34  ;;  %v703_v34 = vmul.f32 %v5301_v46, %v4743_v47 }
 0x3e1   :  { %3477 = vmatmul.msk.f32.gmra.mxu2 %vm231_vm1, %v700_v29  ;;  %v1490_v51 = vsub.f32 %v5193_v14, %v1381_v58  ;;  %v5369_v58 = vpop.f32.mrf.mxu1 }
 0x3e2   :  { %6459 = vst [vmem:[#allocation38_spill] sm:$0xff] %v5369_v58 }
 0x3e3   :  { %v3751_v23 = vpop.eup %3750  ;;  %v1572_v14 = vmul.f32 1.442695, %v1490_v51 }
 0x3e4   :  { %v5324_v38 = vpop.f32.mrf.mxu2  ;;  %v5327_v0 = vmul.f32 %v3751_v23, %v5319_v41  ;;  %v704_v23 = vmul.f32 %v5301_v46, %v4718_v17 }
 0x3e5   :  { %1410 = vmax.xlane.f32.xlu2 %v5324_v38  ;;  %1760 = vadd.xlane.f32.xlu1 %v5322_v49  ;;  %v3753_v22 = vpop.eup %3752  ;;  %3756 = vpow2.f32 %v1572_v14 }
 0x3e6   :  { %1762 = vadd.xlane.f32.xlu0 %v5327_v0  ;;  %v3755_v52 = vpop.eup %3754  ;;  %v5343_v56 = vmul.f32 %v3753_v22, %v5340_v61 }
 0x3e7   :  { %v5348_v45 = vmul.f32 %v3755_v52, %v5319_v41  ;;  %v705_v52 = vmul.f32 %v5301_v46, %v4720_v27  ;;  %v706_v27 = vmul.f32 %v5301_v46, %v4730_v55 }
 0x3e8   :  { %v1383_v33 = vpop.xlane.xlu0 %1382 }
 0x3e9   :  { %3478 = vmatmul.msk.f32.gmra.mxu2 %vm231_vm1, %v701_v32  ;;  %v5379_v32 = vpop.f32.mrf.mxu1 }
 0x3ea   :  { %6460 = vst [vmem:[#allocation39_spill] sm:$0xff] %v5379_v32 }
 0x3eb   :  { %v3757_v50 = vpop.eup %3756 }
 0x3ec   :  { %v5345_v18 = vpop.f32.mrf.mxu2  ;;  %v5359_v35 = vmul.f32 %v3757_v50, %v5340_v61 }
 0x3ed   :  { %1412 = vmax.xlane.f32.xlu2 %v5345_v18  ;;  %1732 = vadd.xlane.f32.xlu1 %v5343_v56 }
 0x3ee   :  { %1730 = vadd.xlane.f32.xlu0 %v5348_v45 }
 0x3f0   :  { %v5376_v14 = vpop.xlane.xlu0 %1354  ;;  %v1385_v47 = vpop.xlane.xlu2 %1384 }
 0x3f1   :  { %3479 = vmatmul.msk.f32.gmra.mxu2 %vm231_vm1, %v702_v13  ;;  %v1492_v13 = vsub.f32 %v5211_v31, %v1385_v47  ;;  %v1351_v31 = vpop.xlane.xlu1 %1350  ;;  %v707_v47 = vmul.f32 %v5301_v46, %v4712_v11 }
 0x3f2   :  { %v1475_v11 = vsub.f32 %v5187_v15, %v1351_v31 }
 0x3f4   :  { %v5361_v29 = vpop.f32.mrf.mxu2 }
 0x3f5   :  { %1362 = vmax.xlane.f32.xlu1 %v5355_v16  ;;  %1764 = vadd.xlane.f32.xlu2 %v5359_v35  ;;  %v1542_v16 = vmul.f32 1.442695, %v1475_v11 }
 0x3f6   :  { %1360 = vmax.xlane.f32.xlu0 %v5331_v37 }
 0x3f8   :  { %v5390_v17 = vpop.xlane.xlu0 %1356 }
 0x3f9   :  { %3480 = vmatmul.msk.f32.gmra.mxu2 %vm231_vm1, %v703_v34  ;;  %6461 = vst [vmem:[#allocation40_spill] sm:$0xff] %v5390_v17  ;;  %v1576_v34 = vmul.f32 1.442695, %v1492_v13 }
 0x3fb   :  { %3758 = vpow2.f32 %v1576_v34  ;;  %v1353_v34 = vpop.xlane.xlu1 %1352 }
 0x3fc   :  { %v5371_v51 = vpop.f32.mrf.mxu2 }
 0x3fd   :  { %1364 = vmax.xlane.f32.xlu1 %v5369_v58 }
 0x401   :  { %3481 = vmatmul.msk.f32.gmra.mxu2 %vm231_vm1, %v704_v23 }
 0x404   :  { %v5381_v22 = vpop.f32.mrf.mxu2 }
 0x405   :  { %1366 = vmax.xlane.f32.xlu1 %v5379_v32  ;;  %v1476_v32 = vsub.f32 %v5196_v9, %v1353_v34  ;;  %v1387_v34 = vpop.xlane.xlu1 %1386 }
 0x409   :  { %3482 = vmatmul.msk.f32.gmra.mxu2 %vm231_vm1, %v705_v52  ;;  %v3759_v52 = vpop.eup %3758 }
 0x40a   :  { %3694 = vrot.lane.b32.xlu0 %v4809_v20, %s4108_s5  ;;  %v5402_v20 = vpop.xlane.xlu0 %1388 }
 0x40c   :  { %v5392_v50 = vpop.f32.mrf.mxu2 }
 0x40d   :  { %1414 = vmax.xlane.f32.xlu1 %v5361_v29  ;;  %3689 = vrot.lane.b32.xlu2 %v4833_v25, %s4108_s5  ;;  %v5409_v25 = vmul.f32 %v3759_v52, %v4979_v6  ;;  %v5422_v52 = vpop.xlane.xlu2 %1390 }
 0x40f   :  { %6462 = vst [vmem:[#allocation41_spill] sm:$0xff] %v5409_v25 }
 0x411   :  { %3483 = vmatmul.msk.f32.gmra.mxu2 %vm231_vm1, %v706_v27  ;;  %v708_v27 = vmul.f32 %v5301_v46, %v4704_v3  ;;  %v1491_v3 = vsub.f32 %v5202_v53, %v1383_v33  ;;  %v710_v53 = vmul.f32 %v5301_v46, %v4706_v5 }
 0x413   :  { %v1574_v31 = vmul.f32 1.442695, %v1491_v3 }
 0x414   :  { %v5400_v23 = vpop.f32.mrf.mxu2 }
 0x415   :  { %1416 = vmax.xlane.f32.xlu1 %v5371_v51 }
 0x418   :  { %v1395_v13 = vpop.xlane.xlu0 %1394 }
 0x419   :  { %3484 = vmatmul.msk.f32.gmra.mxu2 %vm231_vm1, %v707_v47  ;;  %v1544_v47 = vmul.f32 1.442695, %v1476_v32  ;;  %v1497_v15 = vsub.f32 %v5248_v63, %v1395_v13 }
 0x41b   :  { %3760 = vpow2.f32 %v1544_v47  ;;  %v1586_v17 = vmul.f32 1.442695, %v1497_v15 }
 0x41c   :  { %v5411_v55 = vpop.f32.mrf.mxu2  ;;  %3762 = vpow2.f32 %v1542_v16 }
 0x41d   :  { %1768 = vadd.xlane.f32.xlu1 %v5409_v25  ;;  %v709_v25 = vmul.f32 %v5301_v46, %v4684_v19  ;;  %3764 = vpow2.f32 %v1574_v31 }
 0x420   :  { %v1397_v37 = vpop.xlane.xlu0 %1396 }
 0x421   :  { %3485 = vmatmul.msk.f32.gmra.mxu2 %vm231_vm1, %v708_v27  ;;  %v1498_v9 = vsub.f32 %v5254_v54, %v1397_v37  ;;  %v3761_v19 = vpop.eup %3760  ;;  %v1493_v54 = vsub.f32 %v5220_v30, %v1387_v34  ;;  %v711_v30 = vmul.f32 %v5301_v46, %v4694_v1 }
 0x422   :  { %v3763_v33 = vpop.eup %3762  ;;  %v5440_v63 = vmul.f32 %v3761_v19, %v4979_v6 }
 0x423   :  { %v1588_v27 = vmul.f32 1.442695, %v1498_v9  ;;  %v5446_v16 = vmul.f32 %v3763_v33, %v4936_v4  ;;  %v3765_v5 = vpop.eup %3764  ;;  %v1494_v9 = vsub.f32 %v5229_v10, %v5402_v20  ;;  %v712_v20 = vmul.f32 %v5301_v46, %v4678_v57 }
 0x424   :  { %v5419_v58 = vpop.f32.mrf.mxu2  ;;  %v5459_v31 = vmul.f32 %v3765_v5, %v4936_v4 }
 0x425   :  { %1418 = vmax.xlane.f32.xlu1 %v5381_v22  ;;  %3766 = vpow2.f32 %v1588_v27  ;;  %v1580_v19 = vmul.f32 1.442695, %v1494_v9 }
 0x426   :  { %3768 = vpow2.f32 %v1586_v17 }
 0x428   :  { %v5433_v11 = vpop.xlane.xlu2 %1398 }
 0x429   :  { %3486 = vmatmul.msk.f32.gmra.mxu2 %vm231_vm1, %v709_v25  ;;  %v1578_v25 = vmul.f32 1.442695, %v1493_v54 }
 0x42b   :  { %v3767_v13 = vpop.eup %3766  ;;  %3770 = vpow2.f32 %v1578_v25 }
 0x42c   :  { %v5430_v32 = vpop.f32.mrf.mxu2  ;;  %v3769_v3 = vpop.eup %3768  ;;  %v5462_v34 = vmul.f32 %v3767_v13, %v4942_v62  ;;  %3772 = vpow2.f32 %v1580_v19 }
 0x42d   :  { %6463 = vst [vmem:[#allocation42_spill] sm:$0xff] %v5430_v32  ;;  %1420 = vmax.xlane.f32.xlu1 %v5392_v50  ;;  %v5468_v27 = vmul.f32 %v3769_v3, %v5024_v21 }
 0x430   :  { %v5452_v47 = vpop.xlane.xlu2 %1400 }
 0x431   :  { %3487 = vmatmul.msk.f32.gmra.mxu2 %vm231_vm1, %v710_v53  ;;  %v5474_v53 = vpop.xlane.xlu1 %1358 }
 0x434   :  { %v5442_v37 = vpop.f32.mrf.mxu2  ;;  %1736 = vadd.xlane.f32.xlu0 %v5440_v63 }
 0x435   :  { %6464 = vst [vmem:[#allocation43_spill] sm:$0xff] %v5442_v37  ;;  %1426 = vmax.xlane.f32.xlu1 %v5419_v58 }
 0x436   :  { %1734 = vadd.xlane.f32.xlu2 %v5446_v16 }
 0x438   :  { %v1403_v17 = vpop.xlane.xlu0 %1402 }
 0x439   :  { %3488 = vmatmul.msk.f32.gmra.mxu2 %vm231_vm1, %v711_v30  ;;  %v1501_v15 = vsub.f32 %v5273_v26, %v1403_v17  ;;  %v3771_v26 = vpop.eup %3770  ;;  %v1393_v3 = vpop.xlane.xlu1 %1392 }
 0x43a   :  { %v5479_v25 = vmul.f32 %v3771_v26, %v4918_v36  ;;  %v3773_v57 = vpop.eup %3772 }
 0x43b   :  { %v1594_v10 = vmul.f32 1.442695, %v1501_v15  ;;  %v1495_v15 = vsub.f32 %v5236_v12, %v5422_v52  ;;  %v5493_v26 = vmul.f32 %v3773_v57, %v5004_v40 }
 0x43c   :  { %v5464_v1 = vpop.f32.mrf.mxu2  ;;  %1766 = vadd.xlane.f32.xlu0 %v5459_v31 }
 0x43d   :  { %6465 = vst [vmem:[#allocation44_spill] sm:$0xff] %v5464_v1  ;;  %1780 = vadd.xlane.f32.xlu1 %v5462_v34  ;;  %3774 = vpow2.f32 %v1594_v10 }
 0x43e   :  { %1778 = vadd.xlane.f32.xlu2 %v5468_v27 }
 0x440   :  { %v1405_v33 = vpop.xlane.xlu2 %1404 }
 0x441   :  { %v1502_v54 = vsub.f32 %v5281_v43, %v1405_v33  ;;  %3489 = vmatmul.msk.f32.gmra.mxu2 %vm231_vm1, %v712_v20  ;;  %v713_v43 = vmul.f32 %v5301_v46, %v4688_v60 }
 0x443   :  { %v1596_v5 = vmul.f32 1.442695, %v1502_v54  ;;  %v1729_v30 = vpop.xlane.xlu0 %1728  ;;  %v3775_v17 = vpop.eup %3774 }
 0x444   :  { %3776 = vrcp.f32 %v1729_v30  ;;  %v5481_v13 = vpop.f32.mrf.mxu2  ;;  %1770 = vadd.xlane.f32.xlu0 %v5479_v25  ;;  %v5497_v60 = vmul.f32 %v3775_v17, %v5019_v42 }
 0x445   :  { %3778 = vpow2.f32 %v1596_v5  ;;  %1430 = vmax.xlane.f32.xlu1 %v5442_v37 }
 0x446   :  { %1428 = vmax.xlane.f32.xlu2 %v5430_v32 }
 0x448   :  { %v1407_v9 = vpop.xlane.xlu2 %1406 }
 0x449   :  { %v1503_v19 = vsub.f32 %v5295_v39, %v1407_v9  ;;  %3490 = vmatmul.msk.f32.gmra.mxu2 %vm231_vm1, %v713_v43  ;;  %v1582_v39 = vmul.f32 1.442695, %v1495_v15 }
 0x44a   :  { %v3777_v10 = vpop.eup %3776 }
 0x44b   :  { %v3779_v20 = vpop.eup %3778  ;;  %v1598_v33 = vmul.f32 1.442695, %v1503_v19  ;;  %v1920_v54 = vmul.f32 %v3777_v10, %v5288_v48  ;;  %v714_v48 = vmul.f32 %v5301_v46, %v4696_v44  ;;  %v1496_v19 = vsub.f32 %v5242_v24, %v1393_v3 }
 0x44c   :  { %v5499_v5 = vpop.f32.mrf.mxu2  ;;  %1772 = vadd.xlane.f32.xlu0 %v5493_v26  ;;  %v5503_v12 = vmul.f32 %v3779_v20, %v5042_v7 }
 0x44d   :  { %3780 = vpow2.f32 %v1598_v33  ;;  %2202 = vmatmul.f32.vlgmr.msra.gmra.mxu1 %v1920_v54  ;;  %1786 = vadd.xlane.f32.xlu1 %v5497_v60 }
 0x44e   :  { %1788 = vadd.xlane.f32.xlu2 %v5503_v12  ;;  %3782 = vpow2.f32 %v1582_v39 }
 0x450   :  { %v1409_v52 = vpop.xlane.xlu1 %1408 }
 0x451   :  { %v1504_v30 = vsub.f32 %v5309_v2, %v1409_v52  ;;  %3491 = vmatmul.msk.f32.gmra.mxu2 %vm231_vm1, %v714_v48  ;;  %v1584_v52 = vmul.f32 1.442695, %v1496_v19 }
 0x453   :  { %v3781_v57 = vpop.eup %3780  ;;  %v1600_v43 = vmul.f32 1.442695, %v1504_v30 }
 0x454   :  { %v5511_v17 = vpop.f32.mrf.mxu2  ;;  %1422 = vmax.xlane.f32.xlu0 %v5400_v23  ;;  %v5515_v9 = vmul.f32 %v3781_v57, %v4956_v59  ;;  %v3783_v15 = vpop.eup %3782 }
 0x455   :  { %6466 = vst [vmem:[#allocation45_spill] sm:$0xff] %v5511_v17  ;;  %3784 = vpow2.f32 %v1600_v43  ;;  %v5521_v20 = vmul.f32 %v3783_v15, %v4929_v8 }
 0x456   :  { %1790 = vadd.xlane.f32.xlu2 %v5515_v9 }
 0x458   :  { %v1761_v44 = vpop.xlane.xlu1 %1760  ;;  %v1411_v46 = vpop.xlane.xlu2 %1410 }
 0x459   :  { %3786 = vrcp.f32 %v1761_v44  ;;  %v1505_v2 = vsub.f32 %v5324_v38, %v1411_v46  ;;  %v1763_v10 = vpop.xlane.xlu0 %1762  ;;  %v6467_v38 = vld [vmem:[#allocation34_spill] sm:$0xff] }
 0x45a   :  { %v1499_v3 = vsub.f32 %v6467_v38, %v5433_v11 }
 0x45b   :  { %v3785_v33 = vpop.eup %3784  ;;  %v1602_v54 = vmul.f32 1.442695, %v1505_v2 }
 0x45c   :  { %v5523_v39 = vpop.f32.mrf.mxu2  ;;  %1774 = vadd.xlane.f32.xlu0 %v5521_v20  ;;  %v5527_v48 = vmul.f32 %v3785_v33, %v5284_v28  ;;  %v1590_v46 = vmul.f32 1.442695, %v1499_v3 }
 0x45d   :  { %3788 = vpow2.f32 %v1602_v54 }
 0x45e   :  { %1792 = vadd.xlane.f32.xlu1 %v5527_v48  ;;  %3790 = vrcp.f32 %v1763_v10 }
 0x45f   :  { %v3787_v24 = vpop.eup %3786  ;;  %3792 = vpow2.f32 %v1584_v52 }
 0x460   :  { %v1733_v30 = vpop.xlane.xlu1 %1732  ;;  %v1413_v57 = vpop.xlane.xlu2 %1412  ;;  %v1936_v43 = vmul.f32 %v3787_v24, %v5322_v49  ;;  %v6468_v24 = vld [vmem:[#allocation35_spill] sm:$0xff] }
 0x461   :  { %v1731_v15 = vpop.xlane.xlu0 %1730  ;;  %v1500_v38 = vsub.f32 %v6468_v24, %v5452_v47 }
 0x462   :  { %3794 = vrcp.f32 %v1731_v15  ;;  %2137 = vmatmul.f32.vlgmr.msrb.gmra.mxu0 %v1936_v43  ;;  %v6469_v43 = vld [vmem:[#allocation24_spill] sm:$0xff] }
 0x463   :  { %v3789_v44 = vpop.eup %3788  ;;  %3796 = vpow2.f32 %v1590_v46  ;;  %v1592_v59 = vmul.f32 1.442695, %v1500_v38 }
 0x464   :  { %v5533_v2 = vpop.f32.mrf.mxu2  ;;  %1424 = vmax.xlane.f32.xlu0 %v5411_v55  ;;  %v5537_v19 = vmul.f32 %v3789_v44, %v5319_v41  ;;  %v3791_v33 = vpop.eup %3790  ;;  %3798 = vrcp.f32 %v1733_v30  ;;  %v1506_v44 = vsub.f32 %v5345_v18, %v1413_v57  ;;  %v6470_v57 = vld [vmem:[#allocation26_spill] sm:$0xff] }
 0x465   :  { %v3793_v11 = vpop.eup %3792  ;;  %v1937_v52 = vmul.f32 %v3791_v33, %v5327_v0 }
 0x466   :  { %1442 = vmax.xlane.f32.xlu1 %v5533_v2  ;;  %1794 = vadd.xlane.f32.xlu2 %v5537_v19  ;;  %v5548_v15 = vmul.f32 %v3793_v11, %v6469_v43  ;;  %v1604_v33 = vmul.f32 1.442695, %v1506_v44  ;;  %v5567_v44 = vpop.f32.mrf.mxu1 }
 0x467   :  { %6471 = vst [vmem:[#allocation34_spill] sm:$0xff] %v5567_v44 }
 0x468   :  { %v3795_v49 = vpop.eup %3794  ;;  %v5541_v10 = vpop.xlane.xlu1 %1362 }
 0x469   :  { %v1765_v54 = vpop.xlane.xlu2 %1764  ;;  %v1921_v3 = vmul.f32 %v3795_v49, %v5348_v45  ;;  %v3797_v30 = vpop.eup %3796 }
 0x46a   :  { %3800 = vrcp.f32 %v1765_v54  ;;  %2140 = vmatmul.f32.gmra.mxu0 %v1937_v52  ;;  %v3799_v0 = vpop.eup %3798  ;;  %v5560_v52 = vmul.f32 %v3797_v30, %v6470_v57  ;;  %v5562_v38 = vpop.xlane.xlu0 %1360  ;;  %v6472_v30 = vld [vmem:[#allocation31_spill] sm:$0xff] }
 0x46b   :  { %2205 = vmatmul.f32.gmra.mxu1 %v1921_v3  ;;  %3802 = vpow2.f32 %v1592_v59  ;;  %v1922_v18 = vmul.f32 %v3799_v0, %v5343_v56  ;;  %v1477_v0 = vsub.f32 %v6472_v30, %v5376_v14 }
 0x46c   :  { %v5551_v46 = vpop.f32.mrf.mxu2  ;;  %1776 = vadd.xlane.f32.xlu0 %v5548_v15  ;;  %3804 = vpow2.f32 %v1604_v33 }
 0x46e   :  { %1432 = vmax.xlane.f32.xlu1 %v5464_v1 }
 0x470   :  { %v3801_v47 = vpop.eup %3800  ;;  %v5555_v54 = vpop.xlane.xlu1 %1364 }
 0x471   :  { %v3690_v45 = vpop.permute.xlu2 %3689  ;;  %v1938_v11 = vmul.f32 %v3801_v47, %v5359_v35  ;;  %v3803_v59 = vpop.eup %3802  ;;  %v6473_v47 = vld [vmem:[#allocation27_spill] sm:$0xff] }
 0x472   :  { %v3691_v49 = vunpack.i.l.bf16 %v3690_v45  ;;  %v3692_v24 = vunpack.i.h.bf16 %v3690_v45  ;;  %v3805_v35 = vpop.eup %3804  ;;  %v5575_v33 = vmul.f32 %v3803_v59, %v6473_v47 }
 0x473   :  { %2143 = vmatmul.f32.gmra.mxu0 %v1938_v11  ;;  %2208 = vmatmul.f32.gmra.mxu1 %v1922_v18  ;;  %v1546_v18 = vmul.f32 1.442695, %v1477_v0 }
 0x474   :  { %2440 = vmatpush.msra.mxu0 %v3691_v49  ;;  %v5564_v3 = vpop.f32.mrf.mxu2  ;;  %1782 = vadd.xlane.f32.xlu0 %v5560_v52  ;;  %v5581_v49 = vmul.f32 %v3805_v35, %v5340_v61 }
 0x475   :  { %3806 = vpow2.f32 %v1546_v18 }
 0x476   :  { %2441 = vmatpush.msra.mxu0 %v3692_v24  ;;  %1368 = vmax.xlane.f32.xlu1 %v5567_v44  ;;  %v6480_v44 = vld [vmem:[#allocation33_spill] sm:$0xff] }
 0x478   :  { %v5570_v56 = vpop.xlane.xlu1 %1366 }
 0x47b   :  { %v3807_v35 = vpop.eup %3806 }
 0x47c   :  { %v5577_v45 = vpop.f32.mrf.mxu2  ;;  %v3695_v11 = vpop.permute.xlu0 %3694  ;;  %1784 = vadd.xlane.f32.xlu0 %v5575_v33  ;;  %v5591_v37 = vmul.f32 %v3807_v35, %v4918_v36 }
 0x47d   :  { %v3696_v24 = vunpack.i.l.bf16 %v3695_v11  ;;  %1448 = vmax.xlane.f32.xlu2 %v5577_v45  ;;  %v3697_v7 = vunpack.i.h.bf16 %v3695_v11 }
 0x47e   :  { %1796 = vadd.xlane.f32.xlu1 %v5581_v49 }
 0x47f   :  { %2442 = vmatpush.msra.mxu0 %v3696_v24 }
 0x480   :  { %v1415_v14 = vpop.xlane.xlu1 %1414 }
 0x481   :  { %v1507_v59 = vsub.f32 %v5361_v29, %v1415_v14  ;;  %2443 = vmatpush.msra.mxu0 %v3697_v7 }
 0x483   :  { %v1606_v30 = vmul.f32 1.442695, %v1507_v59 }
 0x484   :  { %v5586_v42 = vpop.f32.mrf.mxu2  ;;  %1440 = vmax.xlane.f32.xlu0 %v5523_v39 }
 0x485   :  { %3808 = vpow2.f32 %v1606_v30 }
 0x488   :  { %v1417_v0 = vpop.xlane.xlu1 %1416 }
 0x489   :  { %v1508_v1 = vsub.f32 %v5371_v51, %v1417_v0 }
 0x48b   :  { %v3809_v11 = vpop.eup %3808  ;;  %v1608_v24 = vmul.f32 1.442695, %v1508_v1 }
 0x48c   :  { %v5593_v47 = vpop.f32.mrf.mxu2  ;;  %1738 = vadd.xlane.f32.xlu0 %v5591_v37  ;;  %v5597_v7 = vmul.f32 %v3809_v11, %v4936_v4 }
 0x48d   :  { %3810 = vpow2.f32 %v1608_v24 }
 0x48e   :  { %1798 = vadd.xlane.f32.xlu1 %v5597_v7 }
 0x490   :  { %v1769_v29 = vpop.xlane.xlu1 %1768 }
 0x493   :  { %v3811_v18 = vpop.eup %3810 }
 0x494   :  { %v5600_v14 = vpop.f32.mrf.mxu2  ;;  %1444 = vmax.xlane.f32.xlu0 %v5551_v46  ;;  %v5604_v51 = vmul.f32 %v3811_v18, %v4979_v6 }
 0x495   :  { %6474 = vst [vmem:[#allocation35_spill] sm:$0xff] %v5600_v14 }
 0x496   :  { %1800 = vadd.xlane.f32.xlu2 %v5604_v51 }
 0x498   :  { %v1419_v1 = vpop.xlane.xlu1 %1418 }
 0x499   :  { %v1509_v59 = vsub.f32 %v5381_v22, %v1419_v1  ;;  %v6477_v1 = vld [vmem:[#allocation40_spill] sm:$0xff] }
 0x49b   :  { %v1610_v30 = vmul.f32 1.442695, %v1509_v59  ;;  %v6478_v59 = vld [vmem:[#allocation32_spill] sm:$0xff] }
 0x49c   :  { %v5608_v35 = vpop.f32.mrf.mxu2  ;;  %1446 = vmax.xlane.f32.xlu0 %v5564_v3 }
 0x49d   :  { %6475 = vst [vmem:[#allocation24_spill] sm:$0xff] %v5608_v35  ;;  %3812 = vpow2.f32 %v1610_v30  ;;  %v1478_v30 = vsub.f32 %v6478_v59, %v6477_v1 }
 0x49e   :  { %1450 = vmax.xlane.f32.xlu2 %v5586_v42 }
 0x49f   :  { %v1548_v62 = vmul.f32 1.442695, %v1478_v30 }
 0x4a0   :  { %v5612_v0 = vpop.xlane.xlu1 %1420 }
 0x4a3   :  { %v3813_v11 = vpop.eup %3812 }
 0x4a4   :  { %v5614_v24 = vpop.f32.mrf.mxu2  ;;  %1452 = vmax.xlane.f32.xlu0 %v5593_v47  ;;  %v5618_v18 = vmul.f32 %v3813_v11, %v4918_v36  ;;  %v1479_v36 = vsub.f32 %v6480_v44, %v5474_v53 }
 0x4a5   :  { %6476 = vst [vmem:[#allocation31_spill] sm:$0xff] %v5614_v24  ;;  %1458 = vmax.xlane.f32.xlu1 %v5614_v24 }
 0x4a6   :  { %1802 = vadd.xlane.f32.xlu2 %v5618_v18 }
 0x4a7   :  { %v1737_v22 = vpop.xlane.xlu0 %1736 }
 0x4a8   :  { %v5624_v57 = vpop.xlane.xlu1 %1426 }
 0x4a9   :  { %v1735_v32 = vpop.xlane.xlu2 %1734 }
 0x4aa   :  { %3814 = vrcp.f32 %v1735_v32 }
 0x4ab   :  { %3816 = vrcp.f32 %v1737_v22 }
 0x4ac   :  { %v5626_v17 = vpop.f32.mrf.mxu2  ;;  %1454 = vmax.xlane.f32.xlu0 %v5600_v14  ;;  %v1550_v14 = vmul.f32 1.442695, %v1479_v36 }
 0x4ad   :  { %6479 = vst [vmem:[#allocation40_spill] sm:$0xff] %v5626_v17 }
 0x4ae   :  { %1460 = vmax.xlane.f32.xlu2 %v5626_v17 }
 0x4af   :  { %v1767_v11 = vpop.xlane.xlu0 %1766 }
 0x4b0   :  { %v3815_v24 = vpop.eup %3814  ;;  %3818 = vrcp.f32 %v1767_v11  ;;  %v5638_v17 = vpop.xlane.xlu1 %1780 }
 0x4b1   :  { %3820 = vpow2.f32 %v1548_v62  ;;  %v1923_v1 = vmul.f32 %v3815_v24, %v5446_v16  ;;  %v5633_v32 = vpop.xlane.xlu2 %1778  ;;  %v3817_v30 = vpop.eup %3816  ;;  %v6482_v16 = vld [vmem:[#allocation36_spill] sm:$0xff] }
 0x4b2   :  { %3822 = vrcp.f32 %v1769_v29  ;;  %v1480_v44 = vsub.f32 %v6482_v16, %v5562_v38  ;;  %v1924_v24 = vmul.f32 %v3817_v30, %v5440_v63 }
 0x4b3   :  { %2211 = vmatmul.f32.gmra.mxu1 %v1923_v1  ;;  %3824 = vpow2.f32 %v1550_v14 }
 0x4b4   :  { %v5635_v59 = vpop.f32.mrf.mxu2  ;;  %1456 = vmax.xlane.f32.xlu0 %v5608_v35  ;;  %v1552_v29 = vmul.f32 1.442695, %v1480_v44 }
 0x4b5   :  { %6481 = vst [vmem:[#allocation32_spill] sm:$0xff] %v5635_v59 }
 0x4b6   :  { %v3819_v22 = vpop.eup %3818  ;;  %1462 = vmax.xlane.f32.xlu2 %v5635_v59 }
 0x4b7   :  { %v3821_v62 = vpop.eup %3820  ;;  %v1771_v11 = vpop.xlane.xlu0 %1770  ;;  %v1939_v53 = vmul.f32 %v3819_v22, %v5459_v31  ;;  %v6484_v22 = vld [vmem:[#allocation41_spill] sm:$0xff] }
 0x4b8   :  { %v5646_v1 = vmul.f32 %v3821_v62, %v5004_v40  ;;  %v3823_v36 = vpop.eup %3822  ;;  %3826 = vrcp.f32 %v1771_v11  ;;  %v5651_v31 = vpop.xlane.xlu1 %1430 }
 0x4b9   :  { %2146 = vmatmul.f32.gmra.mxu0 %v1939_v53  ;;  %v5649_v59 = vpop.xlane.xlu2 %1428  ;;  %v3825_v35 = vpop.eup %3824  ;;  %6483 = vst [vmem:[#allocation33_spill] sm:$0xff] %v5651_v31  ;;  %v1940_v38 = vmul.f32 %v3823_v36, %v6484_v22  ;;  %3828 = vpow2.f32 %v1552_v29 }
 0x4ba   :  { %v5655_v63 = vmul.f32 %v3825_v35, %v4929_v8 }
 0x4bb   :  { %2214 = vmatmul.f32.gmra.mxu1 %v1924_v24 }
 0x4bc   :  { %1740 = vadd.xlane.f32.xlu0 %v5646_v1  ;;  %6485 = vst [vmem:[#allocation36_spill] sm:$0xff] %v5655_v63 }
 0x4be   :  { %v3827_v30 = vpop.eup %3826 }
 0x4bf   :  { %v1773_v14 = vpop.xlane.xlu0 %1772  ;;  %v3829_v62 = vpop.eup %3828  ;;  %v1941_v11 = vmul.f32 %v3827_v30, %v5479_v25 }
 0x4c0   :  { %3830 = vrcp.f32 %v1773_v14  ;;  %v5661_v44 = vpop.xlane.xlu1 %1786  ;;  %v5664_v24 = vmul.f32 %v3829_v62, %v6469_v43 }
 0x4c1   :  { %2149 = vmatmul.f32.gmra.mxu0 %v1940_v38  ;;  %v5658_v53 = vpop.xlane.xlu2 %1788 }
 0x4c2   :  { %6486 = vst [vmem:[#allocation41_spill] sm:$0xff] %v5664_v24 }
 0x4c4   :  { %1742 = vadd.xlane.f32.xlu0 %v5655_v63 }
 0x4c6   :  { %v3831_v36 = vpop.eup %3830 }
 0x4c7   :  { %v1423_v16 = vpop.xlane.xlu0 %1422  ;;  %v1942_v29 = vmul.f32 %v3831_v36, %v5493_v26  ;;  %v1510_v26 = vsub.f32 %v5392_v50, %v5612_v0 }
 0x4c9   :  { %2152 = vmatmul.f32.gmra.mxu0 %v1941_v11  ;;  %v5668_v14 = vpop.xlane.xlu2 %1790 }
 0x4cc   :  { %1744 = vadd.xlane.f32.xlu0 %v5664_v24 }
 0x4cf   :  { %v1775_v35 = vpop.xlane.xlu0 %1774 }
 0x4d0   :  { %3832 = vrcp.f32 %v1775_v35 }
 0x4d1   :  { %v1793_v22 = vpop.xlane.xlu1 %1792  ;;  %2155 = vmatmul.f32.gmra.mxu0 %v1942_v29 }
 0x4d2   :  { %3834 = vrcp.f32 %v1793_v22  ;;  %v1612_v22 = vmul.f32 1.442695, %v1510_v26 }
 0x4d6   :  { %v3833_v38 = vpop.eup %3832 }
 0x4d7   :  { %v5670_v25 = vpop.xlane.xlu0 %1424  ;;  %v1943_v30 = vmul.f32 %v3833_v38, %v5521_v20 }
 0x4d8   :  { %v3835_v11 = vpop.eup %3834 }
 0x4d9   :  { %v1952_v62 = vmul.f32 %v3835_v11, %v5527_v48  ;;  %v1443_v31 = vpop.xlane.xlu1 %1442  ;;  %v1795_v63 = vpop.xlane.xlu2 %1794  ;;  %2158 = vmatmul.f32.gmra.mxu0 %v1943_v30 }
 0x4da   :  { %v1521_v24 = vsub.f32 %v5533_v2, %v1443_v31  ;;  %3836 = vrcp.f32 %v1795_v63 }
 0x4db   :  { %2315 = vmatmul.f32.vlgmr.msra.gmra.mxu3 %v1952_v62 }
 0x4dc   :  { %v1634_v36 = vmul.f32 1.442695, %v1521_v24 }
 0x4de   :  { %3838 = vpow2.f32 %v1634_v36  ;;  %v5695_v36 = vpop.f32.mrf.mxu2 }
 0x4df   :  { %v1777_v35 = vpop.xlane.xlu0 %1776 }
 0x4e0   :  { %v3837_v29 = vpop.eup %3836  ;;  %3840 = vrcp.f32 %v1777_v35 }
 0x4e1   :  { %v5677_v20 = vpop.xlane.xlu1 %1432  ;;  %v1953_v48 = vmul.f32 %v3837_v29, %v5537_v19  ;;  %3842 = vpow2.f32 %v1612_v22  ;;  %v1511_v19 = vsub.f32 %v5400_v23, %v1423_v16 }
 0x4e2   :  { %3844 = vrcp.f32 %v5633_v32 }
 0x4e3   :  { %2318 = vmatmul.f32.gmra.mxu3 %v1953_v48  ;;  %3846 = vrcp.f32 %v5638_v17  ;;  %v1614_v62 = vmul.f32 1.442695, %v1511_v19 }
 0x4e4   :  { %v3839_v38 = vpop.eup %3838 }
 0x4e5   :  { %v5681_v2 = vmul.f32 %v3839_v38, %v5319_v41  ;;  %v1512_v38 = vsub.f32 %v5411_v55, %v5670_v25 }
 0x4e6   :  { %v3841_v31 = vpop.eup %3840  ;;  %v5713_v19 = vpop.f32.mrf.mxu2 }
 0x4e7   :  { %v1783_v50 = vpop.xlane.xlu0 %1782  ;;  %1826 = vadd.xlane.f32.xlu2 %v5681_v2  ;;  %v1944_v0 = vmul.f32 %v3841_v31, %v5548_v15  ;;  %v3843_v24 = vpop.eup %3842 }
 0x4e8   :  { %v3845_v30 = vpop.eup %3844  ;;  %v5690_v11 = vmul.f32 %v3843_v24, %v5004_v40 }
 0x4e9   :  { %v5686_v63 = vpop.xlane.xlu1 %1368  ;;  %2161 = vmatmul.f32.gmra.mxu0 %v1944_v0  ;;  %v1945_v32 = vmul.f32 %v3845_v30, %v5468_v27  ;;  %v3847_v15 = vpop.eup %3846 }
 0x4ea   :  { %v1946_v16 = vmul.f32 %v3847_v15, %v5462_v34 }
 0x4ef   :  { %v1785_v41 = vpop.xlane.xlu0 %1784  ;;  %1804 = vadd.xlane.f32.xlu2 %v5690_v11 }
 0x4f1   :  { %v1797_v26 = vpop.xlane.xlu1 %1796  ;;  %2164 = vmatmul.f32.gmra.mxu0 %v1945_v32 }
 0x4f2   :  { %3848 = vrcp.f32 %v1797_v26 }
 0x4f3   :  { %3850 = vpow2.f32 %v1614_v62 }
 0x4f4   :  { %3852 = vrcp.f32 %v1783_v50 }
 0x4f7   :  { %v1441_v23 = vpop.xlane.xlu0 %1440  ;;  %1464 = vmax.xlane.f32.xlu2 %v5695_v36 }
 0x4f8   :  { %v3849_v17 = vpop.eup %3848  ;;  %v1520_v35 = vsub.f32 %v5523_v39, %v1441_v23  ;;  %v1616_v39 = vmul.f32 1.442695, %v1512_v38 }
 0x4f9   :  { %2167 = vmatmul.f32.gmra.mxu0 %v1946_v16  ;;  %v1954_v27 = vmul.f32 %v3849_v17, %v5581_v49  ;;  %v3851_v29 = vpop.eup %3850  ;;  %v1449_v49 = vpop.xlane.xlu2 %1448 }
 0x4fa   :  { %v1632_v22 = vmul.f32 1.442695, %v1520_v35  ;;  %v3853_v48 = vpop.eup %3852  ;;  %v5704_v31 = vmul.f32 %v3851_v29, %v4929_v8 }
 0x4fb   :  { %2321 = vmatmul.f32.gmra.mxu3 %v1954_v27  ;;  %v1947_v34 = vmul.f32 %v3853_v48, %v5560_v52 }
 0x4fc   :  { %3854 = vpow2.f32 %v1632_v22 }
 0x4fd   :  { %3856 = vrcp.f32 %v1785_v41 }
 0x4ff   :  { %v1739_v50 = vpop.xlane.xlu0 %1738  ;;  %1806 = vadd.xlane.f32.xlu2 %v5704_v31 }
 0x500   :  { %3858 = vrcp.f32 %v1739_v50  ;;  %v6487_v50 = vld [vmem:[#allocation37_spill] sm:$0xff] }
 0x501   :  { %v1799_v0 = vpop.xlane.xlu1 %1798  ;;  %2170 = vmatmul.f32.gmra.mxu0 %v1947_v34 }
 0x502   :  { %v3855_v24 = vpop.eup %3854  ;;  %3860 = vrcp.f32 %v1799_v0 }
 0x503   :  { %v5709_v30 = vmul.f32 %v3855_v24, %v5284_v28  ;;  %v3857_v55 = vpop.eup %3856  ;;  %3862 = vpow2.f32 %v1616_v39 }
 0x504   :  { %3864 = vrcp.f32 %v5661_v44  ;;  %v1948_v32 = vmul.f32 %v3857_v55, %v5575_v33  ;;  %v1513_v44 = vsub.f32 %v5419_v58, %v5624_v57  ;;  %v1524_v58 = vsub.f32 %v5577_v45, %v1449_v49  ;;  %v5747_v55 = vpop.f32.mrf.mxu1 }
 0x505   :  { %1824 = vadd.xlane.f32.xlu1 %v5709_v30 }
 0x506   :  { %v3859_v25 = vpop.eup %3858  ;;  %v1640_v34 = vmul.f32 1.442695, %v1524_v58  ;;  %v6492_v58 = vld [vmem:[#allocation34_spill] sm:$0xff] }
 0x507   :  { %v1445_v52 = vpop.xlane.xlu0 %1444  ;;  %1466 = vmax.xlane.f32.xlu2 %v5713_v19  ;;  %v1925_v41 = vmul.f32 %v3859_v25, %v5591_v37  ;;  %v6488_v25 = vld [vmem:[#allocation38_spill] sm:$0xff] }
 0x508   :  { %v3861_v62 = vpop.eup %3860  ;;  %v1522_v28 = vsub.f32 %v5551_v46, %v1445_v52  ;;  %v1618_v46 = vmul.f32 1.442695, %v1513_v44  ;;  %v1482_v52 = vsub.f32 %v6488_v25, %v5555_v54 }
 0x509   :  { %2217 = vmatmul.f32.gmra.mxu1 %v1925_v41  ;;  %v1801_v26 = vpop.xlane.xlu2 %1800  ;;  %2173 = vmatmul.f32.gmra.mxu0 %v1948_v32  ;;  %v1955_v15 = vmul.f32 %v3861_v62, %v5597_v7  ;;  %v3863_v23 = vpop.eup %3862 }
 0x50a   :  { %v1636_v16 = vmul.f32 1.442695, %v1522_v28  ;;  %3866 = vrcp.f32 %v1801_v26  ;;  %v3865_v17 = vpop.eup %3864  ;;  %v5724_v37 = vmul.f32 %v3863_v23, %v6469_v43  ;;  %v1556_v28 = vmul.f32 1.442695, %v1482_v52 }
 0x50b   :  { %2324 = vmatmul.f32.gmra.mxu3 %v1955_v15  ;;  %v1949_v7 = vmul.f32 %v3865_v17, %v5497_v60  ;;  %v1481_v60 = vsub.f32 %v6487_v50, %v5541_v10 }
 0x50c   :  { %3868 = vpow2.f32 %v1636_v16  ;;  %v6489_v16 = vld [vmem:[#allocation39_spill] sm:$0xff] }
 0x50d   :  { %1434 = vmax.xlane.f32.xlu1 %v5481_v13  ;;  %3870 = vrcp.f32 %v5658_v53  ;;  %v1554_v39 = vmul.f32 1.442695, %v1481_v60  ;;  %v1483_v44 = vsub.f32 %v6489_v16, %v5570_v56  ;;  %v5775_v56 = vpop.f32.mrf.mxu1 }
 0x50e   :  { %3872 = vpow2.f32 %v1618_v46 }
 0x50f   :  { %v1447_v33 = vpop.xlane.xlu0 %1446  ;;  %1808 = vadd.xlane.f32.xlu2 %v5724_v37  ;;  %v1558_v46 = vmul.f32 1.442695, %v1483_v44 }
 0x510   :  { %v3867_v35 = vpop.eup %3866  ;;  %v1523_v27 = vsub.f32 %v5564_v3, %v1447_v33  ;;  %v5739_v3 = vpop.f32.mrf.mxu2 }
 0x511   :  { %v1451_v57 = vpop.xlane.xlu2 %1450  ;;  %2176 = vmatmul.f32.gmra.mxu0 %v1949_v7  ;;  %v1956_v29 = vmul.f32 %v3867_v35, %v5604_v51  ;;  %v6491_v35 = vld [vmem:[#allocation22_spill] sm:$0xff] }
 0x512   :  { %v3869_v22 = vpop.eup %3868  ;;  %v1638_v48 = vmul.f32 1.442695, %v1523_v27  ;;  %v1525_v10 = vsub.f32 %v5586_v42, %v1451_v57  ;;  %v1484_v57 = vsub.f32 %v6492_v58, %v5686_v63 }
 0x513   :  { %2327 = vmatmul.f32.gmra.mxu3 %v1956_v29  ;;  %v5733_v53 = vmul.f32 %v3869_v22, %v5340_v61  ;;  %v3871_v38 = vpop.eup %3870  ;;  %v6493_v29 = vld [vmem:[#allocation23_spill] sm:$0xff] }
 0x514   :  { %3874 = vpow2.f32 %v1638_v48  ;;  %v1950_v51 = vmul.f32 %v3871_v38, %v5503_v12  ;;  %v3873_v61 = vpop.eup %3872  ;;  %v1642_v41 = vmul.f32 1.442695, %v1525_v10  ;;  %v1560_v60 = vmul.f32 1.442695, %v1484_v57 }
 0x515   :  { %1828 = vadd.xlane.f32.xlu1 %v5733_v53  ;;  %3876 = vrcp.f32 %v5668_v14  ;;  %v5754_v12 = vmul.f32 %v3873_v61, %v5024_v21  ;;  %v6496_v61 = vld [vmem:[#allocation26_spill] sm:$0xff] }
 0x516   :  { %3878 = vpow2.f32 %v1640_v34 }
 0x517   :  { %v1453_v45 = vpop.xlane.xlu0 %1452  ;;  %1468 = vmax.xlane.f32.xlu2 %v5739_v3 }
 0x518   :  { %v1526_v15 = vsub.f32 %v5593_v47, %v1453_v45  ;;  %v6494_v45 = vld [vmem:[#allocation24_spill] sm:$0xff]  ;;  %v5815_v57 = vpop.f32.mrf.mxu2 }
 0x519   :  { %v1803_v49 = vpop.xlane.xlu2 %1802  ;;  %2179 = vmatmul.f32.gmra.mxu0 %v1950_v51 }
 0x51a   :  { %v3875_v0 = vpop.eup %3874  ;;  %3880 = vrcp.f32 %v1803_v49 }
 0x51b   :  { %v5745_v24 = vmul.f32 %v3875_v0, %v4936_v4  ;;  %v3877_v14 = vpop.eup %3876  ;;  %3882 = vpow2.f32 %v1554_v39  ;;  %v6495_v39 = vld [vmem:[#allocation45_spill] sm:$0xff] }
 0x51c   :  { %v3879_v42 = vpop.eup %3878  ;;  %v1951_v4 = vmul.f32 %v3877_v14, %v5515_v9  ;;  %3884 = vpow2.f32 %v1642_v41  ;;  %v1459_v14 = vpop.xlane.xlu1 %1458 }
 0x51d   :  { %1830 = vadd.xlane.f32.xlu0 %v5745_v24  ;;  %1370 = vmax.xlane.f32.xlu1 %v5747_v55  ;;  %v5761_v23 = vmul.f32 %v3879_v42, %v4979_v6  ;;  %3886 = vpow2.f32 %v1556_v28  ;;  %v6490_v6 = vld [vmem:[#allocation35_spill] sm:$0xff] }
 0x51f   :  { %v1455_v32 = vpop.xlane.xlu0 %1454  ;;  %1810 = vadd.xlane.f32.xlu2 %v5754_v12 }
 0x520   :  { %v3881_v62 = vpop.eup %3880  ;;  %v1527_v7 = vsub.f32 %v6490_v6, %v1455_v32 }
 0x521   :  { %2182 = vmatmul.f32.gmra.mxu0 %v1951_v4  ;;  %v1957_v26 = vmul.f32 %v3881_v62, %v5618_v18  ;;  %v3883_v54 = vpop.eup %3882  ;;  %v1644_v18 = vmul.f32 1.442695, %v1526_v15  ;;  %v6498_v4 = vld [vmem:[#allocation31_spill] sm:$0xff]  ;;  %v6499_v15 = vld [vmem:[#allocation30_spill] sm:$0xff] }
 0x522   :  { %v5768_v9 = vmul.f32 %v3883_v54, %v5024_v21  ;;  %v3885_v47 = vpop.eup %3884  ;;  %v1646_v48 = vmul.f32 1.442695, %v1527_v7  ;;  %v1529_v62 = vsub.f32 %v6498_v4, %v1459_v14  ;;  %v1461_v54 = vpop.xlane.xlu2 %1460  ;;  %v6504_v7 = vld [vmem:[#allocation40_spill] sm:$0xff] }
 0x523   :  { %2330 = vmatmul.f32.gmra.mxu3 %v1957_v26  ;;  %v3887_v33 = vpop.eup %3886  ;;  %3888 = vpow2.f32 %v1644_v18  ;;  %v5773_v27 = vmul.f32 %v3885_v47, %v6491_v35  ;;  %v1530_v35 = vsub.f32 %v6504_v7, %v1461_v54 }
 0x524   :  { %3890 = vpow2.f32 %v1558_v46  ;;  %v5782_v22 = vmul.f32 %v3887_v33, %v6493_v29  ;;  %v1650_v18 = vmul.f32 1.442695, %v1529_v62  ;;  %v6503_v33 = vld [vmem:[#allocation43_spill] sm:$0xff] }
 0x525   :  { %1436 = vmax.xlane.f32.xlu1 %v5499_v5  ;;  %1832 = vadd.xlane.f32.xlu0 %v5761_v23 }
 0x527   :  { %v1457_v17 = vpop.xlane.xlu0 %1456  ;;  %1746 = vadd.xlane.f32.xlu2 %v5768_v9 }
 0x528   :  { %v1528_v51 = vsub.f32 %v6494_v45, %v1457_v17  ;;  %v6501_v17 = vld [vmem:[#allocation36_spill] sm:$0xff]  ;;  %v6505_v45 = vld [vmem:[#allocation41_spill] sm:$0xff] }
 0x529   :  { %v3889_v50 = vpop.eup %3888 }
 0x52a   :  { %v3891_v34 = vpop.eup %3890  ;;  %v5787_v63 = vmul.f32 %v3889_v50, %v5004_v40  ;;  %v1648_v10 = vmul.f32 1.442695, %v1528_v51  ;;  %v6497_v40 = vld [vmem:[#allocation42_spill] sm:$0xff]  ;;  %v1652_v50 = vmul.f32 1.442695, %v1530_v35 }
 0x52b   :  { %v5792_v49 = vmul.f32 %v3891_v34, %v6496_v61  ;;  %v1514_v42 = vsub.f32 %v6497_v40, %v5649_v59  ;;  %v1463_v34 = vpop.xlane.xlu2 %1462 }
 0x52d   :  { %1372 = vmax.xlane.f32.xlu1 %v5775_v56  ;;  %1834 = vadd.xlane.f32.xlu0 %v5773_v27  ;;  %v1620_v26 = vmul.f32 1.442695, %v1514_v42 }
 0x52f   :  { %v1741_v38 = vpop.xlane.xlu0 %1740  ;;  %1748 = vadd.xlane.f32.xlu2 %v5782_v22 }
 0x530   :  { %3892 = vrcp.f32 %v1741_v38 }
 0x531   :  { %3894 = vpow2.f32 %v1646_v48 }
 0x532   :  { %3896 = vpow2.f32 %v1560_v60 }
 0x535   :  { %1438 = vmax.xlane.f32.xlu1 %v6495_v39  ;;  %1836 = vadd.xlane.f32.xlu0 %v5787_v63 }
 0x536   :  { %v3893_v0 = vpop.eup %3892 }
 0x537   :  { %v1743_v25 = vpop.xlane.xlu0 %1742  ;;  %1750 = vadd.xlane.f32.xlu2 %v5792_v49  ;;  %v1926_v52 = vmul.f32 %v3893_v0, %v5646_v1  ;;  %v3895_v41 = vpop.eup %3894  ;;  %v6500_v1 = vld [vmem:[#allocation27_spill] sm:$0xff] }
 0x538   :  { %3898 = vrcp.f32 %v1743_v25  ;;  %v3897_v32 = vpop.eup %3896  ;;  %v5800_v28 = vmul.f32 %v3895_v41, %v4929_v8  ;;  %v6502_v8 = vld [vmem:[#allocation33_spill] sm:$0xff] }
 0x539   :  { %2220 = vmatmul.f32.gmra.mxu1 %v1926_v52  ;;  %3900 = vpow2.f32 %v1648_v10  ;;  %v5805_v16 = vmul.f32 %v3897_v32, %v6500_v1  ;;  %v1515_v6 = vsub.f32 %v6503_v33, %v6502_v8  ;;  %v6506_v10 = vld [vmem:[#allocation44_spill] sm:$0xff] }
 0x53a   :  { %v1516_v14 = vsub.f32 %v6506_v10, %v5677_v20 }
 0x53b   :  { %v1622_v48 = vmul.f32 1.442695, %v1515_v6 }
 0x53c   :  { %v1624_v40 = vmul.f32 1.442695, %v1516_v14 }
 0x53d   :  { %1374 = vmax.xlane.f32.xlu1 %v6499_v15  ;;  %1838 = vadd.xlane.f32.xlu0 %v5800_v28 }
 0x53e   :  { %v3899_v44 = vpop.eup %3898 }
 0x53f   :  { %v1745_v59 = vpop.xlane.xlu0 %1744  ;;  %1752 = vadd.xlane.f32.xlu2 %v5805_v16  ;;  %v1927_v47 = vmul.f32 %v3899_v44, %v6501_v17  ;;  %v3901_v46 = vpop.eup %3900 }
 0x540   :  { %3902 = vrcp.f32 %v1745_v59  ;;  %v5813_v58 = vmul.f32 %v3901_v46, %v6469_v43  ;;  %v6507_v43 = vld [vmem:[#allocation32_spill] sm:$0xff] }
 0x541   :  { %3904 = vpow2.f32 %v1620_v26  ;;  %2223 = vmatmul.f32.gmra.mxu1 %v1927_v47  ;;  %v1531_v25 = vsub.f32 %v6507_v43, %v1463_v34 }
 0x542   :  { %3906 = vpow2.f32 %v1650_v18 }
 0x543   :  { %3908 = vpow2.f32 %v1622_v48  ;;  %v1654_v42 = vmul.f32 1.442695, %v1531_v25 }
 0x544   :  { %3910 = vpow2.f32 %v1652_v50 }
 0x545   :  { %1470 = vmax.xlane.f32.xlu1 %v5815_v57  ;;  %1840 = vadd.xlane.f32.xlu0 %v5813_v58  ;;  %3912 = vpow2.f32 %v1624_v40 }
 0x546   :  { %v3903_v38 = vpop.eup %3902  ;;  %3914 = vpow2.f32 %v1654_v42 }
 0x547   :  { %v3905_v60 = vpop.eup %3904  ;;  %v1928_v51 = vmul.f32 %v3903_v38, %v6505_v45 }
 0x548   :  { %v3907_v0 = vpop.eup %3906  ;;  %v5827_v41 = vmul.f32 %v3905_v60, %v6493_v29 }
 0x549   :  { %2226 = vmatmul.f32.gmra.mxu1 %v1928_v51  ;;  %v5824_v52 = vmul.f32 %v3907_v0, %v5024_v21  ;;  %v3909_v32 = vpop.eup %3908 }
 0x54a   :  { %v3911_v4 = vpop.eup %3910  ;;  %v5832_v20 = vmul.f32 %v3909_v32, %v6496_v61 }
 0x54b   :  { %v5835_v62 = vmul.f32 %v3911_v4, %v6493_v29  ;;  %v3913_v21 = vpop.eup %3912  ;;  %v5847_v29 = vpop.f32.mrf.mxu0 }
 0x54c   :  { %v3915_v26 = vpop.eup %3914  ;;  %v5840_v44 = vmul.f32 %v3913_v21, %v6500_v1 }
 0x54d   :  { %1842 = vadd.xlane.f32.xlu1 %v5824_v52  ;;  %1812 = vadd.xlane.f32.xlu0 %v5827_v41  ;;  %v5843_v18 = vmul.f32 %v3915_v26, %v6496_v61 }
 0x553   :  { %v5851_v6 = vpop.f32.mrf.mxu0 }
 0x555   :  { %1814 = vadd.xlane.f32.xlu0 %v5832_v20  ;;  %1844 = vadd.xlane.f32.xlu1 %v5835_v62 }
 0x55a   :  { %v1827_v54 = vpop.xlane.xlu2 %1826 }
 0x55b   :  { %v5857_v50 = vpop.f32.mrf.mxu0 }
 0x55d   :  { %1816 = vadd.xlane.f32.xlu0 %v5840_v44  ;;  %1846 = vadd.xlane.f32.xlu1 %v5843_v18 }
 0x562   :  { %v1805_v59 = vpop.xlane.xlu2 %1804 }
 0x563   :  { %3916 = vrcp.f32 %v1805_v59  ;;  %v5862_v0 = vpop.f32.mrf.mxu0 }
 0x569   :  { %v3917_v17 = vpop.eup %3916 }
 0x56a   :  { %v1465_v47 = vpop.xlane.xlu2 %1464  ;;  %v1958_v46 = vmul.f32 %v3917_v17, %v5690_v11 }
 0x56b   :  { %v1532_v8 = vsub.f32 %v5695_v36, %v1465_v47  ;;  %v5871_v26 = vpop.f32.mrf.mxu0 }
 0x56c   :  { %2333 = vmatmul.f32.gmra.mxu3 %v1958_v46 }
 0x56d   :  { %v1656_v33 = vmul.f32 1.442695, %v1532_v8 }
 0x56f   :  { %3918 = vpow2.f32 %v1656_v33 }
 0x572   :  { %v1807_v61 = vpop.xlane.xlu2 %1806 }
 0x573   :  { %3920 = vrcp.f32 %v1807_v61 }
 0x575   :  { %v3919_v7 = vpop.eup %3918 }
 0x576   :  { %v5854_v35 = vmul.f32 %v3919_v7, %v6500_v1  ;;  %v5880_v7 = vpop.f32.mrf.mxu0 }
 0x578   :  { %v1825_v48 = vpop.xlane.xlu1 %1824  ;;  %1848 = vadd.xlane.f32.xlu1 %v5854_v35 }
 0x579   :  { %v3921_v38 = vpop.eup %3920  ;;  %3922 = vrcp.f32 %v1825_v48  ;;  %v6509_v48 = vld [vmem:[#allocation29_spill] sm:$0xff] }
 0x57a   :  { %v1467_v11 = vpop.xlane.xlu2 %1466  ;;  %v1959_v36 = vmul.f32 %v3921_v38, %v5704_v31  ;;  %3924 = vrcp.f32 %v1827_v54 }
 0x57b   :  { %v1533_v60 = vsub.f32 %v5713_v19, %v1467_v11  ;;  %v6508_v19 = vld [vmem:[#allocation28_spill] sm:$0xff] }
 0x57c   :  { %2336 = vmatmul.f32.gmra.mxu3 %v1959_v36 }
 0x57d   :  { %v1658_v34 = vmul.f32 1.442695, %v1533_v60 }
 0x57f   :  { %v3923_v45 = vpop.eup %3922  ;;  %3926 = vpow2.f32 %v1658_v34 }
 0x580   :  { %v1968_v1 = vmul.f32 %v3923_v45, %v5709_v30  ;;  %v1435_v51 = vpop.xlane.xlu1 %1434  ;;  %v3925_v25 = vpop.eup %3924 }
 0x581   :  { %v1517_v10 = vsub.f32 %v5481_v13, %v1435_v51  ;;  %v1969_v30 = vmul.f32 %v3925_v25, %v5681_v2 }
 0x582   :  { %v1809_v14 = vpop.xlane.xlu2 %1808  ;;  %2444 = vmatmul.f32.vlgmr.msra.gmra.mxu0 %v1968_v1 }
 0x583   :  { %v1626_v43 = vmul.f32 1.442695, %v1517_v10  ;;  %3928 = vrcp.f32 %v1809_v14 }
 0x585   :  { %v3927_v31 = vpop.eup %3926  ;;  %3930 = vpow2.f32 %v1626_v43 }
 0x586   :  { %v5866_v40 = vmul.f32 %v3927_v31, %v6508_v19 }
 0x588   :  { %v1829_v42 = vpop.xlane.xlu1 %1828  ;;  %1850 = vadd.xlane.f32.xlu1 %v5866_v40 }
 0x589   :  { %v3929_v32 = vpop.eup %3928  ;;  %3932 = vrcp.f32 %v1829_v42 }
 0x58a   :  { %v1469_v4 = vpop.xlane.xlu2 %1468  ;;  %2447 = vmatmul.f32.gmra.mxu0 %v1969_v30  ;;  %v1960_v13 = vmul.f32 %v3929_v32, %v5724_v37 }
 0x58b   :  { %v3931_v21 = vpop.eup %3930  ;;  %v1534_v54 = vsub.f32 %v5739_v3, %v1469_v4 }
 0x58c   :  { %2339 = vmatmul.f32.gmra.mxu3 %v1960_v13  ;;  %v5875_v59 = vmul.f32 %v3931_v21, %v6508_v19 }
 0x58d   :  { %v1660_v17 = vmul.f32 1.442695, %v1534_v54 }
 0x58e   :  { %1818 = vadd.xlane.f32.xlu0 %v5875_v59 }
 0x58f   :  { %v3933_v47 = vpop.eup %3932  ;;  %3934 = vpow2.f32 %v1660_v17 }
 0x590   :  { %v1831_v2 = vpop.xlane.xlu0 %1830  ;;  %v1371_v46 = vpop.xlane.xlu1 %1370  ;;  %v1970_v8 = vmul.f32 %v3933_v47, %v5733_v53 }
 0x591   :  { %3936 = vrcp.f32 %v1831_v2  ;;  %v1485_v37 = vsub.f32 %v5747_v55, %v1371_v46 }
 0x592   :  { %v1811_v33 = vpop.xlane.xlu2 %1810  ;;  %2450 = vmatmul.f32.gmra.mxu0 %v1970_v8 }
 0x593   :  { %v1562_v61 = vmul.f32 1.442695, %v1485_v37  ;;  %3938 = vrcp.f32 %v1811_v33 }
 0x595   :  { %v3935_v3 = vpop.eup %3934  ;;  %3940 = vpow2.f32 %v1562_v61 }
 0x596   :  { %v5883_v38 = vmul.f32 %v3935_v3, %v6509_v48 }
 0x597   :  { %v3937_v11 = vpop.eup %3936 }
 0x598   :  { %v1437_v36 = vpop.xlane.xlu1 %1436  ;;  %v1833_v60 = vpop.xlane.xlu0 %1832  ;;  %1852 = vadd.xlane.f32.xlu1 %v5883_v38  ;;  %v1971_v53 = vmul.f32 %v3937_v11, %v5745_v24 }
 0x599   :  { %v3939_v34 = vpop.eup %3938  ;;  %v1518_v55 = vsub.f32 %v5499_v5, %v1437_v36  ;;  %3942 = vrcp.f32 %v1833_v60  ;;  %v5893_v24 = vpop.f32.mrf.mxu0 }
 0x59a   :  { %v1747_v45 = vpop.xlane.xlu2 %1746  ;;  %2453 = vmatmul.f32.gmra.mxu0 %v1971_v53  ;;  %v1961_v1 = vmul.f32 %v3939_v34, %v5754_v12 }
 0x59b   :  { %v3941_v51 = vpop.eup %3940  ;;  %v1628_v10 = vmul.f32 1.442695, %v1518_v55  ;;  %3944 = vrcp.f32 %v1747_v45  ;;  %v6510_v55 = vld [vmem:[#allocation25_spill] sm:$0xff] }
 0x59c   :  { %2342 = vmatmul.f32.gmra.mxu3 %v1961_v1  ;;  %v5890_v14 = vmul.f32 %v3941_v51, %v6508_v19 }
 0x59d   :  { %3946 = vpow2.f32 %v1628_v10 }
 0x59e   :  { %1754 = vadd.xlane.f32.xlu2 %v5890_v14 }
 0x59f   :  { %v3943_v43 = vpop.eup %3942 }
 0x5a0   :  { %v1373_v25 = vpop.xlane.xlu1 %1372  ;;  %v1835_v5 = vpop.xlane.xlu0 %1834  ;;  %v1972_v31 = vmul.f32 %v3943_v43, %v5761_v23 }
 0x5a1   :  { %v3945_v42 = vpop.eup %3944  ;;  %v1486_v12 = vsub.f32 %v5775_v56, %v1373_v25  ;;  %3948 = vrcp.f32 %v1835_v5  ;;  %v5903_v47 = vpop.f32.mrf.mxu0 }
 0x5a2   :  { %v1749_v30 = vpop.xlane.xlu2 %1748  ;;  %2456 = vmatmul.f32.gmra.mxu0 %v1972_v31  ;;  %v1929_v32 = vmul.f32 %v3945_v42, %v5768_v9 }
 0x5a3   :  { %v3947_v19 = vpop.eup %3946  ;;  %v1564_v4 = vmul.f32 1.442695, %v1486_v12  ;;  %3950 = vrcp.f32 %v1749_v30 }
 0x5a4   :  { %2229 = vmatmul.f32.gmra.mxu1 %v1929_v32  ;;  %v5899_v13 = vmul.f32 %v3947_v19, %v6509_v48 }
 0x5a5   :  { %3952 = vpow2.f32 %v1564_v4 }
 0x5a6   :  { %1820 = vadd.xlane.f32.xlu0 %v5899_v13 }
 0x5a7   :  { %v3949_v21 = vpop.eup %3948 }
 0x5a8   :  { %v1439_v23 = vpop.xlane.xlu1 %1438  ;;  %v1837_v54 = vpop.xlane.xlu0 %1836  ;;  %v1973_v56 = vmul.f32 %v3949_v21, %v5773_v27 }
 0x5a9   :  { %v3951_v17 = vpop.eup %3950  ;;  %v1519_v9 = vsub.f32 %v6495_v39, %v1439_v23  ;;  %3954 = vrcp.f32 %v1837_v54  ;;  %v5912_v36 = vpop.f32.mrf.mxu0 }
 0x5aa   :  { %v1751_v2 = vpop.xlane.xlu2 %1750  ;;  %2459 = vmatmul.f32.gmra.mxu0 %v1973_v56  ;;  %v1930_v46 = vmul.f32 %v3951_v17, %v5782_v22 }
 0x5ab   :  { %v3953_v8 = vpop.eup %3952  ;;  %v1630_v37 = vmul.f32 1.442695, %v1519_v9  ;;  %3956 = vrcp.f32 %v1751_v2 }
 0x5ac   :  { %2232 = vmatmul.f32.gmra.mxu1 %v1930_v46  ;;  %v5908_v33 = vmul.f32 %v3953_v8, %v6509_v48 }
 0x5ad   :  { %3958 = vpow2.f32 %v1630_v37 }
 0x5ae   :  { %1756 = vadd.xlane.f32.xlu2 %v5908_v33 }
 0x5af   :  { %v3955_v27 = vpop.eup %3954 }
 0x5b0   :  { %v1375_v61 = vpop.xlane.xlu1 %1374  ;;  %v1839_v3 = vpop.xlane.xlu0 %1838  ;;  %v1974_v39 = vmul.f32 %v3955_v27, %v5787_v63 }
 0x5b1   :  { %v3957_v11 = vpop.eup %3956  ;;  %v1487_v22 = vsub.f32 %v6499_v15, %v1375_v61  ;;  %3960 = vrcp.f32 %v1839_v3  ;;  %v5923_v5 = vpop.f32.mrf.mxu0 }
 0x5b2   :  { %v1753_v60 = vpop.xlane.xlu2 %1752  ;;  %2462 = vmatmul.f32.gmra.mxu0 %v1974_v39  ;;  %v1931_v53 = vmul.f32 %v3957_v11, %v5792_v49 }
 0x5b3   :  { %v3959_v48 = vpop.eup %3958  ;;  %v1566_v34 = vmul.f32 1.442695, %v1487_v22  ;;  %3962 = vrcp.f32 %v1753_v60 }
 0x5b4   :  { %2235 = vmatmul.f32.gmra.mxu1 %v1931_v53  ;;  %v5917_v45 = vmul.f32 %v3959_v48, %v6510_v55 }
 0x5b5   :  { %3964 = vpow2.f32 %v1566_v34  ;;  %v2316_v34 = vpop.f32.mrf.mxu3 }
 0x5b6   :  { %1822 = vadd.xlane.f32.xlu0 %v5917_v45 }
 0x5b7   :  { %v3961_v63 = vpop.eup %3960 }
 0x5b8   :  { %v1471_v1 = vpop.xlane.xlu1 %1470  ;;  %v1841_v51 = vpop.xlane.xlu0 %1840  ;;  %v1975_v15 = vmul.f32 %v3961_v63, %v5800_v28 }
 0x5b9   :  { %v3963_v10 = vpop.eup %3962  ;;  %v1535_v43 = vsub.f32 %v5815_v57, %v1471_v1  ;;  %3966 = vrcp.f32 %v1841_v51  ;;  %v5933_v19 = vpop.f32.mrf.mxu0 }
 0x5ba   :  { %2465 = vmatmul.f32.gmra.mxu0 %v1975_v15  ;;  %v1932_v49 = vmul.f32 %v3963_v10, %v5805_v16  ;;  %v5957_v10 = vld [vmem:[%s6341_s10] ss:$0 sm:$0xff] }
 0x5bb   :  { %v3965_v25 = vpop.eup %3964  ;;  %v1662_v31 = vmul.f32 1.442695, %v1535_v43 }
 0x5bc   :  { %2238 = vmatmul.f32.gmra.mxu1 %v1932_v49  ;;  %v5926_v42 = vmul.f32 %v3965_v25, %v6510_v55  ;;  %v6511_v25 = vld [vmem:[#allocation11_spill] sm:$0xff] }
 0x5bd   :  { %3968 = vpow2.f32 %v1662_v31  ;;  %v2319_v43 = vpop.f32.mrf.mxu3 }
 0x5be   :  { %1758 = vadd.xlane.f32.xlu2 %v5926_v42 }
 0x5bf   :  { %v3967_v12 = vpop.eup %3966 }
 0x5c0   :  { %v1843_v28 = vpop.xlane.xlu1 %1842  ;;  %v1813_v30 = vpop.xlane.xlu0 %1812  ;;  %v1976_v57 = vmul.f32 %v3967_v12, %v5813_v58 }
 0x5c1   :  { %3970 = vrcp.f32 %v1843_v28  ;;  %v5938_v9 = vpop.f32.mrf.mxu0 }
 0x5c2   :  { %3972 = vrcp.f32 %v1813_v30  ;;  %2468 = vmatmul.f32.gmra.mxu0 %v1976_v57 }
 0x5c3   :  { %v3969_v16 = vpop.eup %3968 }
 0x5c4   :  { %v5931_v32 = vmul.f32 %v3969_v16, %v6510_v55 }
 0x5c6   :  { %1854 = vadd.xlane.f32.xlu0 %v5931_v32 }
 0x5c7   :  { %v3971_v4 = vpop.eup %3970 }
 0x5c8   :  { %v3973_v21 = vpop.eup %3972  ;;  %v1815_v23 = vpop.xlane.xlu0 %1814  ;;  %v1977_v56 = vmul.f32 %v3971_v4, %v5824_v52 }
 0x5c9   :  { %v1845_v54 = vpop.xlane.xlu1 %1844  ;;  %3974 = vrcp.f32 %v1815_v23  ;;  %v1962_v58 = vmul.f32 %v3973_v21, %v5827_v41  ;;  %v5943_v3 = vpop.f32.mrf.mxu0 }
 0x5ca   :  { %3976 = vrcp.f32 %v1845_v54  ;;  %2471 = vmatmul.f32.gmra.mxu0 %v1977_v56  ;;  %v2322_v56 = vpop.f32.mrf.mxu3 }
 0x5cb   :  { %2345 = vmatmul.f32.gmra.mxu3 %v1962_v58  ;;  %v6512_v58 = vld [vmem:[#allocation9_spill] sm:$0xff] }
 0x5cf   :  { %v3975_v17 = vpop.eup %3974 }
 0x5d0   :  { %v3977_v2 = vpop.eup %3976  ;;  %v1817_v46 = vpop.xlane.xlu0 %1816  ;;  %v1963_v37 = vmul.f32 %v3975_v17, %v5832_v20 }
 0x5d1   :  { %v1847_v8 = vpop.xlane.xlu1 %1846  ;;  %3978 = vrcp.f32 %v1817_v46  ;;  %v1978_v27 = vmul.f32 %v3977_v2, %v5835_v62  ;;  %v5946_v11 = vpop.f32.mrf.mxu0 }
 0x5d2   :  { %3980 = vrcp.f32 %v1847_v8  ;;  %v2203_v62 = vpop.f32.mrf.mxu1 }
 0x5d3   :  { %2348 = vmatmul.f32.gmra.mxu3 %v1963_v37  ;;  %2474 = vmatmul.f32.gmra.mxu0 %v1978_v27 }
 0x5d7   :  { %v3979_v52 = vpop.eup %3978 }
 0x5d8   :  { %v3981_v61 = vpop.eup %3980  ;;  %v1964_v41 = vmul.f32 %v3979_v52, %v5840_v44 }
 0x5d9   :  { %v1979_v39 = vmul.f32 %v3981_v61, %v5843_v18  ;;  %v5948_v20 = vpop.f32.mrf.mxu0  ;;  %v2204_v18 = vadd.f32 %v2203_v62, %v5847_v29  ;;  %v6513_v62 = vld [vmem:[#allocation13_spill] sm:$0xff] }
 0x5da   :  { %v2206_v48 = vpop.f32.mrf.mxu1 }
 0x5db   :  { %2351 = vmatmul.f32.gmra.mxu3 %v1964_v41  ;;  %2477 = vmatmul.f32.gmra.mxu0 %v1979_v39  ;;  %v2364_v63 = vadd.f32 %v2316_v34, %v2204_v18  ;;  %v2207_v29 = vadd.f32 %v2206_v48, %v5851_v6  ;;  %v2325_v41 = vpop.f32.mrf.mxu3 }
 0x5dd   :  { %v2365_v30 = vadd.f32 %v2319_v43, %v2207_v29 }
 0x5e1   :  { %v5951_v44 = vpop.f32.mrf.mxu0 }
 0x5e2   :  { %v2209_v51 = vpop.f32.mrf.mxu1 }
 0x5e3   :  { %v2210_v2 = vadd.f32 %v2209_v51, %v5857_v50 }
 0x5e5   :  { %v2366_v8 = vadd.f32 %v2322_v56, %v2210_v2 }
 0x5ea   :  { %v2212_v21 = vpop.f32.mrf.mxu1 }
 0x5eb   :  { %v1849_v22 = vpop.xlane.xlu1 %1848 }
 0x5ec   :  { %3982 = vrcp.f32 %v1849_v22 }
 0x5f2   :  { %v3983_v60 = vpop.eup %3982  ;;  %v2215_v22 = vpop.f32.mrf.mxu1 }
 0x5f3   :  { %v1980_v53 = vmul.f32 %v3983_v60, %v5854_v35 }
 0x5f5   :  { %2480 = vmatmul.f32.gmra.mxu0 %v1980_v53  ;;  %v2213_v53 = vadd.f32 %v2212_v21, %v5862_v0 }
 0x5f7   :  { %v2367_v34 = vadd.f32 %v2325_v41, %v2213_v53 }
 0x5fb   :  { %v1851_v55 = vpop.xlane.xlu1 %1850 }
 0x5fc   :  { %3984 = vrcp.f32 %v1851_v55 }
 0x5ff   :  { %v2445_v1 = vpop.f32.mrf.mxu0 }
 0x600   :  { %v2493_v15 = vadd.f32 %v2445_v1, %v2364_v63 }
 0x601   :  { %v1819_v35 = vpop.xlane.xlu0 %1818 }
 0x602   :  { %v3985_v49 = vpop.eup %3984  ;;  %v2509_v31 = vadd.f32 %v2493_v15, %v6511_v25  ;;  %3986 = vrcp.f32 %v1819_v35  ;;  %v6514_v35 = vld [vmem:[#allocation16_spill] sm:$0xff]  ;;  %v2216_v25 = vadd.f32 %v2215_v22, %v5871_v26 }
 0x603   :  { %v1981_v12 = vmul.f32 %v3985_v49, %v5866_v40  ;;  %v2328_v49 = vpop.f32.mrf.mxu3 }
 0x604   :  { %v5963_v28 = vadd.f32 %v5957_v10, %v2509_v31 }
 0x605   :  { %2483 = vmatmul.f32.gmra.mxu0 %v1981_v12  ;;  %v2368_v12 = vadd.f32 %v2328_v49, %v2216_v25 }
 0x606   :  { %v2546_v57 = vmul.f32 %v5963_v28, %v5963_v28 }
 0x607   :  { %v2448_v16 = vpop.f32.mrf.mxu0 }
 0x608   :  { %v3987_v4 = vpop.eup %3986  ;;  %v2494_v23 = vadd.f32 %v2448_v16, %v2365_v30  ;;  %v2562_v54 = vsel %vm231_vm1, %v2546_v57, 0.0 }
 0x609   :  { %2563 = vadd.xlane.f32.xlu1 %v2562_v54  ;;  %v1965_v40 = vmul.f32 %v3987_v4, %v5875_v59  ;;  %v6515_v54 = vld [vmem:[#allocation15_spill] sm:$0xff] }
 0x60a   :  { %v2510_v6 = vadd.f32 %v2494_v23, %v6512_v58 }
 0x60b   :  { %v1853_v17 = vpop.xlane.xlu1 %1852  ;;  %2354 = vmatmul.f32.gmra.mxu3 %v1965_v40  ;;  %v2331_v26 = vpop.f32.mrf.mxu3 }
 0x60c   :  { %v5972_v46 = vadd.f32 %v5957_v10, %v2510_v6  ;;  %3988 = vrcp.f32 %v1853_v17 }
 0x60e   :  { %v2547_v37 = vmul.f32 %v5972_v46, %v5972_v46 }
 0x60f   :  { %v2451_v27 = vpop.f32.mrf.mxu0 }
 0x610   :  { %v2495_v52 = vadd.f32 %v2451_v27, %v2366_v8  ;;  %v2565_v61 = vsel %vm231_vm1, %v2547_v37, 0.0 }
 0x611   :  { %v1755_v59 = vpop.xlane.xlu2 %1754  ;;  %2566 = vadd.xlane.f32.xlu2 %v2565_v61  ;;  %v6516_v61 = vld [vmem:[#allocation18_spill] sm:$0xff] }
 0x612   :  { %v3989_v39 = vpop.eup %3988  ;;  %v2511_v60 = vadd.f32 %v2495_v52, %v6513_v62  ;;  %3990 = vrcp.f32 %v1755_v59 }
 0x613   :  { %v1982_v50 = vmul.f32 %v3989_v39, %v5883_v38  ;;  %v2218_v38 = vpop.f32.mrf.mxu1 }
 0x614   :  { %v5981_v48 = vadd.f32 %v5957_v10, %v2511_v60  ;;  %v2219_v40 = vadd.f32 %v2218_v38, %v5880_v7  ;;  %v2334_v7 = vpop.f32.mrf.mxu3 }
 0x615   :  { %2486 = vmatmul.f32.gmra.mxu0 %v1982_v50 }
 0x616   :  { %v2548_v55 = vmul.f32 %v5981_v48, %v5981_v48  ;;  %v2369_v6 = vadd.f32 %v2331_v26, %v2219_v40 }
 0x617   :  { %v2454_v18 = vpop.f32.mrf.mxu0 }
 0x618   :  { %v3991_v63 = vpop.eup %3990  ;;  %v2496_v1 = vadd.f32 %v2454_v18, %v2367_v34  ;;  %v2568_v51 = vsel %vm231_vm1, %v2548_v55, 0.0 }
 0x619   :  { %v1821_v15 = vpop.xlane.xlu0 %1820  ;;  %2569 = vadd.xlane.f32.xlu0 %v2568_v51  ;;  %v1933_v43 = vmul.f32 %v3991_v63, %v5890_v14  ;;  %v6517_v63 = vld [vmem:[#allocation20_spill] sm:$0xff] }
 0x61a   :  { %v2512_v0 = vadd.f32 %v2496_v1, %v6514_v35  ;;  %3992 = vrcp.f32 %v1821_v15 }
 0x61b   :  { %2241 = vmatmul.f32.gmra.mxu1 %v1933_v43  ;;  %v2221_v23 = vpop.f32.mrf.mxu1 }
 0x61c   :  { %v5990_v31 = vadd.f32 %v5957_v10, %v2512_v0  ;;  %v2222_v59 = vadd.f32 %v2221_v23, %v5893_v24  ;;  %v2337_v24 = vpop.f32.mrf.mxu3 }
 0x61e   :  { %v2549_v29 = vmul.f32 %v5990_v31, %v5990_v31  ;;  %v2370_v62 = vadd.f32 %v2334_v7, %v2222_v59 }
 0x61f   :  { %v2457_v30 = vpop.f32.mrf.mxu0 }
 0x620   :  { %v3993_v57 = vpop.eup %3992  ;;  %v2497_v16 = vadd.f32 %v2457_v30, %v2368_v12  ;;  %v2571_v14 = vsel %vm231_vm1, %v2549_v29, 0.0  ;;  %v6518_v30 = vld [vmem:[#allocation19_spill] sm:$0xff] }
 0x621   :  { %v1757_v4 = vpop.xlane.xlu2 %1756  ;;  %2572 = vadd.xlane.f32.xlu1 %v2571_v14  ;;  %v1966_v21 = vmul.f32 %v3993_v57, %v5899_v13 }
 0x622   :  { %v2513_v56 = vadd.f32 %v2497_v16, %v6515_v54  ;;  %3994 = vrcp.f32 %v1757_v4 }
 0x623   :  { %2357 = vmatmul.f32.gmra.mxu3 %v1966_v21  ;;  %v2224_v39 = vpop.f32.mrf.mxu1 }
 0x624   :  { %v5999_v58 = vadd.f32 %v5957_v10, %v2513_v56  ;;  %v2225_v51 = vadd.f32 %v2224_v39, %v5903_v47  ;;  %v2340_v47 = vpop.f32.mrf.mxu3 }
 0x626   :  { %v2550_v17 = vmul.f32 %v5999_v58, %v5999_v58  ;;  %v2371_v38 = vadd.f32 %v2337_v24, %v2225_v51 }
 0x627   :  { %v2460_v2 = vpop.f32.mrf.mxu0 }
 0x628   :  { %v3995_v8 = vpop.eup %3994  ;;  %v2498_v37 = vadd.f32 %v2460_v2, %v2369_v6  ;;  %v2574_v13 = vsel %vm231_vm1, %v2550_v17, 0.0  ;;  %v6519_v17 = vld [vmem:[#allocation5_spill] sm:$0xff] }
 0x629   :  { %v1823_v27 = vpop.xlane.xlu0 %1822  ;;  %2575 = vadd.xlane.f32.xlu2 %v2574_v13  ;;  %v1934_v52 = vmul.f32 %v3995_v8, %v5908_v33 }
 0x62a   :  { %v2514_v41 = vadd.f32 %v2498_v37, %v6516_v61  ;;  %3996 = vrcp.f32 %v1823_v27 }
 0x62b   :  { %2244 = vmatmul.f32.gmra.mxu1 %v1934_v52  ;;  %v2227_v43 = vpop.f32.mrf.mxu1 }
 0x62c   :  { %v6008_v22 = vadd.f32 %v5957_v10, %v2514_v41  ;;  %v2228_v16 = vadd.f32 %v2227_v43, %v5912_v36  ;;  %v2343_v37 = vpop.f32.mrf.mxu3 }
 0x62e   :  { %v2551_v60 = vmul.f32 %v6008_v22, %v6008_v22  ;;  %v2372_v4 = vadd.f32 %v2340_v47, %v2228_v16 }
 0x62f   :  { %v2463_v50 = vpop.f32.mrf.mxu0 }
 0x630   :  { %v3997_v53 = vpop.eup %3996  ;;  %v2499_v34 = vadd.f32 %v2463_v50, %v2370_v62  ;;  %v2577_v33 = vsel %vm231_vm1, %v2551_v60, 0.0 }
 0x631   :  { %v1759_v55 = vpop.xlane.xlu2 %1758  ;;  %2578 = vadd.xlane.f32.xlu0 %v2577_v33  ;;  %v1967_v18 = vmul.f32 %v3997_v53, %v5917_v45 }
 0x632   :  { %v2515_v1 = vadd.f32 %v2499_v34, %v6517_v63  ;;  %3998 = vrcp.f32 %v1759_v55 }
 0x633   :  { %2360 = vmatmul.f32.gmra.mxu3 %v1967_v18  ;;  %v2230_v21 = vpop.f32.mrf.mxu1  ;;  %v6521_v18 = vld [vmem:[#allocation7_spill] sm:$0xff] }
 0x634   :  { %v6017_v15 = vadd.f32 %v5957_v10, %v2515_v1  ;;  %v2231_v6 = vadd.f32 %v2230_v21, %v5923_v5  ;;  %v6523_v21 = vld [vmem:[#allocation10_spill] sm:$0xff] }
 0x636   :  { %v2552_v35 = vmul.f32 %v6017_v15, %v6017_v15  ;;  %v2373_v13 = vadd.f32 %v2343_v37, %v2231_v6  ;;  %v6524_v6 = vld [vmem:[#allocation21_spill] sm:$0xff] }
 0x637   :  { %v2466_v0 = vpop.f32.mrf.mxu0 }
 0x638   :  { %v3999_v49 = vpop.eup %3998  ;;  %v2500_v25 = vadd.f32 %v2466_v0, %v2371_v38  ;;  %v2580_v45 = vsel %vm231_vm1, %v2552_v35, 0.0 }
 0x639   :  { %v1855_v12 = vpop.xlane.xlu0 %1854  ;;  %2581 = vadd.xlane.f32.xlu1 %v2580_v45  ;;  %v1935_v29 = vmul.f32 %v3999_v49, %v5926_v42  ;;  %v2840_v42 = vld [vmem:[%s6345_s14 + $0x18] sm:$0xff]  ;;  %v6522_v49 = vld [vmem:[#allocation8_spill] sm:$0xff] }
 0x63a   :  { %v2516_v57 = vadd.f32 %v2500_v25, %v6518_v30  ;;  %4000 = vrcp.f32 %v1855_v12  ;;  %2905 = vmatpush.msrb.mxu1 %v2840_v42 }
 0x63b   :  { %2247 = vmatmul.f32.gmra.mxu1 %v1935_v29  ;;  %v2233_v61 = vpop.f32.mrf.mxu1 }
 0x63c   :  { %v6026_v14 = vadd.f32 %v5957_v10, %v2516_v57  ;;  %v2234_v39 = vadd.f32 %v2233_v61, %v5933_v19 }
 0x63e   :  { %v2553_v23 = vmul.f32 %v6026_v14, %v6026_v14 }
 0x63f   :  { %v2469_v54 = vpop.f32.mrf.mxu0 }
 0x640   :  { %v4001_v56 = vpop.eup %4000  ;;  %v2501_v26 = vadd.f32 %v2469_v54, %v2372_v4  ;;  %v2583_v40 = vsel %vm231_vm1, %v2553_v23, 0.0  ;;  %v2839_v54 = vld [vmem:[%s6345_s14 + $0x10] sm:$0xff] }
 0x641   :  { %2584 = vadd.xlane.f32.xlu2 %v2583_v40  ;;  %v1983_v36 = vmul.f32 %v4001_v56, %v5931_v32  ;;  %v6520_v32 = vld [vmem:[#allocation6_spill] sm:$0xff]  ;;  %2906 = vmatpush.msrb.mxu1 %v2839_v54  ;;  %v2838_v56 = vld [vmem:[%s6345_s14 + $0x8] sm:$0xff] }
 0x642   :  { %v2517_v2 = vadd.f32 %v2501_v26, %v6519_v17  ;;  %v2837_v26 = vld [vmem:[%s6345_s14] sm:$0xff] }
 0x643   :  { %2489 = vmatmul.f32.gmra.mxu0 %v1983_v36  ;;  %v2236_v55 = vpop.f32.mrf.mxu1  ;;  %2907 = vmatpush.msrb.mxu1 %v2838_v56 }
 0x644   :  { %v6038_v8 = vadd.f32 %v5957_v10, %v2517_v2  ;;  %v2237_v1 = vadd.f32 %v2236_v55, %v5938_v9 }
 0x645   :  { %2908 = vmatpush.msrb.mxu1 %v2837_v26  ;;  %v6525_v26 = vld [vmem:[#allocation12_spill] sm:$0xff] }
 0x646   :  { %v2554_v27 = vmul.f32 %v6038_v8, %v6038_v8 }
 0x647   :  { %v2472_v52 = vpop.f32.mrf.mxu0 }
 0x648   :  { %v2502_v41 = vadd.f32 %v2472_v52, %v2373_v13  ;;  %v2586_v7 = vsel %vm231_vm1, %v2554_v27, 0.0 }
 0x649   :  { %2587 = vadd.xlane.f32.xlu0 %v2586_v7 }
 0x64a   :  { %v2518_v59 = vadd.f32 %v2502_v41, %v6520_v32 }
 0x64b   :  { %v2239_v29 = vpop.f32.mrf.mxu1 }
 0x64c   :  { %v6045_v5 = vadd.f32 %v5957_v10, %v2518_v59  ;;  %v2240_v57 = vadd.f32 %v2239_v29, %v5943_v3 }
 0x64e   :  { %v2346_v62 = vpop.f32.mrf.mxu3  ;;  %v2555_v60 = vmul.f32 %v6045_v5, %v6045_v5 }
 0x64f   :  { %v2374_v50 = vadd.f32 %v2346_v62, %v2234_v39 }
 0x650   :  { %v2475_v53 = vpop.f32.mrf.mxu0  ;;  %v2589_v34 = vsel %vm231_vm1, %v2555_v60, 0.0 }
 0x651   :  { %v2503_v33 = vadd.f32 %v2475_v53, %v2374_v50  ;;  %2590 = vadd.xlane.f32.xlu1 %v2589_v34  ;;  %v6089_v34 = vld [vmem:[%s6343_s12] ss:$0 sm:$0xff]  ;;  %s4112_s12 = smov 8  }
 0x653   :  { %v2519_v63 = vadd.f32 %v2503_v33, %v6521_v18 }
 0x655   :  { %v6054_v24 = vadd.f32 %v5957_v10, %v2519_v63 }
 0x656   :  { %v2349_v51 = vpop.f32.mrf.mxu3 }
 0x657   :  { %v2375_v19 = vadd.f32 %v2349_v51, %v2237_v1  ;;  %v2556_v43 = vmul.f32 %v6054_v24, %v6054_v24 }
 0x658   :  { %v2478_v38 = vpop.f32.mrf.mxu0 }
 0x659   :  { %v2504_v35 = vadd.f32 %v2478_v38, %v2375_v19  ;;  %v2592_v0 = vsel %vm231_vm1, %v2556_v43, 0.0 }
 0x65a   :  { %2593 = vadd.xlane.f32.xlu2 %v2592_v0 }
 0x65b   :  { %v2520_v25 = vadd.f32 %v2504_v35, %v6522_v49 }
 0x65d   :  { %v6061_v45 = vadd.f32 %v5957_v10, %v2520_v25 }
 0x65e   :  { %v2352_v30 = vpop.f32.mrf.mxu3 }
 0x65f   :  { %v2557_v9 = vmul.f32 %v6061_v45, %v6061_v45  ;;  %v2376_v47 = vadd.f32 %v2352_v30, %v2240_v57 }
 0x661   :  { %v2595_v12 = vsel %vm231_vm1, %v2557_v9, 0.0 }
 0x662   :  { %2596 = vadd.xlane.f32.xlu0 %v2595_v12 }
 0x672   :  { %v2481_v16 = vpop.f32.mrf.mxu0 }
 0x673   :  { %v2505_v4 = vadd.f32 %v2481_v16, %v2376_v47 }
 0x675   :  { %v2521_v23 = vadd.f32 %v2505_v4, %v6523_v21 }
 0x677   :  { %v6072_v42 = vadd.f32 %v5957_v10, %v2521_v23 }
 0x679   :  { %v2558_v3 = vmul.f32 %v6072_v42, %v6072_v42 }
 0x67b   :  { %v2598_v40 = vsel %vm231_vm1, %v2558_v3, 0.0 }
 0x67c   :  { %v2564_v36 = vpop.xlane.xlu1 %2563  ;;  %2599 = vadd.xlane.f32.xlu1 %v2598_v40 }
 0x67d   :  { %v2610_v17 = vmul.f32 %v2564_v36, %v6524_v6 }
 0x67f   :  { %v2626_v2 = vadd.f32 1.1920929e-07, %v2610_v17 }
 0x681   :  { %4002 = vrsqrt.f32 %v2626_v2  ;;  %vm2648_vm8 = vweird.f32 %v2626_v2 }
 0x682   :  { %v2484_v47 = vpop.f32.mrf.mxu0 }
 0x684   :  { %v2567_v37 = vpop.xlane.xlu2 %2566 }
 0x685   :  { %v2611_v13 = vmul.f32 %v2567_v37, %v6524_v6 }
 0x687   :  { %v4003_v27 = vpop.eup %4002  ;;  %v2627_v52 = vadd.f32 1.1920929e-07, %v2611_v13 }
 0x688   :  { %v2643_v61 = vmul.f32 %v4003_v27, %v2626_v2  ;;  %vm2649_vm7 = vweird.f32 %v4003_v27 }
 0x689   :  { %4004 = vrsqrt.f32 %v2627_v52  ;;  %vm2650_vm9 = vmor %vm2648_vm8, %vm2649_vm7  ;;  %vm2658_vm11 = vweird.f32 %v2627_v52 }
 0x68a   :  { %v2644_v41 = vmul.f32 %v4003_v27, %v2643_v61 }
 0x68c   :  { %v2645_v7 = vmul.f32 0.5, %v2644_v41  ;;  %v2570_v32 = vpop.xlane.xlu0 %2569 }
 0x68d   :  { %v2612_v59 = vmul.f32 %v2570_v32, %v6524_v6 }
 0x68e   :  { %v2646_v39 = vsub.f32 1.5, %v2645_v7  ;;  %v2355_v29 = vpop.f32.mrf.mxu3 }
 0x68f   :  { %v4005_v62 = vpop.eup %4004  ;;  %v2628_v60 = vadd.f32 1.1920929e-07, %v2612_v59 }
 0x690   :  { %v2647_v50 = vmul.f32 %v4003_v27, %v2646_v39  ;;  %v2653_v53 = vmul.f32 %v4005_v62, %v2627_v52  ;;  %vm2659_vm10 = vweird.f32 %v4005_v62 }
 0x691   :  { %4006 = vrsqrt.f32 %v2628_v60  ;;  %vm2660_vm12 = vmor %vm2658_vm11, %vm2659_vm10  ;;  %vm2668_vm14 = vweird.f32 %v2628_v60 }
 0x692   :  { %v2651_v33 = vsel %vm2650_vm9, %v4003_v27, %v2647_v50  ;;  %v2654_v55 = vmul.f32 %v4005_v62, %v2653_v53 }
 0x693   :  { %v2802_v18 = vmul.f32 %v2651_v33, %v5963_v28 }
 0x694   :  { %v2655_v63 = vmul.f32 0.5, %v2654_v55  ;;  %v2573_v1 = vpop.xlane.xlu1 %2572 }
 0x695   :  { %v2821_v51 = vmul.f32 %v6089_v34, %v2802_v18  ;;  %v2613_v19 = vmul.f32 %v2573_v1, %v6524_v6 }
 0x696   :  { %v2656_v43 = vsub.f32 1.5, %v2655_v63 }
 0x697   :  { %v4007_v38 = vpop.eup %4006  ;;  %v2629_v35 = vadd.f32 1.1920929e-07, %v2613_v19  ;;  %3524 = vmatmul.msk.f32.vlgmr.msrb.gmra.mxu1 %vm231_vm1, %v2821_v51  ;;  %v2487_v51 = vpop.f32.mrf.mxu0 }
 0x698   :  { %v2657_v0 = vmul.f32 %v4005_v62, %v2656_v43  ;;  %v2663_v49 = vmul.f32 %v4007_v38, %v2628_v60  ;;  %v2242_v25 = vpop.f32.mrf.mxu1  ;;  %vm2669_vm13 = vweird.f32 %v4007_v38 }
 0x699   :  { %4008 = vrsqrt.f32 %v2629_v35  ;;  %v2243_v28 = vadd.f32 %v2242_v25, %v5946_v11  ;;  %vm2670_vm15 = vmor %vm2668_vm14, %vm2669_vm13  ;;  %vm2678_vm2 = vweird.f32 %v2629_v35 }
 0x69a   :  { %v2661_v9 = vsel %vm2660_vm12, %v4005_v62, %v2657_v0  ;;  %v2664_v12 = vmul.f32 %v4007_v38, %v2663_v49 }
 0x69b   :  { %v2377_v30 = vadd.f32 %v2355_v29, %v2243_v28  ;;  %v2803_v57 = vmul.f32 %v2661_v9, %v5972_v46  ;;  %v6526_v28 = vld [vmem:[#allocation14_spill] sm:$0xff] }
 0x69c   :  { %v2665_v16 = vmul.f32 0.5, %v2664_v12  ;;  %v2576_v4 = vpop.xlane.xlu2 %2575 }
 0x69d   :  { %v2506_v21 = vadd.f32 %v2484_v47, %v2377_v30  ;;  %v2614_v23 = vmul.f32 %v2576_v4, %v6524_v6  ;;  %v2822_v54 = vmul.f32 %v6089_v34, %v2803_v57 }
 0x69e   :  { %v2666_v56 = vsub.f32 1.5, %v2665_v16 }
 0x69f   :  { %v4009_v3 = vpop.eup %4008  ;;  %v2522_v40 = vadd.f32 %v2506_v21, %v6525_v26  ;;  %v2630_v11 = vadd.f32 1.1920929e-07, %v2614_v23  ;;  %3525 = vmatmul.msk.f32.gmra.mxu1 %vm231_vm1, %v2822_v54 }
 0x6a0   :  { %v2667_v36 = vmul.f32 %v4007_v38, %v2666_v56  ;;  %v2673_v17 = vmul.f32 %v4009_v3, %v2629_v35  ;;  %vm2679_vm0 = vweird.f32 %v4009_v3 }
 0x6a1   :  { %4010 = vrsqrt.f32 %v2630_v11  ;;  %v6102_v46 = vadd.f32 %v5957_v10, %v2522_v40  ;;  %vm2680_vm3 = vmor %vm2678_vm2, %vm2679_vm0  ;;  %vm2688_vm5 = vweird.f32 %v2630_v11 }
 0x6a2   :  { %v2671_v2 = vsel %vm2670_vm15, %v4007_v38, %v2667_v36  ;;  %v2674_v37 = vmul.f32 %v4009_v3, %v2673_v17 }
 0x6a3   :  { %v2559_v13 = vmul.f32 %v6102_v46, %v6102_v46  ;;  %v2804_v27 = vmul.f32 %v2671_v2, %v5981_v48 }
 0x6a4   :  { %v2675_v52 = vmul.f32 0.5, %v2674_v37  ;;  %v2579_v61 = vpop.xlane.xlu0 %2578 }
 0x6a5   :  { %v2615_v41 = vmul.f32 %v2579_v61, %v6524_v6  ;;  %v2601_v7 = vsel %vm231_vm1, %v2559_v13, 0.0  ;;  %v2823_v32 = vmul.f32 %v6089_v34, %v2804_v27 }
 0x6a6   :  { %v2676_v59 = vsub.f32 1.5, %v2675_v52  ;;  %2602 = vadd.xlane.f32.xlu2 %v2601_v7  ;;  %v2358_v18 = vpop.f32.mrf.mxu3 }
 0x6a7   :  { %v4011_v39 = vpop.eup %4010  ;;  %v2631_v62 = vadd.f32 1.1920929e-07, %v2615_v41  ;;  %3526 = vmatmul.msk.f32.gmra.mxu1 %vm231_vm1, %v2823_v32 }
 0x6a8   :  { %v2677_v60 = vmul.f32 %v4009_v3, %v2676_v59  ;;  %v2683_v50 = vmul.f32 %v4011_v39, %v2630_v11  ;;  %v2245_v53 = vpop.f32.mrf.mxu1  ;;  %vm2689_vm4 = vweird.f32 %v4011_v39 }
 0x6a9   :  { %4012 = vrsqrt.f32 %v2631_v62  ;;  %v2246_v48 = vadd.f32 %v2245_v53, %v5948_v20  ;;  %vm2690_vm6 = vmor %vm2688_vm5, %vm2689_vm4  ;;  %vm2698_vm8 = vweird.f32 %v2631_v62 }
 0x6aa   :  { %v2681_v33 = vsel %vm2680_vm3, %v4009_v3, %v2677_v60  ;;  %v2684_v55 = vmul.f32 %v4011_v39, %v2683_v50 }
 0x6ab   :  { %v2378_v63 = vadd.f32 %v2358_v18, %v2246_v48  ;;  %v2805_v1 = vmul.f32 %v2681_v33, %v5990_v31  ;;  %v6527_v33 = vld [vmem:[#allocation17_spill] sm:$0xff] }
 0x6ac   :  { %v2685_v19 = vmul.f32 0.5, %v2684_v55  ;;  %v2582_v43 = vpop.xlane.xlu1 %2581 }
 0x6ad   :  { %v2507_v38 = vadd.f32 %v2487_v51, %v2378_v63  ;;  %v2616_v0 = vmul.f32 %v2582_v43, %v6524_v6  ;;  %v2824_v35 = vmul.f32 %v6089_v34, %v2805_v1 }
 0x6ae   :  { %v2686_v49 = vsub.f32 1.5, %v2685_v19 }
 0x6af   :  { %v4013_v25 = vpop.eup %4012  ;;  %v2523_v9 = vadd.f32 %v2507_v38, %v6526_v28  ;;  %v2632_v20 = vadd.f32 1.1920929e-07, %v2616_v0  ;;  %3527 = vmatmul.msk.f32.gmra.mxu1 %vm231_vm1, %v2824_v35 }
 0x6b0   :  { %v2687_v12 = vmul.f32 %v4011_v39, %v2686_v49  ;;  %v2693_v29 = vmul.f32 %v4013_v25, %v2631_v62  ;;  %vm2699_vm7 = vweird.f32 %v4013_v25 }
 0x6b1   :  { %4014 = vrsqrt.f32 %v2632_v20  ;;  %v6118_v31 = vadd.f32 %v5957_v10, %v2523_v9  ;;  %vm2700_vm9 = vmor %vm2698_vm8, %vm2699_vm7  ;;  %vm2708_vm11 = vweird.f32 %v2632_v20 }
 0x6b2   :  { %v2691_v30 = vsel %vm2690_vm6, %v4011_v39, %v2687_v12  ;;  %v2694_v57 = vmul.f32 %v4013_v25, %v2693_v29 }
 0x6b3   :  { %v2560_v47 = vmul.f32 %v6118_v31, %v6118_v31  ;;  %v2806_v16 = vmul.f32 %v2691_v30, %v5999_v58 }
 0x6b4   :  { %v2695_v4 = vmul.f32 0.5, %v2694_v57  ;;  %v2585_v21 = vpop.xlane.xlu2 %2584 }
 0x6b5   :  { %v2617_v23 = vmul.f32 %v2585_v21, %v6524_v6  ;;  %v2604_v54 = vsel %vm231_vm1, %v2560_v47, 0.0  ;;  %v2825_v56 = vmul.f32 %v6089_v34, %v2806_v16 }
 0x6b6   :  { %v2696_v3 = vsub.f32 1.5, %v2695_v4  ;;  %2605 = vadd.xlane.f32.xlu0 %v2604_v54  ;;  %v2361_v32 = vpop.f32.mrf.mxu3 }
 0x6b7   :  { %v4015_v26 = vpop.eup %4014  ;;  %v2633_v40 = vadd.f32 1.1920929e-07, %v2617_v23  ;;  %3528 = vmatmul.msk.f32.gmra.mxu1 %vm231_vm1, %v2825_v56 }
 0x6b8   :  { %v2697_v11 = vmul.f32 %v4013_v25, %v2696_v3  ;;  %v2703_v36 = vmul.f32 %v4015_v26, %v2632_v20  ;;  %v2248_v17 = vpop.f32.mrf.mxu1  ;;  %vm2709_vm10 = vweird.f32 %v4015_v26 }
 0x6b9   :  { %4016 = vrsqrt.f32 %v2633_v40  ;;  %v2249_v37 = vadd.f32 %v2248_v17, %v5951_v44  ;;  %vm2710_vm12 = vmor %vm2708_vm11, %vm2709_vm10  ;;  %vm2718_vm14 = vweird.f32 %v2633_v40 }
 0x6ba   :  { %v2701_v58 = vsel %vm2700_vm9, %v4013_v25, %v2697_v11  ;;  %v2704_v2 = vmul.f32 %v4015_v26, %v2703_v36 }
 0x6bb   :  { %v2807_v13 = vmul.f32 %v2701_v58, %v6008_v22  ;;  %v2379_v62 = vadd.f32 %v2361_v32, %v2249_v37 }
 0x6bc   :  { %v2705_v27 = vmul.f32 0.5, %v2704_v2  ;;  %v2588_v52 = vpop.xlane.xlu0 %2587 }
 0x6bd   :  { %v2618_v61 = vmul.f32 %v2588_v52, %v6524_v6  ;;  %v2826_v41 = vmul.f32 %v6089_v34, %v2807_v13 }
 0x6be   :  { %v2706_v7 = vsub.f32 1.5, %v2705_v27 }
 0x6bf   :  { %v4017_v59 = vpop.eup %4016  ;;  %v2634_v39 = vadd.f32 1.1920929e-07, %v2618_v61  ;;  %3529 = vmatmul.msk.f32.gmra.mxu1 %vm231_vm1, %v2826_v41 }
 0x6c0   :  { %v2707_v60 = vmul.f32 %v4015_v26, %v2706_v7  ;;  %v2713_v50 = vmul.f32 %v4017_v59, %v2633_v40  ;;  %v2490_v44 = vpop.f32.mrf.mxu0  ;;  %vm2719_vm13 = vweird.f32 %v4017_v59 }
 0x6c1   :  { %4018 = vrsqrt.f32 %v2634_v39  ;;  %v2508_v22 = vadd.f32 %v2490_v44, %v2379_v62  ;;  %vm2720_vm15 = vmor %vm2718_vm14, %vm2719_vm13  ;;  %vm2728_vm2 = vweird.f32 %v2634_v39  ;;  %v3116_v44 = vld [vmem:[%s6347_s16 + $0x70] sm:$0xff] }
 0x6c2   :  { %v2711_v53 = vsel %vm2710_vm12, %v4015_v26, %v2707_v60  ;;  %v2714_v48 = vmul.f32 %v4017_v59, %v2713_v50 }
 0x6c3   :  { %v2524_v55 = vadd.f32 %v2508_v22, %v6527_v33  ;;  %v2808_v18 = vmul.f32 %v2711_v53, %v6017_v15 }
 0x6c4   :  { %v2715_v63 = vmul.f32 0.5, %v2714_v48  ;;  %v2591_v1 = vpop.xlane.xlu1 %2590  ;;  %v3115_v48 = vld [vmem:[%s6347_s16 + $0x68] sm:$0xff] }
 0x6c5   :  { %v6135_v51 = vadd.f32 %v5957_v10, %v2524_v55  ;;  %v2619_v19 = vmul.f32 %v2591_v1, %v6524_v6  ;;  %v2827_v43 = vmul.f32 %v6089_v34, %v2808_v18  ;;  %v3114_v55 = vld [vmem:[%s6347_s16 + $0x60] sm:$0xff] }
 0x6c6   :  { %v2716_v38 = vsub.f32 1.5, %v2715_v63 }
 0x6c7   :  { %v4019_v0 = vpop.eup %4018  ;;  %v2635_v35 = vadd.f32 1.1920929e-07, %v2619_v19  ;;  %3530 = vmatmul.msk.f32.gmra.mxu1 %vm231_vm1, %v2827_v43  ;;  %v2561_v49 = vmul.f32 %v6135_v51, %v6135_v51 }
 0x6c8   :  { %v2717_v25 = vmul.f32 %v4017_v59, %v2716_v38  ;;  %v2723_v15 = vmul.f32 %v4019_v0, %v2634_v39  ;;  %vm2729_vm0 = vweird.f32 %v4019_v0 }
 0x6c9   :  { %4020 = vrsqrt.f32 %v2635_v35  ;;  %v2607_v10 = vsel %vm231_vm1, %v2561_v49, 0.0  ;;  %vm2730_vm3 = vmor %vm2728_vm2, %vm2729_vm0  ;;  %vm2738_vm5 = vweird.f32 %v2635_v35 }
 0x6ca   :  { %v2721_v28 = vsel %vm2720_vm15, %v4017_v59, %v2717_v25  ;;  %v2724_v9 = vmul.f32 %v4019_v0, %v2723_v15  ;;  %2608 = vadd.xlane.f32.xlu1 %v2607_v10  ;;  %v3112_v25 = vld [vmem:[%s6347_s16 + $0x50] sm:$0xff]  ;;  %v3111_v10 = vld [vmem:[%s6347_s16 + $0x48] sm:$0xff] }
 0x6cb   :  { %v2809_v20 = vmul.f32 %v2721_v28, %v6026_v14 }
 0x6cc   :  { %v2725_v12 = vmul.f32 0.5, %v2724_v9  ;;  %v3110_v9 = vld [vmem:[%s6347_s16 + $0x40] sm:$0xff] }
 0x6cd   :  { %v2594_v29 = vpop.xlane.xlu2 %2593  ;;  %v2828_v30 = vmul.f32 %v6089_v34, %v2809_v20 }
 0x6ce   :  { %v2726_v57 = vsub.f32 1.5, %v2725_v12  ;;  %v2620_v47 = vmul.f32 %v2594_v29, %v6524_v6  ;;  %v3109_v12 = vld [vmem:[%s6347_s16 + $0x38] sm:$0xff] }
 0x6cf   :  { %v4021_v16 = vpop.eup %4020  ;;  %3531 = vmatmul.msk.f32.gmra.mxu1 %vm231_vm1, %v2828_v30  ;;  %v3108_v30 = vld [vmem:[%s6347_s16 + $0x30] sm:$0xff] }
 0x6d0   :  { %v2727_v4 = vmul.f32 %v4019_v0, %v2726_v57  ;;  %v2733_v21 = vmul.f32 %v4021_v16, %v2635_v35  ;;  %v2636_v23 = vadd.f32 1.1920929e-07, %v2620_v47  ;;  %vm2739_vm4 = vweird.f32 %v4021_v16  ;;  %v3113_v35 = vld [vmem:[%s6347_s16 + $0x58] sm:$0xff] }
 0x6d1   :  { %vm2740_vm6 = vmor %vm2738_vm5, %vm2739_vm4 }
 0x6d2   :  { %v2731_v54 = vsel %vm2730_vm3, %v4019_v0, %v2727_v4  ;;  %v2734_v56 = vmul.f32 %v4021_v16, %v2733_v21  ;;  %4022 = vrsqrt.f32 %v2636_v23  ;;  %vm2748_vm8 = vweird.f32 %v2636_v23  ;;  %v3106_v21 = vld [vmem:[%s6347_s16 + $0x20] sm:$0xff] }
 0x6d3   :  { %v2810_v14 = vmul.f32 %v2731_v54, %v6038_v8  ;;  %v3104_v54 = vld [vmem:[%s6347_s16 + $0x10] sm:$0xff] }
 0x6d4   :  { %v2735_v3 = vmul.f32 0.5, %v2734_v56  ;;  %v3103_v56 = vld [vmem:[%s6347_s16 + $0x8] sm:$0xff] }
 0x6d5   :  { %v2597_v26 = vpop.xlane.xlu0 %2596  ;;  %v2829_v40 = vmul.f32 %v6089_v34, %v2810_v14  ;;  %v3102_v14 = vld [vmem:[%s6347_s16] sm:$0xff] }
 0x6d6   :  { %v2736_v11 = vsub.f32 1.5, %v2735_v3  ;;  %v2621_v36 = vmul.f32 %v2597_v26, %v6524_v6  ;;  %v6215_v3 = vld [vmem:[%s6346_s15] ss:$0 sm:$0xff] }
 0x6d7   :  { %3532 = vmatmul.msk.f32.gmra.mxu1 %vm231_vm1, %v2829_v40 }
 0x6d8   :  { %v4023_v17 = vpop.eup %4022  ;;  %v2737_v58 = vmul.f32 %v4021_v16, %v2736_v11  ;;  %v2637_v2 = vadd.f32 1.1920929e-07, %v2621_v36 }
 0x6d9   :  { %v2743_v37 = vmul.f32 %v4023_v17, %v2636_v23  ;;  %vm2749_vm7 = vweird.f32 %v4023_v17  ;;  %v3105_v23 = vld [vmem:[%s6347_s16 + $0x18] sm:$0xff] }
 0x6da   :  { %v2741_v13 = vsel %vm2740_vm6, %v4021_v16, %v2737_v58  ;;  %4024 = vrsqrt.f32 %v2637_v2  ;;  %vm2750_vm9 = vmor %vm2748_vm8, %vm2749_vm7  ;;  %vm2758_vm11 = vweird.f32 %v2637_v2  ;;  %v3107_v16 = vld [vmem:[%s6347_s16 + $0x28] sm:$0xff] }
 0x6db   :  { %v2744_v27 = vmul.f32 %v4023_v17, %v2743_v37  ;;  %v2811_v8 = vmul.f32 %v2741_v13, %v6045_v5  ;;  %v3117_v5 = vld [vmem:[%s6347_s16 + $0x78] sm:$0xff] }
 0x6dc   :  { %3122 = vmatpush.msrb.mxu3 %v3117_v5 }
 0x6dd   :  { %v2745_v52 = vmul.f32 0.5, %v2744_v27  ;;  %v2830_v61 = vmul.f32 %v6089_v34, %v2811_v8 }
 0x6de   :  { %3123 = vmatpush.msrb.mxu3 %v3116_v44 }
 0x6df   :  { %v2746_v41 = vsub.f32 1.5, %v2745_v52  ;;  %3533 = vmatmul.msk.f32.gmra.mxu1 %vm231_vm1, %v2830_v61 }
 0x6e0   :  { %v4025_v7 = vpop.eup %4024  ;;  %3124 = vmatpush.msrb.mxu3 %v3115_v48 }
 0x6e1   :  { %v2747_v32 = vmul.f32 %v4023_v17, %v2746_v41  ;;  %v2753_v59 = vmul.f32 %v4025_v7, %v2637_v2  ;;  %vm2759_vm10 = vweird.f32 %v4025_v7 }
 0x6e2   :  { %vm2760_vm12 = vmor %vm2758_vm11, %vm2759_vm10  ;;  %3125 = vmatpush.msrb.mxu3 %v3114_v55 }
 0x6e3   :  { %v2751_v39 = vsel %vm2750_vm9, %v4023_v17, %v2747_v32  ;;  %v2754_v62 = vmul.f32 %v4025_v7, %v2753_v59 }
 0x6e4   :  { %v2812_v60 = vmul.f32 %v2751_v39, %v6054_v24  ;;  %3126 = vmatpush.msrb.mxu3 %v3113_v35 }
 0x6e5   :  { %v2755_v50 = vmul.f32 0.5, %v2754_v62 }
 0x6e6   :  { %v2831_v22 = vmul.f32 %v6089_v34, %v2812_v60  ;;  %3127 = vmatpush.msrb.mxu3 %v3112_v25 }
 0x6e7   :  { %v2756_v53 = vsub.f32 1.5, %v2755_v50 }
 0x6e8   :  { %3534 = vmatmul.msk.f32.gmra.mxu1 %vm231_vm1, %v2831_v22  ;;  %3128 = vmatpush.msrb.mxu3 %v3111_v10 }
 0x6e9   :  { %v2757_v33 = vmul.f32 %v4025_v7, %v2756_v53 }
 0x6ea   :  { %3129 = vmatpush.msrb.mxu3 %v3110_v9 }
 0x6eb   :  { %v2761_v18 = vsel %vm2760_vm12, %v4025_v7, %v2757_v33 }
 0x6ec   :  { %v2813_v63 = vmul.f32 %v2761_v18, %v6061_v45  ;;  %3130 = vmatpush.msrb.mxu3 %v3109_v12 }
 0x6ee   :  { %v2832_v1 = vmul.f32 %v6089_v34, %v2813_v63  ;;  %3131 = vmatpush.msrb.mxu3 %v3108_v30 }
 0x6ef   :  { %v2600_v19 = vpop.xlane.xlu1 %2599 }
 0x6f0   :  { %3535 = vmatmul.msk.f32.gmra.mxu1 %vm231_vm1, %v2832_v1  ;;  %v2622_v43 = vmul.f32 %v2600_v19, %v6524_v6  ;;  %3132 = vmatpush.msrb.mxu3 %v3107_v16 }
 0x6f2   :  { %v2638_v38 = vadd.f32 1.1920929e-07, %v2622_v43  ;;  %3133 = vmatpush.msrb.mxu3 %v3106_v21 }
 0x6f4   :  { %4026 = vrsqrt.f32 %v2638_v38  ;;  %vm2768_vm14 = vweird.f32 %v2638_v38  ;;  %3134 = vmatpush.msrb.mxu3 %v3105_v23 }
 0x6f6   :  { %3135 = vmatpush.msrb.mxu3 %v3104_v54 }
 0x6f8   :  { %3136 = vmatpush.msrb.mxu3 %v3103_v56 }
 0x6fa   :  { %v4027_v0 = vpop.eup %4026  ;;  %3137 = vmatpush.msrb.mxu3 %v3102_v14 }
 0x6fb   :  { %v2763_v49 = vmul.f32 %v4027_v0, %v2638_v38  ;;  %vm2769_vm13 = vweird.f32 %v4027_v0 }
 0x6fc   :  { %vm2770_vm15 = vmor %vm2768_vm14, %vm2769_vm13 }
 0x6fd   :  { %v2764_v15 = vmul.f32 %v4027_v0, %v2763_v49 }
 0x6ff   :  { %v2765_v28 = vmul.f32 0.5, %v2764_v15 }
 0x701   :  { %v2766_v20 = vsub.f32 1.5, %v2765_v28 }
 0x703   :  { %v2767_v29 = vmul.f32 %v4027_v0, %v2766_v20 }
 0x705   :  { %v2771_v57 = vsel %vm2770_vm15, %v4027_v0, %v2767_v29 }
 0x706   :  { %v2814_v47 = vmul.f32 %v2771_v57, %v6072_v42 }
 0x708   :  { %v2833_v4 = vmul.f32 %v6089_v34, %v2814_v47 }
 0x70a   :  { %3536 = vmatmul.msk.f32.gmra.mxu1 %vm231_vm1, %v2833_v4 }
 0x714   :  { %v2910_v26 = vpop.f32.mrf.mxu1 }
 0x715   :  { %v2911_v40 = vadd.f32 %v6215_v3, %v2910_v26 }
 0x717   :  { %v2958_v11 = vmul.f32 %v2911_v40, %v2911_v40 }
 0x719   :  { %v2974_v36 = vmul.f32 %v2958_v11, %v2911_v40  ;;  %v2603_v17 = vpop.xlane.xlu2 %2602 }
 0x71a   :  { %v2623_v58 = vmul.f32 %v2603_v17, %v6524_v6 }
 0x71b   :  { %v2990_v2 = vmul.f32 0.044715, %v2974_v36 }
 0x71c   :  { %v2639_v37 = vadd.f32 1.1920929e-07, %v2623_v58  ;;  %v2913_v13 = vpop.f32.mrf.mxu1 }
 0x71d   :  { %v3006_v27 = vadd.f32 %v2990_v2, %v2911_v40  ;;  %v2914_v8 = vadd.f32 %v6215_v3, %v2913_v13 }
 0x71e   :  { %4028 = vrsqrt.f32 %v2639_v37  ;;  %vm2778_vm2 = vweird.f32 %v2639_v37 }
 0x71f   :  { %v3022_v52 = vmul.f32 0.7978846, %v3006_v27  ;;  %v2959_v61 = vmul.f32 %v2914_v8, %v2914_v8 }
 0x721   :  { %4030 = vtanh.f32 %v3022_v52  ;;  %v2975_v41 = vmul.f32 %v2959_v61, %v2914_v8 }
 0x723   :  { %v2991_v7 = vmul.f32 0.044715, %v2975_v41 }
 0x724   :  { %v4029_v32 = vpop.eup %4028  ;;  %v2916_v59 = vpop.f32.mrf.mxu1 }
 0x725   :  { %v2773_v39 = vmul.f32 %v4029_v32, %v2639_v37  ;;  %v3007_v62 = vadd.f32 %v2991_v7, %v2914_v8  ;;  %v2917_v60 = vadd.f32 %v6215_v3, %v2916_v59  ;;  %vm2779_vm0 = vweird.f32 %v4029_v32 }
 0x726   :  { %vm2780_vm3 = vmor %vm2778_vm2, %vm2779_vm0 }
 0x727   :  { %v4031_v50 = vpop.eup %4030  ;;  %v2774_v5 = vmul.f32 %v4029_v32, %v2773_v39  ;;  %v2960_v44 = vmul.f32 %v2917_v60, %v2917_v60  ;;  %v3023_v22 = vmul.f32 0.7978846, %v3007_v62 }
 0x728   :  { %v3054_v53 = vadd.f32 1.0, %v4031_v50 }
 0x729   :  { %v2775_v48 = vmul.f32 0.5, %v2774_v5  ;;  %v2976_v33 = vmul.f32 %v2960_v44, %v2917_v60  ;;  %v2606_v55 = vpop.xlane.xlu0 %2605  ;;  %4032 = vtanh.f32 %v3023_v22 }
 0x72a   :  { %v3070_v18 = vmul.f32 0.5, %v3054_v53  ;;  %v2624_v63 = vmul.f32 %v2606_v55, %v6524_v6 }
 0x72b   :  { %v2776_v1 = vsub.f32 1.5, %v2775_v48  ;;  %v2992_v19 = vmul.f32 0.044715, %v2976_v33 }
 0x72c   :  { %v3086_v43 = vmul.f32 %v3070_v18, %v2911_v40  ;;  %v2640_v38 = vadd.f32 1.1920929e-07, %v2624_v63  ;;  %v2919_v0 = vpop.f32.mrf.mxu1 }
 0x72d   :  { %v2777_v35 = vmul.f32 %v4029_v32, %v2776_v1  ;;  %v3008_v49 = vadd.f32 %v2992_v19, %v2917_v60  ;;  %v2920_v25 = vadd.f32 %v6215_v3, %v2919_v0 }
 0x72e   :  { %4034 = vrsqrt.f32 %v2640_v38  ;;  %3138 = vmatmul.f32.vlgmr.msrb.gmra.mxu3 %v3086_v43  ;;  %vm2788_vm5 = vweird.f32 %v2640_v38 }
 0x72f   :  { %v4033_v15 = vpop.eup %4032  ;;  %v2781_v10 = vsel %vm2780_vm3, %v4029_v32, %v2777_v35  ;;  %v2961_v28 = vmul.f32 %v2920_v25, %v2920_v25  ;;  %v3024_v9 = vmul.f32 0.7978846, %v3008_v49 }
 0x730   :  { %v2815_v20 = vmul.f32 %v2781_v10, %v6102_v46  ;;  %v3055_v12 = vadd.f32 1.0, %v4033_v15 }
 0x731   :  { %v2977_v29 = vmul.f32 %v2961_v28, %v2920_v25  ;;  %4036 = vtanh.f32 %v3024_v9 }
 0x732   :  { %v2834_v30 = vmul.f32 %v6089_v34, %v2815_v20  ;;  %v3071_v57 = vmul.f32 0.5, %v3055_v12 }
 0x733   :  { %v2993_v47 = vmul.f32 0.044715, %v2977_v29 }
 0x734   :  { %v4035_v16 = vpop.eup %4034  ;;  %v2922_v4 = vpop.f32.mrf.mxu1  ;;  %3537 = vmatmul.msk.f32.gmra.mxu1 %vm231_vm1, %v2834_v30  ;;  %v3087_v21 = vmul.f32 %v3071_v57, %v2914_v8 }
 0x735   :  { %v2783_v23 = vmul.f32 %v4035_v16, %v2640_v38  ;;  %v3009_v54 = vadd.f32 %v2993_v47, %v2920_v25  ;;  %v2923_v56 = vadd.f32 %v6215_v3, %v2922_v4  ;;  %vm2789_vm4 = vweird.f32 %v4035_v16 }
 0x736   :  { %3140 = vmatmul.f32.gmra.mxu3 %v3087_v21  ;;  %vm2790_vm6 = vmor %vm2788_vm5, %vm2789_vm4 }
 0x737   :  { %v4037_v14 = vpop.eup %4036  ;;  %v2784_v26 = vmul.f32 %v4035_v16, %v2783_v23  ;;  %v2962_v40 = vmul.f32 %v2923_v56, %v2923_v56  ;;  %v3025_v11 = vmul.f32 0.7978846, %v3009_v54 }
 0x738   :  { %v3056_v36 = vadd.f32 1.0, %v4037_v14 }
 0x739   :  { %v2785_v17 = vmul.f32 0.5, %v2784_v26  ;;  %v2978_v58 = vmul.f32 %v2962_v40, %v2923_v56  ;;  %4038 = vtanh.f32 %v3025_v11 }
 0x73a   :  { %v3072_v2 = vmul.f32 0.5, %v3056_v36 }
 0x73b   :  { %v2786_v37 = vsub.f32 1.5, %v2785_v17  ;;  %v2994_v13 = vmul.f32 0.044715, %v2978_v58 }
 0x73c   :  { %v2925_v27 = vpop.f32.mrf.mxu1  ;;  %v3088_v52 = vmul.f32 %v3072_v2, %v2917_v60 }
 0x73d   :  { %v2787_v8 = vmul.f32 %v4035_v16, %v2786_v37  ;;  %v3010_v61 = vadd.f32 %v2994_v13, %v2923_v56  ;;  %v2926_v41 = vadd.f32 %v6215_v3, %v2925_v27  ;;  %v2609_v7 = vpop.xlane.xlu1 %2608 }
 0x73e   :  { %v2625_v32 = vmul.f32 %v2609_v7, %v6524_v6  ;;  %3142 = vmatmul.f32.gmra.mxu3 %v3088_v52 }
 0x73f   :  { %v4039_v59 = vpop.eup %4038  ;;  %v2791_v39 = vsel %vm2790_vm6, %v4035_v16, %v2787_v8  ;;  %v2963_v62 = vmul.f32 %v2926_v41, %v2926_v41  ;;  %v3026_v50 = vmul.f32 0.7978846, %v3010_v61 }
 0x740   :  { %v2641_v5 = vadd.f32 1.1920929e-07, %v2625_v32  ;;  %v2816_v44 = vmul.f32 %v2791_v39, %v6118_v31  ;;  %v3057_v22 = vadd.f32 1.0, %v4039_v59 }
 0x741   :  { %v2979_v53 = vmul.f32 %v2963_v62, %v2926_v41  ;;  %4040 = vtanh.f32 %v3026_v50 }
 0x742   :  { %4042 = vrsqrt.f32 %v2641_v5  ;;  %v2835_v60 = vmul.f32 %v6089_v34, %v2816_v44  ;;  %v3073_v48 = vmul.f32 0.5, %v3057_v22  ;;  %vm2798_vm8 = vweird.f32 %v2641_v5 }
 0x743   :  { %v2995_v33 = vmul.f32 0.044715, %v2979_v53 }
 0x744   :  { %v2928_v55 = vpop.f32.mrf.mxu1  ;;  %3538 = vmatmul.msk.f32.gmra.mxu1 %vm231_vm1, %v2835_v60  ;;  %v3089_v18 = vmul.f32 %v3073_v48, %v2920_v25 }
 0x745   :  { %v3011_v63 = vadd.f32 %v2995_v33, %v2926_v41  ;;  %v2929_v1 = vadd.f32 %v6215_v3, %v2928_v55 }
 0x746   :  { %3144 = vmatmul.f32.gmra.mxu3 %v3089_v18 }
 0x747   :  { %v4041_v19 = vpop.eup %4040  ;;  %v2964_v43 = vmul.f32 %v2929_v1, %v2929_v1  ;;  %v3027_v38 = vmul.f32 0.7978846, %v3011_v63 }
 0x748   :  { %v4043_v0 = vpop.eup %4042  ;;  %v3058_v35 = vadd.f32 1.0, %v4041_v19 }
 0x749   :  { %v2793_v49 = vmul.f32 %v4043_v0, %v2641_v5  ;;  %v2980_v15 = vmul.f32 %v2964_v43, %v2929_v1  ;;  %4044 = vtanh.f32 %v3027_v38  ;;  %vm2799_vm7 = vweird.f32 %v4043_v0 }
 0x74a   :  { %v3074_v10 = vmul.f32 0.5, %v3058_v35  ;;  %vm2800_vm9 = vmor %vm2798_vm8, %vm2799_vm7 }
 0x74b   :  { %v2794_v28 = vmul.f32 %v4043_v0, %v2793_v49  ;;  %v2996_v9 = vmul.f32 0.044715, %v2980_v15 }
 0x74c   :  { %v2931_v20 = vpop.f32.mrf.mxu1  ;;  %v3090_v12 = vmul.f32 %v3074_v10, %v2923_v56 }
 0x74d   :  { %v2795_v29 = vmul.f32 0.5, %v2794_v28  ;;  %v3012_v30 = vadd.f32 %v2996_v9, %v2929_v1  ;;  %v2932_v25 = vadd.f32 %v6215_v3, %v2931_v20 }
 0x74e   :  { %3146 = vmatmul.f32.gmra.mxu3 %v3090_v12 }
 0x74f   :  { %v4045_v57 = vpop.eup %4044  ;;  %v2796_v47 = vsub.f32 1.5, %v2795_v29  ;;  %v2965_v16 = vmul.f32 %v2932_v25, %v2932_v25  ;;  %v3028_v4 = vmul.f32 0.7978846, %v3012_v30 }
 0x750   :  { %v3059_v21 = vadd.f32 1.0, %v4045_v57 }
 0x751   :  { %v2797_v23 = vmul.f32 %v4043_v0, %v2796_v47  ;;  %v2981_v54 = vmul.f32 %v2965_v16, %v2932_v25  ;;  %4046 = vtanh.f32 %v3028_v4 }
 0x752   :  { %v3075_v14 = vmul.f32 0.5, %v3059_v21 }
 0x753   :  { %v2801_v26 = vsel %vm2800_vm9, %v4043_v0, %v2797_v23  ;;  %v2997_v40 = vmul.f32 0.044715, %v2981_v54 }
 0x754   :  { %v2934_v56 = vpop.f32.mrf.mxu1  ;;  %v3091_v11 = vmul.f32 %v3075_v14, %v2926_v41  ;;  %v2817_v36 = vmul.f32 %v2801_v26, %v6135_v51 }
 0x755   :  { %v3013_v17 = vadd.f32 %v2997_v40, %v2932_v25  ;;  %v2935_v58 = vadd.f32 %v6215_v3, %v2934_v56 }
 0x756   :  { %3148 = vmatmul.f32.gmra.mxu3 %v3091_v11  ;;  %v2836_v2 = vmul.f32 %v6089_v34, %v2817_v36 }
 0x757   :  { %v4047_v37 = vpop.eup %4046  ;;  %v2966_v13 = vmul.f32 %v2935_v58, %v2935_v58  ;;  %v3029_v27 = vmul.f32 0.7978846, %v3013_v17 }
 0x758   :  { %3539 = vmatmul.msk.f32.gmra.mxu1 %vm231_vm1, %v2836_v2  ;;  %v3060_v52 = vadd.f32 1.0, %v4047_v37 }
 0x759   :  { %v2982_v8 = vmul.f32 %v2966_v13, %v2935_v58  ;;  %4048 = vtanh.f32 %v3029_v27 }
 0x75a   :  { %v3076_v61 = vmul.f32 0.5, %v3060_v52 }
 0x75b   :  { %v2998_v7 = vmul.f32 0.044715, %v2982_v8 }
 0x75c   :  { %v2937_v32 = vpop.f32.mrf.mxu1  ;;  %v3092_v41 = vmul.f32 %v3076_v61, %v2929_v1 }
 0x75d   :  { %v3014_v59 = vadd.f32 %v2998_v7, %v2935_v58  ;;  %v2938_v39 = vadd.f32 %v6215_v3, %v2937_v32 }
 0x75e   :  { %3150 = vmatmul.f32.gmra.mxu3 %v3092_v41 }
 0x75f   :  { %v4049_v62 = vpop.eup %4048  ;;  %v2967_v50 = vmul.f32 %v2938_v39, %v2938_v39  ;;  %v3030_v5 = vmul.f32 0.7978846, %v3014_v59 }
 0x760   :  { %v3061_v34 = vadd.f32 1.0, %v4049_v62 }
 0x761   :  { %v2983_v44 = vmul.f32 %v2967_v50, %v2938_v39  ;;  %4050 = vtanh.f32 %v3030_v5 }
 0x762   :  { %v3077_v22 = vmul.f32 0.5, %v3061_v34 }
 0x763   :  { %v2999_v53 = vmul.f32 0.044715, %v2983_v44 }
 0x764   :  { %v3093_v60 = vmul.f32 %v3077_v22, %v2932_v25 }
 0x765   :  { %v3015_v48 = vadd.f32 %v2999_v53, %v2938_v39  ;;  %v2940_v33 = vpop.f32.mrf.mxu1 }
 0x766   :  { %v2941_v55 = vadd.f32 %v6215_v3, %v2940_v33  ;;  %3152 = vmatmul.f32.gmra.mxu3 %v3093_v60 }
 0x767   :  { %v4051_v18 = vpop.eup %4050  ;;  %v3031_v63 = vmul.f32 0.7978846, %v3015_v48 }
 0x768   :  { %v2968_v1 = vmul.f32 %v2941_v55, %v2941_v55  ;;  %v3062_v19 = vadd.f32 1.0, %v4051_v18 }
 0x769   :  { %4052 = vtanh.f32 %v3031_v63 }
 0x76a   :  { %v2984_v43 = vmul.f32 %v2968_v1, %v2941_v55  ;;  %v3078_v38 = vmul.f32 0.5, %v3062_v19 }
 0x76c   :  { %v3000_v0 = vmul.f32 0.044715, %v2984_v43  ;;  %v3094_v35 = vmul.f32 %v3078_v38, %v2935_v58 }
 0x76d   :  { %v2943_v49 = vpop.f32.mrf.mxu1 }
 0x76e   :  { %v3016_v15 = vadd.f32 %v3000_v0, %v2941_v55  ;;  %v2944_v10 = vadd.f32 %v6215_v3, %v2943_v49  ;;  %3154 = vmatmul.f32.gmra.mxu3 %v3094_v35 }
 0x76f   :  { %v4053_v28 = vpop.eup %4052 }
 0x770   :  { %v2969_v9 = vmul.f32 %v2944_v10, %v2944_v10  ;;  %v3063_v20 = vadd.f32 1.0, %v4053_v28  ;;  %v3032_v12 = vmul.f32 0.7978846, %v3016_v15 }
 0x772   :  { %v2985_v29 = vmul.f32 %v2969_v9, %v2944_v10  ;;  %v3079_v30 = vmul.f32 0.5, %v3063_v20  ;;  %4054 = vtanh.f32 %v3032_v12 }
 0x774   :  { %v3001_v25 = vmul.f32 0.044715, %v2985_v29  ;;  %v3095_v57 = vmul.f32 %v3079_v30, %v2938_v39 }
 0x776   :  { %v3017_v47 = vadd.f32 %v3001_v25, %v2944_v10  ;;  %3156 = vmatmul.f32.gmra.mxu3 %v3095_v57 }
 0x778   :  { %v4055_v16 = vpop.eup %4054  ;;  %v3033_v4 = vmul.f32 0.7978846, %v3017_v47 }
 0x779   :  { %v3064_v21 = vadd.f32 1.0, %v4055_v16 }
 0x77a   :  { %4056 = vtanh.f32 %v3033_v4 }
 0x77b   :  { %v3080_v23 = vmul.f32 0.5, %v3064_v21 }
 0x77d   :  { %v3096_v54 = vmul.f32 %v3080_v23, %v2941_v55 }
 0x77f   :  { %3158 = vmatmul.f32.gmra.mxu3 %v3096_v54 }
 0x780   :  { %v4057_v14 = vpop.eup %4056 }
 0x781   :  { %v3065_v26 = vadd.f32 1.0, %v4057_v14 }
 0x783   :  { %v3081_v40 = vmul.f32 0.5, %v3065_v26 }
 0x785   :  { %v3097_v56 = vmul.f32 %v3081_v40, %v2944_v10 }
 0x787   :  { %3161 = vmatmul.f32.gmra.mxu3 %v3097_v56  ;;  %v2946_v11 = vpop.f32.mrf.mxu1 }
 0x788   :  { %v2947_v36 = vadd.f32 %v6215_v3, %v2946_v11 }
 0x78a   :  { %v2970_v17 = vmul.f32 %v2947_v36, %v2947_v36 }
 0x78c   :  { %v2986_v58 = vmul.f32 %v2970_v17, %v2947_v36 }
 0x78e   :  { %v3002_v2 = vmul.f32 0.044715, %v2986_v58 }
 0x790   :  { %v3018_v37 = vadd.f32 %v3002_v2, %v2947_v36 }
 0x792   :  { %v3034_v13 = vmul.f32 0.7978846, %v3018_v37 }
 0x794   :  { %4058 = vtanh.f32 %v3034_v13 }
 0x79a   :  { %v4059_v27 = vpop.eup %4058 }
 0x79b   :  { %v3066_v52 = vadd.f32 1.0, %v4059_v27 }
 0x79d   :  { %v3082_v8 = vmul.f32 0.5, %v3066_v52 }
 0x79f   :  { %v3098_v61 = vmul.f32 %v3082_v8, %v2947_v36 }
 0x7a1   :  { %3164 = vmatmul.f32.gmra.mxu3 %v3098_v61 }
 0x7b1   :  { %v2949_v7 = vpop.f32.mrf.mxu1  ;;  %v3139_v32 = vpop.f32.mrf.mxu3 }
 0x7b2   :  { %v2950_v41 = vadd.f32 %v6215_v3, %v2949_v7 }
 0x7b4   :  { %v2971_v59 = vmul.f32 %v2950_v41, %v2950_v41 }
 0x7b6   :  { %v2987_v39 = vmul.f32 %v2971_v59, %v2950_v41 }
 0x7b8   :  { %v3003_v62 = vmul.f32 0.044715, %v2987_v39 }
 0x7b9   :  { %v3141_v50 = vpop.f32.mrf.mxu3 }
 0x7ba   :  { %v3019_v5 = vadd.f32 %v3003_v62, %v2950_v41 }
 0x7bc   :  { %v3035_v34 = vmul.f32 0.7978846, %v3019_v5 }
 0x7be   :  { %4060 = vtanh.f32 %v3035_v34 }
 0x7c1   :  { %v2952_v44 = vpop.f32.mrf.mxu1  ;;  %v3143_v22 = vpop.f32.mrf.mxu3 }
 0x7c2   :  { %v2953_v53 = vadd.f32 %v6215_v3, %v2952_v44 }
 0x7c4   :  { %v4061_v60 = vpop.eup %4060  ;;  %v2972_v48 = vmul.f32 %v2953_v53, %v2953_v53 }
 0x7c5   :  { %v3067_v33 = vadd.f32 1.0, %v4061_v60  ;;  %v3297_v60 = vld [vmem:[%s6349_s18 + $0x10] sm:$0xff] }
 0x7c6   :  { %v2988_v55 = vmul.f32 %v2972_v48, %v2953_v53  ;;  %v3296_v48 = vld [vmem:[%s6349_s18 + $0x8] sm:$0xff] }
 0x7c7   :  { %v3083_v18 = vmul.f32 0.5, %v3067_v33 }
 0x7c8   :  { %v3004_v63 = vmul.f32 0.044715, %v2988_v55 }
 0x7c9   :  { %v3145_v1 = vpop.f32.mrf.mxu3  ;;  %v3099_v19 = vmul.f32 %v3083_v18, %v2950_v41 }
 0x7ca   :  { %v3020_v43 = vadd.f32 %v3004_v63, %v2953_v53 }
 0x7cb   :  { %3167 = vmatmul.f32.gmra.mxu3 %v3099_v19 }
 0x7cc   :  { %v3036_v38 = vmul.f32 0.7978846, %v3020_v43 }
 0x7ce   :  { %4062 = vtanh.f32 %v3036_v38 }
 0x7d1   :  { %v3147_v0 = vpop.f32.mrf.mxu3 }
 0x7d4   :  { %v4063_v35 = vpop.eup %4062 }
 0x7d5   :  { %v2955_v49 = vpop.f32.mrf.mxu1  ;;  %v3068_v15 = vadd.f32 1.0, %v4063_v35 }
 0x7d6   :  { %v2956_v10 = vadd.f32 %v6215_v3, %v2955_v49  ;;  %v3709_v3 = vld [vmem:[%s6348_s17] ss:$0 sm:$0xff] }
 0x7d7   :  { %v3084_v28 = vmul.f32 0.5, %v3068_v15 }
 0x7d8   :  { %v2973_v9 = vmul.f32 %v2956_v10, %v2956_v10 }
 0x7d9   :  { %v3149_v20 = vpop.f32.mrf.mxu3  ;;  %v3100_v12 = vmul.f32 %v3084_v28, %v2953_v53 }
 0x7da   :  { %v2989_v29 = vmul.f32 %v2973_v9, %v2956_v10  ;;  %v6301_v20 = vld [vmem:[%s6344_s13] ss:$0 sm:$0xff] }
 0x7db   :  { %3170 = vmatmul.f32.gmra.mxu3 %v3100_v12 }
 0x7dc   :  { %v3005_v30 = vmul.f32 0.044715, %v2989_v29 }
 0x7de   :  { %v3021_v25 = vadd.f32 %v3005_v30, %v2956_v10 }
 0x7e0   :  { %v3037_v57 = vmul.f32 0.7978846, %v3021_v25 }
 0x7e1   :  { %v3151_v47 = vpop.f32.mrf.mxu3 }
 0x7e2   :  { %4064 = vtanh.f32 %v3037_v57 }
 0x7e8   :  { %v4065_v16 = vpop.eup %4064 }
 0x7e9   :  { %v3153_v4 = vpop.f32.mrf.mxu3  ;;  %v3069_v21 = vadd.f32 1.0, %v4065_v16 }
 0x7eb   :  { %v3085_v23 = vmul.f32 0.5, %v3069_v21 }
 0x7ed   :  { %v3101_v54 = vmul.f32 %v3085_v23, %v2956_v10 }
 0x7ef   :  { %3173 = vmatmul.f32.gmra.mxu3 %v3101_v54 }
 0x7f1   :  { %v3155_v14 = vpop.f32.mrf.mxu3 }
 0x7f9   :  { %v3157_v26 = vpop.f32.mrf.mxu3 }
 0x802   :  { %v3159_v40 = vpop.f32.mrf.mxu3 }
 0x803   :  { %v3160_v56 = vadd.f32 %v3709_v3, %v3159_v40 }
 0x805   :  { %v6249_v11 = vadd.f32 %v3160_v56, %v6054_v24 }
 0x807   :  { %v3184_v36 = vmul.f32 %v6249_v11, %v6249_v11 }
 0x809   :  { %v3190_v17 = vsel %vm231_vm1, %v3184_v36, 0.0 }
 0x80a   :  { %v3162_v58 = vpop.f32.mrf.mxu3  ;;  %3191 = vadd.xlane.f32.xlu2 %v3190_v17 }
 0x80b   :  { %v3163_v2 = vadd.f32 %v3709_v3, %v3162_v58 }
 0x80d   :  { %v6255_v37 = vadd.f32 %v3163_v2, %v6061_v45  ;;  %v3298_v45 = vld [vmem:[%s6349_s18 + $0x18] sm:$0xff] }
 0x80e   :  { %3333 = vmatpush.msrb.mxu0 %v3298_v45 }
 0x80f   :  { %v3185_v13 = vmul.f32 %v6255_v37, %v6255_v37 }
 0x810   :  { %3334 = vmatpush.msrb.mxu0 %v3297_v60 }
 0x811   :  { %v3193_v27 = vsel %vm231_vm1, %v3185_v13, 0.0 }
 0x812   :  { %3194 = vadd.xlane.f32.xlu0 %v3193_v27  ;;  %3335 = vmatpush.msrb.mxu0 %v3296_v48 }
 0x824   :  { %v3165_v52 = vpop.f32.mrf.mxu3 }
 0x825   :  { %v3166_v24 = vadd.f32 %v3709_v3, %v3165_v52 }
 0x827   :  { %v6261_v8 = vadd.f32 %v3166_v24, %v6072_v42 }
 0x829   :  { %v3186_v61 = vmul.f32 %v6261_v8, %v6261_v8 }
 0x82b   :  { %v3196_v7 = vsel %vm231_vm1, %v3186_v61, 0.0 }
 0x82c   :  { %3197 = vadd.xlane.f32.xlu1 %v3196_v7 }
 0x84e   :  { %v3168_v32 = vpop.f32.mrf.mxu3 }
 0x84f   :  { %v3169_v41 = vadd.f32 %v3709_v3, %v3168_v32 }
 0x851   :  { %v6270_v59 = vadd.f32 %v3169_v41, %v6102_v46 }
 0x853   :  { %v3187_v42 = vmul.f32 %v6270_v59, %v6270_v59 }
 0x855   :  { %v3199_v39 = vsel %vm231_vm1, %v3187_v42, 0.0 }
 0x856   :  { %3200 = vadd.xlane.f32.xlu2 %v3199_v39 }
 0x85e   :  { %v3171_v62 = vpop.f32.mrf.mxu3 }
 0x85f   :  { %v3172_v50 = vadd.f32 %v3709_v3, %v3171_v62 }
 0x861   :  { %v6276_v5 = vadd.f32 %v3172_v50, %v6118_v31 }
 0x863   :  { %v3188_v34 = vmul.f32 %v6276_v5, %v6276_v5 }
 0x865   :  { %v3202_v44 = vsel %vm231_vm1, %v3188_v34, 0.0 }
 0x866   :  { %3203 = vadd.xlane.f32.xlu0 %v3202_v44 }
 0x872   :  { %v3174_v22 = vpop.f32.mrf.mxu3 }
 0x873   :  { %v3175_v46 = vadd.f32 %v3709_v3, %v3174_v22 }
 0x875   :  { %v6282_v53 = vadd.f32 %v3175_v46, %v6135_v51  ;;  %v3295_v51 = vld [vmem:[%s6349_s18] sm:$0xff] }
 0x876   :  { %3336 = vmatpush.msrb.mxu0 %v3295_v51 }
 0x877   :  { %v3189_v31 = vmul.f32 %v6282_v53, %v6282_v53 }
 0x879   :  { %v3205_v33 = vsel %vm231_vm1, %v3189_v31, 0.0 }
 0x87a   :  { %3206 = vadd.xlane.f32.xlu1 %v3205_v33 }
 0x87d   :  { %v3192_v55 = vpop.xlane.xlu2 %3191 }
 0x87e   :  { %v3208_v18 = vmul.f32 %v3192_v55, %v6524_v6 }
 0x880   :  { %v3214_v63 = vadd.f32 1.1920929e-07, %v3208_v18 }
 0x882   :  { %4066 = vrsqrt.f32 %v3214_v63  ;;  %vm3226_vm11 = vweird.f32 %v3214_v63 }
 0x885   :  { %v3195_v1 = vpop.xlane.xlu0 %3194 }
 0x886   :  { %v3209_v19 = vmul.f32 %v3195_v1, %v6524_v6 }
 0x888   :  { %v4067_v43 = vpop.eup %4066  ;;  %v3215_v38 = vadd.f32 1.1920929e-07, %v3209_v19 }
 0x889   :  { %v3221_v0 = vmul.f32 %v4067_v43, %v3214_v63  ;;  %vm3227_vm10 = vweird.f32 %v4067_v43 }
 0x88a   :  { %4068 = vrsqrt.f32 %v3215_v38  ;;  %vm3228_vm12 = vmor %vm3226_vm11, %vm3227_vm10  ;;  %vm3236_vm14 = vweird.f32 %v3215_v38 }
 0x88b   :  { %v3222_v35 = vmul.f32 %v4067_v43, %v3221_v0 }
 0x88d   :  { %v3223_v49 = vmul.f32 0.5, %v3222_v35 }
 0x88f   :  { %v3224_v15 = vsub.f32 1.5, %v3223_v49 }
 0x890   :  { %v4069_v10 = vpop.eup %4068 }
 0x891   :  { %v3225_v28 = vmul.f32 %v4067_v43, %v3224_v15  ;;  %v3231_v9 = vmul.f32 %v4069_v10, %v3215_v38  ;;  %vm3237_vm13 = vweird.f32 %v4069_v10 }
 0x892   :  { %vm3238_vm15 = vmor %vm3236_vm14, %vm3237_vm13 }
 0x893   :  { %v3229_v12 = vsel %vm3228_vm12, %v4067_v43, %v3225_v28  ;;  %v3232_v29 = vmul.f32 %v4069_v10, %v3231_v9 }
 0x894   :  { %v3280_v30 = vmul.f32 %v3229_v12, %v6249_v11 }
 0x895   :  { %v3233_v25 = vmul.f32 0.5, %v3232_v29 }
 0x896   :  { %v3289_v57 = vmul.f32 %v6301_v20, %v3280_v30 }
 0x897   :  { %v3234_v47 = vsub.f32 1.5, %v3233_v25 }
 0x898   :  { %3540 = vmatmul.msk.f32.vlgmr.msrb.gmra.mxu0 %vm231_vm1, %v3289_v57 }
 0x899   :  { %v3235_v16 = vmul.f32 %v4069_v10, %v3234_v47 }
 0x89b   :  { %v3239_v4 = vsel %vm3238_vm15, %v4069_v10, %v3235_v16 }
 0x89c   :  { %v3281_v21 = vmul.f32 %v3239_v4, %v6255_v37 }
 0x89e   :  { %v3290_v23 = vmul.f32 %v6301_v20, %v3281_v21 }
 0x89f   :  { %v3198_v54 = vpop.xlane.xlu1 %3197 }
 0x8a0   :  { %3541 = vmatmul.msk.f32.gmra.mxu0 %vm231_vm1, %v3290_v23  ;;  %v3210_v14 = vmul.f32 %v3198_v54, %v6524_v6 }
 0x8a2   :  { %v3216_v26 = vadd.f32 1.1920929e-07, %v3210_v14 }
 0x8a4   :  { %4070 = vrsqrt.f32 %v3216_v26  ;;  %vm3246_vm2 = vweird.f32 %v3216_v26 }
 0x8aa   :  { %v4071_v3 = vpop.eup %4070 }
 0x8ab   :  { %v3241_v40 = vmul.f32 %v4071_v3, %v3216_v26  ;;  %vm3247_vm0 = vweird.f32 %v4071_v3 }
 0x8ac   :  { %vm3248_vm3 = vmor %vm3246_vm2, %vm3247_vm0 }
 0x8ad   :  { %v3242_v56 = vmul.f32 %v4071_v3, %v3241_v40 }
 0x8af   :  { %v3243_v11 = vmul.f32 0.5, %v3242_v56 }
 0x8b1   :  { %v3244_v36 = vsub.f32 1.5, %v3243_v11 }
 0x8b3   :  { %v3245_v17 = vmul.f32 %v4071_v3, %v3244_v36 }
 0x8b5   :  { %v3249_v58 = vsel %vm3248_vm3, %v4071_v3, %v3245_v17 }
 0x8b6   :  { %v3282_v2 = vmul.f32 %v3249_v58, %v6261_v8 }
 0x8b8   :  { %v3291_v37 = vmul.f32 %v6301_v20, %v3282_v2 }
 0x8ba   :  { %3542 = vmatmul.msk.f32.gmra.mxu0 %vm231_vm1, %v3291_v37 }
 0x8c9   :  { %v3201_v13 = vpop.xlane.xlu2 %3200 }
 0x8ca   :  { %v3211_v27 = vmul.f32 %v3201_v13, %v6524_v6 }
 0x8cc   :  { %v3217_v52 = vadd.f32 1.1920929e-07, %v3211_v27 }
 0x8ce   :  { %4072 = vrsqrt.f32 %v3217_v52  ;;  %vm3256_vm5 = vweird.f32 %v3217_v52 }
 0x8d4   :  { %v4073_v24 = vpop.eup %4072 }
 0x8d5   :  { %v3251_v61 = vmul.f32 %v4073_v24, %v3217_v52  ;;  %vm3257_vm4 = vweird.f32 %v4073_v24 }
 0x8d6   :  { %vm3258_vm6 = vmor %vm3256_vm5, %vm3257_vm4 }
 0x8d7   :  { %v3252_v7 = vmul.f32 %v4073_v24, %v3251_v61 }
 0x8d9   :  { %v3253_v45 = vmul.f32 0.5, %v3252_v7  ;;  %v3204_v32 = vpop.xlane.xlu0 %3203 }
 0x8da   :  { %v3212_v41 = vmul.f32 %v3204_v32, %v6524_v6 }
 0x8db   :  { %v3254_v42 = vsub.f32 1.5, %v3253_v45 }
 0x8dc   :  { %v3218_v39 = vadd.f32 1.1920929e-07, %v3212_v41 }
 0x8dd   :  { %v3255_v8 = vmul.f32 %v4073_v24, %v3254_v42 }
 0x8de   :  { %4074 = vrsqrt.f32 %v3218_v39  ;;  %vm3266_vm8 = vweird.f32 %v3218_v39 }
 0x8df   :  { %v3259_v62 = vsel %vm3258_vm6, %v4073_v24, %v3255_v8 }
 0x8e0   :  { %v3283_v50 = vmul.f32 %v3259_v62, %v6270_v59 }
 0x8e2   :  { %v3292_v34 = vmul.f32 %v6301_v20, %v3283_v50 }
 0x8e4   :  { %v4075_v44 = vpop.eup %4074  ;;  %3543 = vmatmul.msk.f32.gmra.mxu0 %vm231_vm1, %v3292_v34 }
 0x8e5   :  { %v3261_v22 = vmul.f32 %v4075_v44, %v3218_v39  ;;  %vm3267_vm7 = vweird.f32 %v4075_v44 }
 0x8e6   :  { %vm3268_vm9 = vmor %vm3266_vm8, %vm3267_vm7 }
 0x8e7   :  { %v3262_v46 = vmul.f32 %v4075_v44, %v3261_v22 }
 0x8e9   :  { %v3263_v60 = vmul.f32 0.5, %v3262_v46 }
 0x8eb   :  { %v3264_v31 = vsub.f32 1.5, %v3263_v60 }
 0x8ed   :  { %v3265_v48 = vmul.f32 %v4075_v44, %v3264_v31  ;;  %v3207_v33 = vpop.xlane.xlu1 %3206 }
 0x8ee   :  { %v3213_v51 = vmul.f32 %v3207_v33, %v6524_v6 }
 0x8ef   :  { %v3269_v55 = vsel %vm3268_vm9, %v4075_v44, %v3265_v48 }
 0x8f0   :  { %v3219_v18 = vadd.f32 1.1920929e-07, %v3213_v51  ;;  %v3284_v59 = vmul.f32 %v3269_v55, %v6276_v5  ;;  %v3711_v5 = vld [vmem:[%s6350_s19] ss:$0 sm:$0xff]  ;;  %s3368_s19 = sshll.u32 %s6351_s20, 4  ;;  %s3369_s19 = int_to_ptr.hbm [resolvable:$true] %s3368_s19 }
 0x8f2   :  { %4076 = vrsqrt.f32 %v3219_v18  ;;  %v3293_v63 = vmul.f32 %v6301_v20, %v3284_v59  ;;  %vm3276_vm11 = vweird.f32 %v3219_v18 }
 0x8f4   :  { %3544 = vmatmul.msk.f32.gmra.mxu0 %vm231_vm1, %v3293_v63 }
 0x8f8   :  { %v4077_v1 = vpop.eup %4076 }
 0x8f9   :  { %v3271_v19 = vmul.f32 %v4077_v1, %v3219_v18  ;;  %vm3277_vm10 = vweird.f32 %v4077_v1 }
 0x8fa   :  { %vm3278_vm12 = vmor %vm3276_vm11, %vm3277_vm10 }
 0x8fb   :  { %v3272_v43 = vmul.f32 %v4077_v1, %v3271_v19 }
 0x8fd   :  { %v3273_v38 = vmul.f32 0.5, %v3272_v43 }
 0x8ff   :  { %v3274_v0 = vsub.f32 1.5, %v3273_v38 }
 0x901   :  { %v3275_v35 = vmul.f32 %v4077_v1, %v3274_v0 }
 0x903   :  { %v3279_v49 = vsel %vm3278_vm12, %v4077_v1, %v3275_v35 }
 0x904   :  { %v3285_v6 = vmul.f32 %v3279_v49, %v6282_v53 }
 0x906   :  { %v3294_v15 = vmul.f32 %v6301_v20, %v3285_v6 }
 0x908   :  { %3545 = vmatmul.msk.f32.gmra.mxu0 %vm231_vm1, %v3294_v15 }
 0x915   :  { %v3338_v10 = vpop.f32.mrf.mxu0 }
 0x916   :  { %v3339_v28 = vadd.f32 %v3711_v5, %v3338_v10 }
 0x918   :  { %3356 = vst [vmem:[#allocation2] sm:$0xff] %v3339_v28 }
 0x91d   :  { %v3341_v9 = vpop.f32.mrf.mxu0 }
 0x91e   :  { %v3342_v12 = vadd.f32 %v3711_v5, %v3341_v9 }
 0x920   :  { %3357 = vst [vmem:[#allocation2 + $0x8] sm:$0xff] %v3342_v12 }
 0x937   :  { %v3344_v29 = vpop.f32.mrf.mxu0 }
 0x938   :  { %v3345_v30 = vadd.f32 %v3711_v5, %v3344_v29 }
 0x93a   :  { %3358 = vst [vmem:[#allocation2 + $0x10] sm:$0xff] %v3345_v30 }
 0x961   :  { %v3347_v25 = vpop.f32.mrf.mxu0 }
 0x962   :  { %v3348_v57 = vadd.f32 %v3711_v5, %v3347_v25 }
 0x964   :  { %3359 = vst [vmem:[#allocation2 + $0x18] sm:$0xff] %v3348_v57 }
 0x971   :  { %v3350_v53 = vpop.f32.mrf.mxu0 }
 0x972   :  { %v3351_v20 = vadd.f32 %v3711_v5, %v3350_v53 }
 0x974   :  { %3360 = vst [vmem:[#allocation2 + $0x20] sm:$0xff] %v3351_v20 }
 0x985   :  { %v3353_v47 = vpop.f32.mrf.mxu0 }
 0x986   :  { %v3354_v16 = vadd.f32 %v3711_v5, %v3353_v47 }
 0x988   :  { %3361 = vst [vmem:[#allocation2 + $0x28] sm:$0xff] %v3354_v16 }
 0x989   :  { %3374 = dma.vmem_to_hbm [thread:$0]  %s3367_s9, 768, %s3369_s19, [#allocation3], %s4111_s8, %s4111_s8, %s4112_s12  }
 0x98a   :  { %4102 = dma.done.wait [#allocation3], 768  }
 0x98b   :  { %4103 = vsyncadd [#allocation3], 4294966528 }
 0x98c   :  { %3379 = vsyncpa [#allocation3], 1 }

</bundles_post_ra>
